<compile_context>
chip_gen: v7x
topology: tpu7x:2x2x1
jax: 0.10.0
libtpu: 0.0.40
codegen_flags: <defaults>
</compile_context>

<pallas_src>
import jax
import jax.numpy as jnp
from jax.experimental import pallas as pl
from jax.experimental.pallas import tpu as pltpu

K_PAD = 896  # 7 * 128 >= 794 (784 pixels + 10 one-hot class columns)


def _round_up(n, m):
    return ((n + m - 1) // m) * m


def _pick_tile_b(B):
    """Batch tile: multiple of 8, >= 2 tiles whenever B > 8 (keeps both v7x
    TensorCores busy), capped at 512 rows (amortizes per-step overhead on v6e
    without blowing VMEM), and sized to minimize padded rows for awkward B."""
    B8 = _round_up(B, 8)
    if B8 <= 8:
        return 8
    half = _round_up(B8, 16) // 2      # multiple of 8, yields >= 2 tiles
    return min(512, half)


def _disc_kernel(x_ref, w1_ref, b1_ref, w2_ref, b2_ref, w3_ref, b3_ref,
                 w4_ref, b4_ref, out_ref):
    # x_ref: (tb, 896) bf16  = [pixels(784) | one-hot label(10) | zeros(102)]
    # w1_ref: (896, 1024) bf16 = [W1a ; emb @ W1b ; zeros]
    x = x_ref[...]

    # Layer 1: 794 -> 1024 (class contribution rides in the padded K columns)
    h = jnp.dot(x, w1_ref[...], preferred_element_type=jnp.float32) + b1_ref[...]
    h = jnp.maximum(h, 0.2 * h)                  # LeakyReLU(0.2); Dropout -> identity

    # Layer 2: 1024 -> 512
    h = jnp.dot(h.astype(jnp.bfloat16), w2_ref[...],
                preferred_element_type=jnp.float32) + b2_ref[...]
    h = jnp.maximum(h, 0.2 * h)

    # Layer 3: 512 -> 256
    h = jnp.dot(h.astype(jnp.bfloat16), w3_ref[...],
                preferred_element_type=jnp.float32) + b3_ref[...]
    h = jnp.maximum(h, 0.2 * h)

    # Layer 4: 256 -> 1 as a VPU broadcast-mul + lane reduction (avoids an N=1
    # MXU pass), then Sigmoid.  Store lane-dense: one (1, tb) row per step.
    logit = jnp.sum(h * w4_ref[...], axis=-1) + b4_ref[0, 0]      # (tb,)
    out_ref[...] = jax.nn.sigmoid(logit)[None, :]                 # (1, tb)


def discriminator_forward(x, labels, params):
    """x: (B, 1, 28, 28) or (B, 784) f32, labels: (B,) int. Returns (B,) f32."""
    x = x.reshape(x.shape[0], 784)               # mirrors x.view(x.size(0), 784)
    B = x.shape[0]
    labels = labels.astype(jnp.int32)

    tile_b = _pick_tile_b(B)
    B_pad = _round_up(B, tile_b)
    num_tiles = B_pad // tile_b

    # ---- wrapper-side prep (cheap, fused by XLA) ---------------------------
    # x @ W1a + emb[label] @ W1b + b1 == [x | onehot | 0] @ [W1a ; emb@W1b ; 0] + b1
    onehot = jax.nn.one_hot(labels, 10, dtype=x.dtype)                   # (B, 10)
    x_cat = jnp.concatenate([x, onehot], axis=1).astype(jnp.bfloat16)    # (B, 794)
    x_bf = jnp.pad(x_cat, ((0, B_pad - B), (0, K_PAD - 794)))            # (B_pad, 896)

    cls_rows = (params["emb"] @ params["w1b"]).astype(jnp.bfloat16)      # (10, 1024)
    w1 = jnp.concatenate(
        [params["w1a"].astype(jnp.bfloat16), cls_rows,
         jnp.zeros((K_PAD - 794, 1024), jnp.bfloat16)], axis=0)          # (896, 1024)
    b1 = params["b1"]                                                    # (1, 1024) f32
    w2 = params["w2"].astype(jnp.bfloat16)                               # (1024, 512)
    w3 = params["w3"].astype(jnp.bfloat16)                               # (512, 256)
    w4_row = params["w4"].T.astype(jnp.float32)                          # (1, 256)
    b2, b3, b4 = params["b2"], params["b3"], params["b4"]

    batch = lambda i: (i, 0)        # activations: stream over batch tiles
    const = lambda i: (0, 0)        # weights/biases: same block every step (no re-DMA)

    out = pl.pallas_call(
        _disc_kernel,
        out_shape=jax.ShapeDtypeStruct((num_tiles, tile_b), jnp.float32),
        grid=(num_tiles,),
        in_specs=[
            pl.BlockSpec((tile_b, K_PAD), batch),     # x (+ one-hot class)
            pl.BlockSpec((K_PAD, 1024), const),       # w1 (incl. class table)
            pl.BlockSpec((1, 1024), const),           # b1 (f32)
            pl.BlockSpec((1024, 512), const),         # w2
            pl.BlockSpec((1, 512), const),            # b2
            pl.BlockSpec((512, 256), const),          # w3
            pl.BlockSpec((1, 256), const),            # b3
            pl.BlockSpec((1, 256), const),            # w4 (row)
            pl.BlockSpec((1, 1), const),              # b4
        ],
        out_specs=pl.BlockSpec((1, tile_b), lambda i: (i, 0)),
        compiler_params=pltpu.CompilerParams(
            dimension_semantics=("parallel",),
            vmem_limit_bytes=48 << 20,
        ),
    )(x_bf, w1, b1, w2, b2, w3, b3, w4_row, b4)

    return out.reshape(-1)[:B]                                           # (B,)


def init_params(key):
    """Deterministic synthetic parameters matching the nn.Module shapes."""
    ks = jax.random.split(key, 10)

    def lin(k, fan_in, fan_out):
        scale = 1.0 / jnp.sqrt(fan_in)
        kw, kb = jax.random.split(k)
        w = jax.random.uniform(kw, (fan_in, fan_out), jnp.float32, -scale, scale)
        b = jax.random.uniform(kb, (1, fan_out), jnp.float32, -scale, scale)
        return w, b

    emb = jax.random.normal(ks[0], (10, 10), jnp.float32)           # nn.Embedding(10,10)
    w1, b1 = lin(ks[1], 794, 1024)                                  # nn.Linear(794,1024)
    w2, b2 = lin(ks[2], 1024, 512)
    w3, b3 = lin(ks[3], 512, 256)
    w4, b4 = lin(ks[4], 256, 1)
    return {
        "emb": emb,
        "w1a": w1[:784], "w1b": w1[784:], "b1": b1,
        "w2": w2, "b2": b2,
        "w3": w3, "b3": b3,
        "w4": w4, "b4": b4,
    }


def _reference_f32(x, labels, p):
    """Pure-JAX f32 reference (original module semantics, eval mode)."""
    x = x.reshape(x.shape[0], 784)
    c = p["emb"][labels]
    h = x @ p["w1a"] + c @ p["w1b"] + p["b1"]
    h = jnp.where(h > 0, h, 0.2 * h)
    h = h @ p["w2"] + p["b2"]
    h = jnp.where(h > 0, h, 0.2 * h)
    h = h @ p["w3"] + p["b3"]
    h = jnp.where(h > 0, h, 0.2 * h)
    h = h @ p["w4"] + p["b4"]
    return jax.nn.sigmoid(h)[:, 0]


def _reference_bf16(x, labels, p):
    """Pure-JAX reference mirroring the kernel's bf16-weight / f32-accumulate math."""
    x = x.reshape(x.shape[0], 784)
    onehot = jax.nn.one_hot(labels, 10, dtype=x.dtype)
    x_cat = jnp.concatenate([x, onehot], axis=1).astype(jnp.bfloat16)
    w1 = jnp.concatenate([p["w1a"].astype(jnp.bfloat16),
                          (p["emb"] @ p["w1b"]).astype(jnp.bfloat16)], axis=0)
    h = jnp.dot(x_cat, w1, preferred_element_type=jnp.float32) + p["b1"]
    h = jnp.maximum(h, 0.2 * h)
    h = jnp.dot(h.astype(jnp.bfloat16), p["w2"].astype(jnp.bfloat16),
                preferred_element_type=jnp.float32) + p["b2"]
    h = jnp.maximum(h, 0.2 * h)
    h = jnp.dot(h.astype(jnp.bfloat16), p["w3"].astype(jnp.bfloat16),
                preferred_element_type=jnp.float32) + p["b3"]
    h = jnp.maximum(h, 0.2 * h)
    logit = jnp.sum(h * p["w4"].T.astype(jnp.float32), axis=-1) + p["b4"][0, 0]
    return jax.nn.sigmoid(logit)


if __name__ == "__main__":
    key = jax.random.PRNGKey(0)
    kx, kl, kp = jax.random.split(key, 3)

    B = 8
    x = jax.random.normal(kx, (B, 1, 28, 28), jnp.float32)   # NCHW MNIST-like batch
    labels = jax.random.randint(kl, (B,), 0, 10, jnp.int32)
    params = init_params(kp)

    out = discriminator_forward(x, labels, params)
    out = jax.block_until_ready(out)
    assert out.shape == (B,)

    # Tight check against a reference that mirrors the kernel's bf16/f32 math.
    ref_bf16 = _reference_bf16(x, labels, params)
    assert jnp.allclose(out, ref_bf16, atol=1e-3, rtol=1e-3), (out, ref_bf16)

    # Loose sanity check against the original full-f32 forward semantics.
    ref_f32 = _reference_f32(x, labels, params)
    assert jnp.max(jnp.abs(out - ref_f32)) < 5e-2, (out, ref_f32)

    print("KERNEL_OK")
</pallas_src>

<mosaic_0001>
module attributes {stable_mosaic.version = 11 : i64} {
  func.func @_disc_kernel(%arg0: i32, %arg1: memref<8x896xbf16, #tpu.memory_space<vmem>>, %arg2: memref<896x1024xbf16, #tpu.memory_space<vmem>>, %arg3: memref<1x1024xf32, #tpu.memory_space<vmem>>, %arg4: memref<1024x512xbf16, #tpu.memory_space<vmem>>, %arg5: memref<1x512xf32, #tpu.memory_space<vmem>>, %arg6: memref<512x256xbf16, #tpu.memory_space<vmem>>, %arg7: memref<1x256xf32, #tpu.memory_space<vmem>>, %arg8: memref<1x256xf32, #tpu.memory_space<vmem>>, %arg9: memref<1x1xf32, #tpu.memory_space<vmem>>, %arg10: memref<1x8xf32, #tpu.memory_space<vmem>>) attributes {dimension_semantics = [#tpu.dimension_semantics<parallel>], iteration_bounds = array<i64: 1>, scalar_prefetch = 0 : i64, scratch_operands = 0 : i64, tpu.core_type = #tpu.core_type<tc>, window_params = [{transform_indices = @transform_0, window_bounds = array<i64: 8, 896>}, {pipeline_mode = #tpu.pipeline_mode<synchronous>, transform_indices = @transform_1, window_bounds = array<i64: 896, 1024>}, {pipeline_mode = #tpu.pipeline_mode<synchronous>, transform_indices = @transform_2, window_bounds = array<i64: 1, 1024>}, {pipeline_mode = #tpu.pipeline_mode<synchronous>, transform_indices = @transform_3, window_bounds = array<i64: 1024, 512>}, {pipeline_mode = #tpu.pipeline_mode<synchronous>, transform_indices = @transform_4, window_bounds = array<i64: 1, 512>}, {pipeline_mode = #tpu.pipeline_mode<synchronous>, transform_indices = @transform_5, window_bounds = array<i64: 512, 256>}, {pipeline_mode = #tpu.pipeline_mode<synchronous>, transform_indices = @transform_6, window_bounds = array<i64: 1, 256>}, {pipeline_mode = #tpu.pipeline_mode<synchronous>, transform_indices = @transform_7, window_bounds = array<i64: 1, 256>}, {pipeline_mode = #tpu.pipeline_mode<synchronous>, transform_indices = @transform_8, window_bounds = array<i64: 1, 1>}, {transform_indices = @transform_9, window_bounds = array<i64: 1, 8>}]} {
    %c0 = arith.constant 0 : index
    %c0_0 = arith.constant 0 : index
    %0 = vector.load %arg1[%c0, %c0_0] : memref<8x896xbf16, #tpu.memory_space<vmem>>, vector<8x896xbf16>
    %c0_1 = arith.constant 0 : index
    %c0_2 = arith.constant 0 : index
    %1 = vector.load %arg2[%c0_1, %c0_2] : memref<896x1024xbf16, #tpu.memory_space<vmem>>, vector<896x1024xbf16>
    %cst = arith.constant dense<0.000000e+00> : vector<8x1024xf32>
    %2 = tpu.matmul %0, %1, %cst {dimension_numbers = #tpu.dot_dimension_numbers<[1], [0], [0], [1], [0, 0, 1, 1], [], []>} : vector<8x896xbf16>, vector<896x1024xbf16>, vector<8x1024xf32> -> vector<8x1024xf32>
    %c0_3 = arith.constant 0 : index
    %c0_4 = arith.constant 0 : index
    %3 = vector.load %arg3[%c0_3, %c0_4] : memref<1x1024xf32, #tpu.memory_space<vmem>>, vector<1x1024xf32>
    %4 = vector.broadcast %3 : vector<1x1024xf32> to vector<8x1024xf32>
    %5 = arith.addf %2, %4 : vector<8x1024xf32>
    %cst_5 = arith.constant 2.000000e-01 : f32
    %6 = vector.broadcast %cst_5 : f32 to vector<8x1024xf32>
    %7 = arith.mulf %6, %5 : vector<8x1024xf32>
    %8 = arith.maximumf %5, %7 : vector<8x1024xf32>
    %9 = arith.truncf %8 : vector<8x1024xf32> to vector<8x1024xbf16>
    %c0_6 = arith.constant 0 : index
    %c0_7 = arith.constant 0 : index
    %10 = vector.load %arg4[%c0_6, %c0_7] : memref<1024x512xbf16, #tpu.memory_space<vmem>>, vector<1024x512xbf16>
    %cst_8 = arith.constant dense<0.000000e+00> : vector<8x512xf32>
    %11 = tpu.matmul %9, %10, %cst_8 {dimension_numbers = #tpu.dot_dimension_numbers<[1], [0], [0], [1], [0, 0, 1, 1], [], []>} : vector<8x1024xbf16>, vector<1024x512xbf16>, vector<8x512xf32> -> vector<8x512xf32>
    %c0_9 = arith.constant 0 : index
    %c0_10 = arith.constant 0 : index
    %12 = vector.load %arg5[%c0_9, %c0_10] : memref<1x512xf32, #tpu.memory_space<vmem>>, vector<1x512xf32>
    %13 = vector.broadcast %12 : vector<1x512xf32> to vector<8x512xf32>
    %14 = arith.addf %11, %13 : vector<8x512xf32>
    %cst_11 = arith.constant 2.000000e-01 : f32
    %15 = vector.broadcast %cst_11 : f32 to vector<8x512xf32>
    %16 = arith.mulf %15, %14 : vector<8x512xf32>
    %17 = arith.maximumf %14, %16 : vector<8x512xf32>
    %18 = arith.truncf %17 : vector<8x512xf32> to vector<8x512xbf16>
    %c0_12 = arith.constant 0 : index
    %c0_13 = arith.constant 0 : index
    %19 = vector.load %arg6[%c0_12, %c0_13] : memref<512x256xbf16, #tpu.memory_space<vmem>>, vector<512x256xbf16>
    %cst_14 = arith.constant dense<0.000000e+00> : vector<8x256xf32>
    %20 = tpu.matmul %18, %19, %cst_14 {dimension_numbers = #tpu.dot_dimension_numbers<[1], [0], [0], [1], [0, 0, 1, 1], [], []>} : vector<8x512xbf16>, vector<512x256xbf16>, vector<8x256xf32> -> vector<8x256xf32>
    %c0_15 = arith.constant 0 : index
    %c0_16 = arith.constant 0 : index
    %21 = vector.load %arg7[%c0_15, %c0_16] : memref<1x256xf32, #tpu.memory_space<vmem>>, vector<1x256xf32>
    %22 = vector.broadcast %21 : vector<1x256xf32> to vector<8x256xf32>
    %23 = arith.addf %20, %22 : vector<8x256xf32>
    %cst_17 = arith.constant 2.000000e-01 : f32
    %24 = vector.broadcast %cst_17 : f32 to vector<8x256xf32>
    %25 = arith.mulf %24, %23 : vector<8x256xf32>
    %26 = arith.maximumf %23, %25 : vector<8x256xf32>
    %c0_18 = arith.constant 0 : index
    %c0_19 = arith.constant 0 : index
    %27 = vector.load %arg8[%c0_18, %c0_19] : memref<1x256xf32, #tpu.memory_space<vmem>>, vector<1x256xf32>
    %28 = vector.broadcast %27 : vector<1x256xf32> to vector<8x256xf32>
    %29 = arith.mulf %26, %28 : vector<8x256xf32>
    %cst_20 = arith.constant dense<0.000000e+00> : vector<8xf32>
    %30 = vector.multi_reduction <add>, %29, %cst_20 [1] : vector<8x256xf32> to vector<8xf32>
    %c0_21 = arith.constant 0 : index
    %c0_22 = arith.constant 0 : index
    %31 = vector.load %arg9[%c0_21, %c0_22] : memref<1x1xf32, #tpu.memory_space<vmem>>, vector<1x1xf32>
    %32 = vector.extract %31[0, 0] : f32 from vector<1x1xf32>
    %33 = vector.broadcast %32 : f32 to vector<8xf32>
    %34 = arith.addf %30, %33 : vector<8xf32>
    %35 = arith.negf %34 : vector<8xf32>
    %36 = math.exp %35 : vector<8xf32>
    %cst_23 = arith.constant 1.000000e+00 : f32
    %37 = vector.broadcast %cst_23 : f32 to vector<8xf32>
    %38 = arith.addf %37, %36 : vector<8xf32>
    %39 = arith.divf %37, %38 : vector<8xf32>
    %40 = vector.shape_cast %39 : vector<8xf32> to vector<1x8xf32>
    %c0_24 = arith.constant 0 : index
    %c0_25 = arith.constant 0 : index
    %41 = vector.load %arg10[%c0_24, %c0_25] : memref<1x8xf32, #tpu.memory_space<vmem>>, vector<1x8xf32>
    tpu.vector_store %arg10[%c0_24, %c0_25], %40 {strides = array<i32>} : memref<1x8xf32, #tpu.memory_space<vmem>>, vector<1x8xf32>,
    return
  }
  func.func @transform_0(%arg0: i32) -> (i32, i32) {
    %c0_i32 = arith.constant 0 : i32
    %c0_i32_0 = arith.constant 0 : i32
    return %arg0, %c0_i32 : i32, i32
  }
  func.func @transform_1(%arg0: i32) -> (i32, i32) {
    %c0_i32 = arith.constant 0 : i32
    %c0_i32_0 = arith.constant 0 : i32
    %c0_i32_1 = arith.constant 0 : i32
    return %c0_i32, %c0_i32_0 : i32, i32
  }
  func.func @transform_2(%arg0: i32) -> (i32, i32) {
    %c0_i32 = arith.constant 0 : i32
    %c0_i32_0 = arith.constant 0 : i32
    %c0_i32_1 = arith.constant 0 : i32
    return %c0_i32, %c0_i32_0 : i32, i32
  }
  func.func @transform_3(%arg0: i32) -> (i32, i32) {
    %c0_i32 = arith.constant 0 : i32
    %c0_i32_0 = arith.constant 0 : i32
    %c0_i32_1 = arith.constant 0 : i32
    return %c0_i32, %c0_i32_0 : i32, i32
  }
  func.func @transform_4(%arg0: i32) -> (i32, i32) {
    %c0_i32 = arith.constant 0 : i32
    %c0_i32_0 = arith.constant 0 : i32
    %c0_i32_1 = arith.constant 0 : i32
    return %c0_i32, %c0_i32_0 : i32, i32
  }
  func.func @transform_5(%arg0: i32) -> (i32, i32) {
    %c0_i32 = arith.constant 0 : i32
    %c0_i32_0 = arith.constant 0 : i32
    %c0_i32_1 = arith.constant 0 : i32
    return %c0_i32, %c0_i32_0 : i32, i32
  }
  func.func @transform_6(%arg0: i32) -> (i32, i32) {
    %c0_i32 = arith.constant 0 : i32
    %c0_i32_0 = arith.constant 0 : i32
    %c0_i32_1 = arith.constant 0 : i32
    return %c0_i32, %c0_i32_0 : i32, i32
  }
  func.func @transform_7(%arg0: i32) -> (i32, i32) {
    %c0_i32 = arith.constant 0 : i32
    %c0_i32_0 = arith.constant 0 : i32
    %c0_i32_1 = arith.constant 0 : i32
    return %c0_i32, %c0_i32_0 : i32, i32
  }
  func.func @transform_8(%arg0: i32) -> (i32, i32) {
    %c0_i32 = arith.constant 0 : i32
    %c0_i32_0 = arith.constant 0 : i32
    %c0_i32_1 = arith.constant 0 : i32
    return %c0_i32, %c0_i32_0 : i32, i32
  }
  func.func @transform_9(%arg0: i32) -> (i32, i32) {
    %c0_i32 = arith.constant 0 : i32
    %c0_i32_0 = arith.constant 0 : i32
    return %arg0, %c0_i32 : i32, i32
  }
}

</mosaic_0001>

<bundles_post_ra>
// kernel: tpu_custom_call.1
= control target key start
LH: loop header
LB: loop body
LE: loop exit
PB: predicated region body
PF: predicated region fallthrough
CT: control target
= control target key end

     0   :  { %s7924_s0 = inlined_call_operand.hbm [shape: bf16[8,896], index: 0, kind: input, shape index: {}]   ;;  %s7925_s1 = inlined_call_operand.hbm [shape: bf16[896,1024], index: 1, kind: input, shape index: {}]   ;;  %s7926_s2 = inlined_call_operand.hbm [shape: f32[1,1024], index: 2, kind: input, shape index: {}]   ;;  %s7927_s3 = inlined_call_operand.hbm [shape: bf16[1024,512], index: 3, kind: input, shape index: {}]   ;;  %s7928_s4 = inlined_call_operand.hbm [shape: f32[1,512], index: 4, kind: input, shape index: {}]   ;;  %s7929_s5 = inlined_call_operand.hbm [shape: bf16[512,256], index: 5, kind: input, shape index: {}]   ;;  %s7930_s6 = inlined_call_operand.hbm [shape: f32[1,256], index: 6, kind: input, shape index: {}]   ;;  %s7931_s7 = inlined_call_operand.hbm [shape: f32[1,256], index: 7, kind: input, shape index: {}]   ;;  %s7932_s8 = inlined_call_operand.<no memory space> [shape: f32[1,1], index: 8, kind: input, shape index: {}]   ;;  %s7933_s9 = inlined_call_operand.hbm [shape: f32[1,8], index: 9, kind: output, shape index: {}]  }
   0x1   :  { %v14_v0 = vstv %s7932_s8 }
   0x2   :  { %15 = vst [vmem:[#allocation2] sm:$0x1] %v14_v0 }
   0x3   :  { %16 = vsyncpa [#allocation4], 0 }
   0x4   :  { %17 = vsyncpa [#allocation7], 0 }
   0x5   :  { %18 = vsyncpa [#allocation10], 0 }
   0x6   :  { %19 = vsyncpa [#allocation13], 0 }
   0x7   :  { %20 = vsyncpa [#allocation16], 0 }
   0x8   :  { %21 = vsyncpa [#allocation5], 0  ;;  %s7596_s11 = smov [#allocation6]   ;;  %s7386_s15 = scalar_lea.hbm %s7925_s1, 57344 }
   0x9   :  { %s37_s12 = sshll.u32 %s7596_s11, 4  ;;  %p7387_p0 = scmp.ne.s32.totalorder %s7925_s1, %s7386_s15  ;;  %s38_s12 = int_to_ptr.vmem [resolvable:$true] %s37_s12 }
   0xa   :  { %p7390_p1 = scmp.lt.u32.totalorder %s7386_s15, %s7925_s1 }
   0xc   :  { %p7392_p2 = pnand %p7390_p1, %p7387_p0 }
   0xe   :  { %7395 = shalt.err (!%p7392_p2)
}
   0xf   :  { %s7396_s19 = scalar_lea.vmem %s38_s12, 57344  ;;  %p7401_p4 = scmp.lt.s32.totalorder %s38_s12, %s38_s12 }
  0x10   :  { %p7397_p3 = scmp.ne.s32.totalorder %s38_s12, %s7396_s19  ;;  %p7402_p5 = scmp.lt.s32.totalorder %s7396_s19, %s7396_s19 }
  0x12   :  { %p7403_p6 = por %p7402_p5, %p7401_p4 }
  0x14   :  { %p7404_p7 = pnand %p7403_p6, %p7397_p3 }
  0x16   :  { %7407 = shalt.err (!%p7404_p7)
}
  0x17   :  { %s7597_s20 = smov 512   ;;  %s7598_s21 = smov 32  }
  0x18   :  { %43 = dma.hbm_to_vmem [thread:$0]  %s7925_s1, 57344, %s38_s12, [#allocation7], %s7597_s20, %s7597_s20, %s7598_s21  }
  0x19   :  { %s7599_s24 = smov [#allocation9]   ;;  %s7408_s28 = scalar_lea.hbm %s7927_s3, 32768 }
  0x1a   :  { %s59_s25 = sshll.u32 %s7599_s24, 4  ;;  %p7409_p8 = scmp.ne.s32.totalorder %s7927_s3, %s7408_s28  ;;  %s60_s25 = int_to_ptr.vmem [resolvable:$true] %s59_s25 }
  0x1b   :  { %p7412_p9 = scmp.lt.u32.totalorder %s7408_s28, %s7927_s3 }
  0x1d   :  { %p7414_p10 = pnand %p7412_p9, %p7409_p8 }
  0x1f   :  { %7417 = shalt.err (!%p7414_p10)
}
  0x20   :  { %s7418_s13 = scalar_lea.vmem %s60_s25, 32768  ;;  %p7423_p12 = scmp.lt.s32.totalorder %s60_s25, %s60_s25 }
  0x21   :  { %p7419_p11 = scmp.ne.s32.totalorder %s60_s25, %s7418_s13  ;;  %p7424_p13 = scmp.lt.s32.totalorder %s7418_s13, %s7418_s13 }
  0x23   :  { %p7425_p0 = por %p7424_p13, %p7423_p12 }
  0x25   :  { %p7426_p1 = pnand %p7425_p0, %p7419_p11 }
  0x27   :  { %7429 = shalt.err (!%p7426_p1)
}
  0x28   :  { %s7600_s1 = smov 256   ;;  %s7601_s12 = smov 16  }
  0x29   :  { %65 = dma.hbm_to_vmem [thread:$0]  %s7927_s3, 32768, %s60_s25, [#allocation10], %s7600_s1, %s7600_s1, %s7601_s12  }
  0x2a   :  { %s7602_s16 = smov [#allocation12]   ;;  %s7430_s19 = scalar_lea.hbm %s7929_s5, 8192 }
  0x2b   :  { %s81_s17 = sshll.u32 %s7602_s16, 4  ;;  %p7431_p2 = scmp.ne.s32.totalorder %s7929_s5, %s7430_s19  ;;  %s82_s17 = int_to_ptr.vmem [resolvable:$true] %s81_s17 }
  0x2c   :  { %p7434_p3 = scmp.lt.u32.totalorder %s7430_s19, %s7929_s5 }
  0x2e   :  { %p7436_p4 = pnand %p7434_p3, %p7431_p2 }
  0x30   :  { %7439 = shalt.err (!%p7436_p4)
}
  0x31   :  { %s7440_s24 = scalar_lea.vmem %s82_s17, 8192  ;;  %p7445_p6 = scmp.lt.s32.totalorder %s82_s17, %s82_s17 }
  0x32   :  { %p7441_p5 = scmp.ne.s32.totalorder %s82_s17, %s7440_s24  ;;  %p7446_p7 = scmp.lt.s32.totalorder %s7440_s24, %s7440_s24 }
  0x34   :  { %p7447_p8 = por %p7446_p7, %p7445_p6 }
  0x36   :  { %p7448_p9 = pnand %p7447_p8, %p7441_p5 }
  0x38   :  { %7451 = shalt.err (!%p7448_p9)
}
  0x39   :  { %s7603_s3 = smov 128   ;;  %s7604_s25 = smov 8  }
  0x3a   :  { %87 = dma.hbm_to_vmem [thread:$0]  %s7929_s5, 8192, %s82_s17, [#allocation13], %s7603_s3, %s7603_s3, %s7604_s25  }
  0x3b   :  { %s7605_s28 = smov [#allocation3]   ;;  %s7606_s30 = smov [#allocation8]  }
  0x3c   :  { %s28_s29 = sshll.u32 %s7605_s28, 4  ;;  %s50_s10 = sshll.u32 %s7606_s30, 4  ;;  %s29_s29 = int_to_ptr.vmem [resolvable:$true] %s28_s29  ;;  %s51_s10 = int_to_ptr.vmem [resolvable:$true] %s50_s10 }
  0x3d   :  { %s7452_s1 = scalar_lea.hbm %s7924_s0, 448 }
  0x3e   :  { %p7453_p10 = scmp.ne.s32.totalorder %s7924_s0, %s7452_s1  ;;  %p7456_p11 = scmp.lt.u32.totalorder %s7452_s1, %s7924_s0 }
  0x40   :  { %p7458_p12 = pnand %p7456_p11, %p7453_p10 }
  0x42   :  { %7461 = shalt.err (!%p7458_p12)
}
  0x43   :  { %s7462_s5 = scalar_lea.vmem %s29_s29, 448  ;;  %p7467_p0 = scmp.lt.s32.totalorder %s29_s29, %s29_s29 }
  0x44   :  { %p7463_p13 = scmp.ne.s32.totalorder %s29_s29, %s7462_s5  ;;  %p7468_p1 = scmp.lt.s32.totalorder %s7462_s5, %s7462_s5 }
  0x46   :  { %p7469_p2 = por %p7468_p1, %p7467_p0 }
  0x48   :  { %p7470_p3 = pnand %p7469_p2, %p7463_p13 }
  0x4a   :  { %7473 = shalt.err (!%p7470_p3)
}
  0x4b   :  { %31 = dma.hbm_to_vmem [thread:$0]  %s7924_s0, 448, %s29_s29, [#allocation4]  }
  0x4c   :  { %s7474_s20 = scalar_lea.hbm %s7926_s2, 128 }
  0x4d   :  { %p7475_p4 = scmp.ne.s32.totalorder %s7926_s2, %s7474_s20  ;;  %p7478_p5 = scmp.lt.u32.totalorder %s7474_s20, %s7926_s2 }
  0x4f   :  { %p7480_p6 = pnand %p7478_p5, %p7475_p4 }
  0x51   :  { %7483 = shalt.err (!%p7480_p6)
}
  0x52   :  { %s7484_s3 = scalar_lea.vmem %s51_s10, 128  ;;  %p7489_p8 = scmp.lt.s32.totalorder %s51_s10, %s51_s10 }
  0x53   :  { %p7485_p7 = scmp.ne.s32.totalorder %s51_s10, %s7484_s3  ;;  %p7490_p9 = scmp.lt.s32.totalorder %s7484_s3, %s7484_s3 }
  0x55   :  { %p7491_p10 = por %p7490_p9, %p7489_p8 }
  0x57   :  { %p7492_p11 = pnand %p7491_p10, %p7485_p7 }
  0x59   :  { %7495 = shalt.err (!%p7492_p11)
}
  0x5a   :  { %53 = dma.hbm_to_vmem [thread:$0]  %s7926_s2, 128, %s51_s10, [#allocation7]  }
  0x5b   :  { %s7607_s26 = smov [#allocation11]   ;;  %s7608_s28 = smov [#allocation14]  }
  0x5c   :  { %s72_s27 = sshll.u32 %s7607_s26, 4  ;;  %s94_s29 = sshll.u32 %s7608_s28, 4  ;;  %s73_s27 = int_to_ptr.vmem [resolvable:$true] %s72_s27  ;;  %s95_s29 = int_to_ptr.vmem [resolvable:$true] %s94_s29 }
  0x5d   :  { %s7496_s13 = scalar_lea.hbm %s7928_s4, 64 }
  0x5e   :  { %p7497_p12 = scmp.ne.s32.totalorder %s7928_s4, %s7496_s13  ;;  %p7500_p13 = scmp.lt.u32.totalorder %s7496_s13, %s7928_s4 }
  0x60   :  { %p7502_p0 = pnand %p7500_p13, %p7497_p12 }
  0x62   :  { %7505 = shalt.err (!%p7502_p0)
}
  0x63   :  { %s7506_s2 = scalar_lea.vmem %s73_s27, 64  ;;  %p7511_p2 = scmp.lt.s32.totalorder %s73_s27, %s73_s27 }
  0x64   :  { %p7507_p1 = scmp.ne.s32.totalorder %s73_s27, %s7506_s2  ;;  %p7512_p3 = scmp.lt.s32.totalorder %s7506_s2, %s7506_s2 }
  0x66   :  { %p7513_p4 = por %p7512_p3, %p7511_p2 }
  0x68   :  { %p7514_p5 = pnand %p7513_p4, %p7507_p1 }
  0x6a   :  { %7517 = shalt.err (!%p7514_p5)
}
  0x6b   :  { %75 = dma.hbm_to_vmem [thread:$0]  %s7928_s4, 64, %s73_s27, [#allocation10]  }
  0x6c   :  { %s7518_s18 = scalar_lea.hbm %s7930_s6, 32 }
  0x6d   :  { %p7519_p6 = scmp.ne.s32.totalorder %s7930_s6, %s7518_s18  ;;  %p7522_p7 = scmp.lt.u32.totalorder %s7518_s18, %s7930_s6 }
  0x6f   :  { %p7524_p8 = pnand %p7522_p7, %p7519_p6 }
  0x71   :  { %7527 = shalt.err (!%p7524_p8)
}
  0x72   :  { %s7528_s22 = scalar_lea.vmem %s95_s29, 32  ;;  %p7533_p10 = scmp.lt.s32.totalorder %s95_s29, %s95_s29 }
  0x73   :  { %p7529_p9 = scmp.ne.s32.totalorder %s95_s29, %s7528_s22  ;;  %p7534_p11 = scmp.lt.s32.totalorder %s7528_s22, %s7528_s22 }
  0x75   :  { %p7535_p12 = por %p7534_p11, %p7533_p10 }
  0x77   :  { %p7536_p13 = pnand %p7535_p12, %p7529_p9 }
  0x79   :  { %7539 = shalt.err (!%p7536_p13)
}
  0x7a   :  { %97 = dma.hbm_to_vmem [thread:$0]  %s7930_s6, 32, %s95_s29, [#allocation13]  }
  0x7b   :  { %s7609_s24 = smov [#allocation15]   ;;  %s7540_s26 = scalar_lea.hbm %s7931_s7, 32 }
  0x7c   :  { %s104_s3 = sshll.u32 %s7609_s24, 4  ;;  %p7541_p0 = scmp.ne.s32.totalorder %s7931_s7, %s7540_s26  ;;  %s105_s3 = int_to_ptr.vmem [resolvable:$true] %s104_s3 }
  0x7d   :  { %p7544_p1 = scmp.lt.u32.totalorder %s7540_s26, %s7931_s7 }
  0x7f   :  { %p7546_p2 = pnand %p7544_p1, %p7541_p0 }
  0x81   :  { %7549 = shalt.err (!%p7546_p2)
}
  0x82   :  { %s7550_s13 = scalar_lea.vmem %s105_s3, 32  ;;  %p7555_p4 = scmp.lt.s32.totalorder %s105_s3, %s105_s3 }
  0x83   :  { %p7551_p3 = scmp.ne.s32.totalorder %s105_s3, %s7550_s13  ;;  %p7556_p5 = scmp.lt.s32.totalorder %s7550_s13, %s7550_s13 }
  0x85   :  { %p7557_p6 = por %p7556_p5, %p7555_p4 }
  0x87   :  { %p7558_p7 = pnand %p7557_p6, %p7551_p3 }
  0x89   :  { %7561 = shalt.err (!%p7558_p7)
}
  0x8a   :  { %107 = dma.hbm_to_vmem [thread:$0]  %s7931_s7, 32, %s105_s3, [#allocation16]  }
  0x8b   :  { %7584 = dma.done.wait [#allocation4], 448  }
  0x8c   :  { %7585 = vsyncadd [#allocation4], 4294966848 }
  0x8d   :  { %7586 = dma.done.wait [#allocation7], 57472  }
  0x8e   :  { %7587 = vsyncadd [#allocation7], 4294909824 }
  0x8f   :  { %7588 = dma.done.wait [#allocation10], 32832  }
  0x90   :  { %7589 = vsyncadd [#allocation10], 4294934464 }
  0x91   :  { %7590 = dma.done.wait [#allocation13], 8224  }
  0x92   :  { %7591 = vsyncadd [#allocation13], 4294959072 }
  0x93   :  { %7592 = dma.done.wait [#allocation16], 32  }
  0x94   :  { %7593 = vsyncadd [#allocation16], 4294967264  ;;  %v139_v1 = vld [vmem:[#allocation6] sm:$0xff]  ;;  %v7763_v55 = vld [vmem:[#allocation3 + $0x8] sm:$0xff]  ;;  %s7611_s1 = smov [#allocation17]   ;;  %vm5989_vm0 = vcmask 57344  }
  0x95   :  { %v143_v2 = vld [vmem:[#allocation6 + $0x20] sm:$0xff]  ;;  %v7771_v62 = vcombine.high %v7763_v55, %v7763_v55  ;;  %s5997_s12 = sshll.u32 %s7611_s1, 4  ;;  %s5998_s12 = int_to_ptr.vmem [resolvable:$true] %s5997_s12 }
  0x96   :  { %v267_v3 = vld [vmem:[#allocation6 + $0x400] sm:$0xff]  ;;  %v6018_v4 = vcombine.high %v139_v1, %v143_v2  ;;  %v6017_v6 = vcombine.low %v139_v1, %v143_v2  ;;  %s7562_s14 = scalar_lea.vmem %s5998_s12, 16  ;;  %s7566_s15 = scalar_lea.vmem %s5998_s12, 32 }
  0x97   :  { %v271_v5 = vld [vmem:[#allocation6 + $0x420] sm:$0xff]  ;;  %2967 = vmatprep.mubr.bf16.mxu0 %v7771_v62  ;;  %p7563_p8 = scmp.ne.s32.totalorder %s5998_s12, %s7562_s14  ;;  %p7567_p9 = scmp.lt.s32.totalorder %s5998_s12, %s5998_s12 }
  0x98   :  { %v147_v7 = vld [vmem:[#allocation6 + $0x40] sm:$0xff]  ;;  %v6146_v9 = vcombine.high %v267_v3, %v271_v5  ;;  %v6145_v10 = vcombine.low %v267_v3, %v271_v5  ;;  %2894 = vmatprep.subr.bf16.mxu1 %v6018_v4  ;;  %p7568_p10 = scmp.lt.s32.totalorder %s7566_s15, %s7562_s14 }
  0x99   :  { %v151_v8 = vld [vmem:[#allocation6 + $0x60] sm:$0xff]  ;;  %2895 = vmatpush1.bf16.msra.mxu1 %v6017_v6 }
  0x9a   :  { %v6026_v11 = vcombine.high %v147_v7, %v151_v8  ;;  %v275_v12 = vld [vmem:[#allocation6 + $0x440] sm:$0xff]  ;;  %2935 = vmatprep.subr.bf16.mxu0 %v6146_v9  ;;  %v6025_v19 = vcombine.low %v147_v7, %v151_v8  ;;  %p7569_p11 = por %p7568_p10, %p7567_p9 }
  0x9b   :  { %v279_v13 = vld [vmem:[#allocation6 + $0x460] sm:$0xff]  ;;  %2936 = vmatpush1.bf16.msra.mxu0 %v6145_v10 }
  0x9c   :  { %v155_v14 = vld [vmem:[#allocation6 + $0x80] sm:$0xff]  ;;  %v6154_v15 = vcombine.high %v275_v12, %v279_v13  ;;  %2896 = vmatprep.subr.bf16.mxu1 %v6026_v11  ;;  %v6153_v20 = vcombine.low %v275_v12, %v279_v13  ;;  %p7570_p12 = pnand %p7569_p11, %p7563_p8 }
  0x9d   :  { %v159_v16 = vld [vmem:[#allocation6 + $0xa0] sm:$0xff]  ;;  %2897 = vmatpush1.bf16.msra.mxu1 %v6025_v19 }
  0x9e   :  { %v283_v17 = vld [vmem:[#allocation6 + $0x480] sm:$0xff]  ;;  %v6034_v21 = vcombine.high %v155_v14, %v159_v16  ;;  %2937 = vmatprep.subr.bf16.mxu0 %v6154_v15  ;;  %v6033_v27 = vcombine.low %v155_v14, %v159_v16 }
  0x9f   :  { %v287_v18 = vld [vmem:[#allocation6 + $0x4a0] sm:$0xff]  ;;  %2938 = vmatpush1.bf16.msra.mxu0 %v6153_v20 }
  0xa0   :  { %v6162_v22 = vcombine.high %v283_v17, %v287_v18  ;;  %v163_v23 = vld [vmem:[#allocation6 + $0xc0] sm:$0xff]  ;;  %2898 = vmatprep.subr.bf16.mxu1 %v6034_v21  ;;  %v6161_v28 = vcombine.low %v283_v17, %v287_v18 }
  0xa1   :  { %v167_v24 = vld [vmem:[#allocation6 + $0xe0] sm:$0xff]  ;;  %2899 = vmatpush1.bf16.msra.mxu1 %v6033_v27 }
  0xa2   :  { %v291_v25 = vld [vmem:[#allocation6 + $0x4c0] sm:$0xff]  ;;  %v6042_v29 = vcombine.high %v163_v23, %v167_v24  ;;  %2939 = vmatprep.subr.bf16.mxu0 %v6162_v22  ;;  %v6041_v35 = vcombine.low %v163_v23, %v167_v24 }
  0xa3   :  { %v295_v26 = vld [vmem:[#allocation6 + $0x4e0] sm:$0xff]  ;;  %2940 = vmatpush1.bf16.msra.mxu0 %v6161_v28 }
  0xa4   :  { %v6170_v30 = vcombine.high %v291_v25, %v295_v26  ;;  %v171_v31 = vld [vmem:[#allocation6 + $0x100] sm:$0xff]  ;;  %2900 = vmatprep.subr.bf16.mxu1 %v6042_v29  ;;  %v6169_v36 = vcombine.low %v291_v25, %v295_v26 }
  0xa5   :  { %v175_v32 = vld [vmem:[#allocation6 + $0x120] sm:$0xff]  ;;  %2901 = vmatpush1.bf16.msra.mxu1 %v6041_v35 }
  0xa6   :  { %v299_v33 = vld [vmem:[#allocation6 + $0x500] sm:$0xff]  ;;  %v6050_v37 = vcombine.high %v171_v31, %v175_v32  ;;  %2941 = vmatprep.subr.bf16.mxu0 %v6170_v30  ;;  %v6049_v43 = vcombine.low %v171_v31, %v175_v32 }
  0xa7   :  { %v303_v34 = vld [vmem:[#allocation6 + $0x520] sm:$0xff]  ;;  %2942 = vmatpush1.bf16.msra.mxu0 %v6169_v36 }
  0xa8   :  { %v6178_v38 = vcombine.high %v299_v33, %v303_v34  ;;  %v179_v39 = vld [vmem:[#allocation6 + $0x140] sm:$0xff]  ;;  %2902 = vmatprep.subr.bf16.mxu1 %v6050_v37  ;;  %v6177_v44 = vcombine.low %v299_v33, %v303_v34 }
  0xa9   :  { %v183_v40 = vld [vmem:[#allocation6 + $0x160] sm:$0xff]  ;;  %2903 = vmatpush1.bf16.msra.mxu1 %v6049_v43 }
  0xaa   :  { %v307_v41 = vld [vmem:[#allocation6 + $0x540] sm:$0xff]  ;;  %v6058_v45 = vcombine.high %v179_v39, %v183_v40  ;;  %2943 = vmatprep.subr.bf16.mxu0 %v6178_v38  ;;  %v6057_v51 = vcombine.low %v179_v39, %v183_v40 }
  0xab   :  { %v311_v42 = vld [vmem:[#allocation6 + $0x560] sm:$0xff]  ;;  %2944 = vmatpush1.bf16.msra.mxu0 %v6177_v44 }
  0xac   :  { %v6186_v46 = vcombine.high %v307_v41, %v311_v42  ;;  %v187_v47 = vld [vmem:[#allocation6 + $0x180] sm:$0xff]  ;;  %2904 = vmatprep.subr.bf16.mxu1 %v6058_v45  ;;  %v6185_v52 = vcombine.low %v307_v41, %v311_v42 }
  0xad   :  { %v191_v48 = vld [vmem:[#allocation6 + $0x1a0] sm:$0xff]  ;;  %2905 = vmatpush1.bf16.msra.mxu1 %v6057_v51 }
  0xae   :  { %v315_v49 = vld [vmem:[#allocation6 + $0x580] sm:$0xff]  ;;  %v6066_v53 = vcombine.high %v187_v47, %v191_v48  ;;  %2945 = vmatprep.subr.bf16.mxu0 %v6186_v46  ;;  %v6065_v63 = vcombine.low %v187_v47, %v191_v48 }
  0xaf   :  { %v319_v50 = vld [vmem:[#allocation6 + $0x5a0] sm:$0xff]  ;;  %2946 = vmatpush1.bf16.msra.mxu0 %v6185_v52 }
  0xb0   :  { %v7761_v54 = vld [vmem:[#allocation3] sm:$0xff]  ;;  %v6194_v56 = vcombine.high %v315_v49, %v319_v50  ;;  %2906 = vmatprep.subr.bf16.mxu1 %v6066_v53  ;;  %v6193_v0 = vcombine.low %v315_v49, %v319_v50 }
  0xb1   :  { %v195_v57 = vld [vmem:[#allocation6 + $0x1c0] sm:$0xff]  ;;  %v7767_v59 = vcombine.high %v7761_v54, %v7761_v54  ;;  %2907 = vmatpush1.bf16.msra.mxu1 %v6065_v63 }
  0xb2   :  { %v199_v58 = vld [vmem:[#allocation6 + $0x1e0] sm:$0xff]  ;;  %2947 = vmatprep.subr.bf16.mxu0 %v6194_v56 }
  0xb3   :  { %v323_v60 = vld [vmem:[#allocation6 + $0x5c0] sm:$0xff]  ;;  %2926 = vmatprep.mubr.bf16.mxu1 %v7767_v59  ;;  %v6074_v1 = vcombine.high %v195_v57, %v199_v58  ;;  %v6073_v7 = vcombine.low %v195_v57, %v199_v58  ;;  %2948 = vmatpush1.bf16.msra.mxu0 %v6193_v0 }
  0xb4   :  { %v327_v61 = vld [vmem:[#allocation6 + $0x5e0] sm:$0xff] }
  0xb5   :  { %v6202_v2 = vcombine.high %v323_v60, %v327_v61  ;;  %v203_v3 = vld [vmem:[#allocation6 + $0x200] sm:$0xff]  ;;  %2908 = vmatprep.subr.bf16.mxu1 %v6074_v1  ;;  %v6201_v8 = vcombine.low %v323_v60, %v327_v61 }
  0xb6   :  { %v207_v4 = vld [vmem:[#allocation6 + $0x220] sm:$0xff]  ;;  %2909 = vmatpush1.bf16.msra.mxu1 %v6073_v7  ;;  %v140_v7 = vld [vmem:[#allocation6 + $0x8] sm:$0xff] }
  0xb7   :  { %v331_v5 = vld [vmem:[#allocation6 + $0x600] sm:$0xff]  ;;  %v6082_v9 = vcombine.high %v203_v3, %v207_v4  ;;  %2949 = vmatprep.subr.bf16.mxu0 %v6202_v2  ;;  %v6081_v15 = vcombine.low %v203_v3, %v207_v4 }
  0xb8   :  { %v335_v6 = vld [vmem:[#allocation6 + $0x620] sm:$0xff]  ;;  %2950 = vmatpush1.bf16.msra.mxu0 %v6201_v8  ;;  %v144_v8 = vld [vmem:[#allocation6 + $0x28] sm:$0xff] }
  0xb9   :  { %v6210_v10 = vcombine.high %v331_v5, %v335_v6  ;;  %v211_v11 = vld [vmem:[#allocation6 + $0x240] sm:$0xff]  ;;  %2910 = vmatprep.subr.bf16.mxu1 %v6082_v9  ;;  %v6209_v16 = vcombine.low %v331_v5, %v335_v6 }
  0xba   :  { %v215_v12 = vld [vmem:[#allocation6 + $0x260] sm:$0xff]  ;;  %2911 = vmatpush1.bf16.msra.mxu1 %v6081_v15  ;;  %v148_v15 = vld [vmem:[#allocation6 + $0x48] sm:$0xff] }
  0xbb   :  { %v339_v13 = vld [vmem:[#allocation6 + $0x640] sm:$0xff]  ;;  %v6090_v17 = vcombine.high %v211_v11, %v215_v12  ;;  %2951 = vmatprep.subr.bf16.mxu0 %v6210_v10  ;;  %v6089_v23 = vcombine.low %v211_v11, %v215_v12 }
  0xbc   :  { %v343_v14 = vld [vmem:[#allocation6 + $0x660] sm:$0xff]  ;;  %2952 = vmatpush1.bf16.msra.mxu0 %v6209_v16  ;;  %v152_v16 = vld [vmem:[#allocation6 + $0x68] sm:$0xff] }
  0xbd   :  { %v6218_v18 = vcombine.high %v339_v13, %v343_v14  ;;  %v219_v19 = vld [vmem:[#allocation6 + $0x280] sm:$0xff]  ;;  %2912 = vmatprep.subr.bf16.mxu1 %v6090_v17  ;;  %v6217_v24 = vcombine.low %v339_v13, %v343_v14  ;;  %v6020_v13 = vcombine.high %v140_v7, %v144_v8  ;;  %v7777_v17 = vcombine.low %v7761_v54, %v7761_v54  ;;  %v156_v54 = vld [vmem:[#allocation6 + $0x88] sm:$0xff] }
  0xbe   :  { %v223_v20 = vld [vmem:[#allocation6 + $0x2a0] sm:$0xff]  ;;  %2913 = vmatpush1.bf16.msra.mxu1 %v6089_v23 }
  0xbf   :  { %v347_v21 = vld [vmem:[#allocation6 + $0x680] sm:$0xff]  ;;  %v6098_v25 = vcombine.high %v219_v19, %v223_v20  ;;  %2953 = vmatprep.subr.bf16.mxu0 %v6218_v18  ;;  %v6097_v31 = vcombine.low %v219_v19, %v223_v20  ;;  %v7779_v20 = vld [vmem:[#allocation3 + $0x10] sm:$0xff] }
  0xc0   :  { %v351_v22 = vld [vmem:[#allocation6 + $0x6a0] sm:$0xff]  ;;  %2954 = vmatpush1.bf16.msra.mxu0 %v6217_v24  ;;  %v6028_v24 = vcombine.high %v148_v15, %v152_v16 }
  0xc1   :  { %v6226_v26 = vcombine.high %v347_v21, %v351_v22  ;;  %v227_v27 = vld [vmem:[#allocation6 + $0x2c0] sm:$0xff]  ;;  %2914 = vmatprep.subr.bf16.mxu1 %v6098_v25  ;;  %v6225_v32 = vcombine.low %v347_v21, %v351_v22  ;;  %v6019_v21 = vcombine.low %v140_v7, %v144_v8  ;;  %v7783_v22 = vcombine.low %v7763_v55, %v7763_v55  ;;  %v200_v8 = vld [vmem:[#allocation6 + $0x1e8] sm:$0xff] }
  0xc2   :  { %v231_v28 = vld [vmem:[#allocation6 + $0x2e0] sm:$0xff]  ;;  %2915 = vmatpush1.bf16.msra.mxu1 %v6097_v31  ;;  %v6027_v55 = vcombine.low %v148_v15, %v152_v16  ;;  %v208_v16 = vld [vmem:[#allocation6 + $0x228] sm:$0xff] }
  0xc3   :  { %v355_v29 = vld [vmem:[#allocation6 + $0x6c0] sm:$0xff]  ;;  %v6106_v33 = vcombine.high %v227_v27, %v231_v28  ;;  %2955 = vmatprep.subr.bf16.mxu0 %v6226_v26  ;;  %v6105_v39 = vcombine.low %v227_v27, %v231_v28  ;;  %v160_v28 = vld [vmem:[#allocation6 + $0xa8] sm:$0xff] }
  0xc4   :  { %v359_v30 = vld [vmem:[#allocation6 + $0x6e0] sm:$0xff]  ;;  %2956 = vmatpush1.bf16.msra.mxu0 %v6225_v32  ;;  %v6036_v31 = vcombine.high %v156_v54, %v160_v28 }
  0xc5   :  { %v6234_v34 = vcombine.high %v355_v29, %v359_v30  ;;  %v235_v35 = vld [vmem:[#allocation6 + $0x300] sm:$0xff]  ;;  %2916 = vmatprep.subr.bf16.mxu1 %v6106_v33  ;;  %v6233_v40 = vcombine.low %v355_v29, %v359_v30  ;;  %v7787_v29 = vcombine.high %v7779_v20, %v7779_v20 }
  0xc6   :  { %v239_v36 = vld [vmem:[#allocation6 + $0x320] sm:$0xff]  ;;  %2917 = vmatpush1.bf16.msra.mxu1 %v6105_v39 }
  0xc7   :  { %v363_v37 = vld [vmem:[#allocation6 + $0x700] sm:$0xff]  ;;  %v6114_v41 = vcombine.high %v235_v35, %v239_v36  ;;  %2957 = vmatprep.subr.bf16.mxu0 %v6234_v34  ;;  %v6113_v47 = vcombine.low %v235_v35, %v239_v36  ;;  %v164_v34 = vld [vmem:[#allocation6 + $0xc8] sm:$0xff] }
  0xc8   :  { %v367_v38 = vld [vmem:[#allocation6 + $0x720] sm:$0xff]  ;;  %2958 = vmatpush1.bf16.msra.mxu0 %v6233_v40  ;;  %v168_v36 = vld [vmem:[#allocation6 + $0xe8] sm:$0xff] }
  0xc9   :  { %v6242_v42 = vcombine.high %v363_v37, %v367_v38  ;;  %v243_v43 = vld [vmem:[#allocation6 + $0x340] sm:$0xff]  ;;  %2918 = vmatprep.subr.bf16.mxu1 %v6114_v41  ;;  %v6241_v48 = vcombine.low %v363_v37, %v367_v38  ;;  %v6035_v37 = vcombine.low %v156_v54, %v160_v28  ;;  %v6044_v39 = vcombine.high %v164_v34, %v168_v36 }
  0xca   :  { %v247_v44 = vld [vmem:[#allocation6 + $0x360] sm:$0xff]  ;;  %2919 = vmatpush1.bf16.msra.mxu1 %v6113_v47 }
  0xcb   :  { %v371_v45 = vld [vmem:[#allocation6 + $0x740] sm:$0xff]  ;;  %v6122_v49 = vcombine.high %v243_v43, %v247_v44  ;;  %2959 = vmatprep.subr.bf16.mxu0 %v6242_v42  ;;  %v6121_v57 = vcombine.low %v243_v43, %v247_v44  ;;  %v172_v42 = vld [vmem:[#allocation6 + $0x108] sm:$0xff] }
  0xcc   :  { %v375_v46 = vld [vmem:[#allocation6 + $0x760] sm:$0xff]  ;;  %2960 = vmatpush1.bf16.msra.mxu0 %v6241_v48  ;;  %v176_v44 = vld [vmem:[#allocation6 + $0x128] sm:$0xff] }
  0xcd   :  { %v6250_v50 = vcombine.high %v371_v45, %v375_v46  ;;  %v251_v51 = vld [vmem:[#allocation6 + $0x380] sm:$0xff]  ;;  %2920 = vmatprep.subr.bf16.mxu1 %v6122_v49  ;;  %v6249_v58 = vcombine.low %v371_v45, %v375_v46  ;;  %v6043_v45 = vcombine.low %v164_v34, %v168_v36  ;;  %v6052_v47 = vcombine.high %v172_v42, %v176_v44  ;;  %v224_v34 = vld [vmem:[#allocation6 + $0x2a8] sm:$0xff] }
  0xce   :  { %v255_v52 = vld [vmem:[#allocation6 + $0x3a0] sm:$0xff]  ;;  %2921 = vmatpush1.bf16.msra.mxu1 %v6121_v57 }
  0xcf   :  { %v379_v53 = vld [vmem:[#allocation6 + $0x780] sm:$0xff]  ;;  %v6130_v60 = vcombine.high %v251_v51, %v255_v52  ;;  %2961 = vmatprep.subr.bf16.mxu0 %v6250_v50  ;;  %v6129_v3 = vcombine.low %v251_v51, %v255_v52  ;;  %v180_v50 = vld [vmem:[#allocation6 + $0x148] sm:$0xff] }
  0xd0   :  { %v383_v56 = vld [vmem:[#allocation6 + $0x7a0] sm:$0xff]  ;;  %2962 = vmatpush1.bf16.msra.mxu0 %v6249_v58  ;;  %v184_v52 = vld [vmem:[#allocation6 + $0x168] sm:$0xff] }
  0xd1   :  { %v6258_v61 = vcombine.high %v379_v53, %v383_v56  ;;  %v259_v63 = vld [vmem:[#allocation6 + $0x3c0] sm:$0xff]  ;;  %2922 = vmatprep.subr.bf16.mxu1 %v6130_v60  ;;  %v6257_v4 = vcombine.low %v379_v53, %v383_v56  ;;  %v6051_v53 = vcombine.low %v172_v42, %v176_v44  ;;  %v6060_v57 = vcombine.high %v180_v50, %v184_v52  ;;  %v232_v42 = vld [vmem:[#allocation6 + $0x2e8] sm:$0xff] }
  0xd2   :  { %v263_v0 = vld [vmem:[#allocation6 + $0x3e0] sm:$0xff]  ;;  %2923 = vmatpush1.bf16.msra.mxu1 %v6129_v3 }
  0xd3   :  { %v387_v1 = vld [vmem:[#allocation6 + $0x7c0] sm:$0xff]  ;;  %v6138_v5 = vcombine.high %v259_v63, %v263_v0  ;;  %2963 = vmatprep.subr.bf16.mxu0 %v6258_v61  ;;  %v6137_v11 = vcombine.low %v259_v63, %v263_v0  ;;  %v188_v61 = vld [vmem:[#allocation6 + $0x188] sm:$0xff] }
  0xd4   :  { %v391_v2 = vld [vmem:[#allocation6 + $0x7e0] sm:$0xff]  ;;  %2964 = vmatpush1.bf16.msra.mxu0 %v6257_v4  ;;  %v192_v0 = vld [vmem:[#allocation6 + $0x1a8] sm:$0xff] }
  0xd5   :  { %v6266_v6 = vcombine.high %v387_v1, %v391_v2  ;;  %v395_v9 = vld [vmem:[#allocation6 + $0x800] sm:$0xff]  ;;  %2924 = vmatprep.subr.bf16.mxu1 %v6138_v5  ;;  %v6265_v12 = vcombine.low %v387_v1, %v391_v2  ;;  %v6059_v1 = vcombine.low %v180_v50, %v184_v52  ;;  %v6068_v3 = vcombine.high %v188_v61, %v192_v0  ;;  %v240_v50 = vld [vmem:[#allocation6 + $0x328] sm:$0xff] }
  0xd6   :  { %v399_v10 = vld [vmem:[#allocation6 + $0x820] sm:$0xff]  ;;  %2925 = vmatpush1.bf16.msra.mxu1 %v6137_v11 }
  0xd7   :  { %2965 = vmatprep.subr.bf16.mxu0 %v6266_v6  ;;  %v6274_v14 = vcombine.high %v395_v9, %v399_v10  ;;  %v403_v18 = vld [vmem:[#allocation6 + $0x840] sm:$0xff]  ;;  %v6273_v23 = vcombine.low %v395_v9, %v399_v10  ;;  %3058 = vmatprep.subr.bf16.mxu1 %v6020_v13  ;;  %v196_v6 = vld [vmem:[#allocation6 + $0x1c8] sm:$0xff]  ;;  %v6067_v9 = vcombine.low %v188_v61, %v192_v0 }
  0xd8   :  { %v407_v19 = vld [vmem:[#allocation6 + $0x860] sm:$0xff]  ;;  %2966 = vmatpush1.bf16.msra.mxu0 %v6265_v12  ;;  %v6076_v11 = vcombine.high %v196_v6, %v200_v8  ;;  %v248_v61 = vld [vmem:[#allocation6 + $0x368] sm:$0xff] }
  0xd9   :  { %v411_v25 = vld [vmem:[#allocation6 + $0x880] sm:$0xff]  ;;  %2976 = vmatprep.subr.bf16.mxu0 %v6274_v14  ;;  %v6282_v26 = vcombine.high %v403_v18, %v407_v19  ;;  %2927 = vmatmul.mubr.bf16.vlgmr.msra.gmra.mrb[0].mxu1 %v7777_v17  ;;  %v6281_v30 = vcombine.low %v403_v18, %v407_v19  ;;  %v204_v14 = vld [vmem:[#allocation6 + $0x208] sm:$0xff]  ;;  %v6075_v18 = vcombine.low %v196_v6, %v200_v8 }
  0xda   :  { %v415_v27 = vld [vmem:[#allocation6 + $0x8a0] sm:$0xff]  ;;  %3059 = vmatpush1.bf16.msra.mxu1 %v6019_v21  ;;  %3090 = vmatprep.mubr.bf16.mxu1 %v7767_v59  ;;  %v6084_v21 = vcombine.high %v204_v14, %v208_v16  ;;  %v6083_v54 = vcombine.low %v204_v14, %v208_v16  ;;  %v256_v6 = vld [vmem:[#allocation6 + $0x3a8] sm:$0xff] }
  0xdb   :  { %2968 = vmatmul.mubr.bf16.vlgmr.msra.gmra.mrb[0].mxu0 %v7783_v22  ;;  %3060 = vmatprep.subr.bf16.mxu1 %v6028_v24  ;;  %v419_v32 = vld [vmem:[#allocation6 + $0x8c0] sm:$0xff]  ;;  %v6290_v35 = vcombine.high %v411_v25, %v415_v27  ;;  %v6289_v38 = vcombine.low %v411_v25, %v415_v27  ;;  %v212_v25 = vld [vmem:[#allocation6 + $0x248] sm:$0xff] }
  0xdc   :  { %2977 = vmatpush1.bf16.msra.mxu0 %v6273_v23  ;;  %v423_v33 = vld [vmem:[#allocation6 + $0x8e0] sm:$0xff]  ;;  %3008 = vmatprep.mubr.bf16.mxu0 %v7787_v29  ;;  %v216_v27 = vld [vmem:[#allocation6 + $0x268] sm:$0xff] }
  0xdd   :  { %2978 = vmatprep.subr.bf16.mxu0 %v6282_v26  ;;  %v427_v40 = vld [vmem:[#allocation6 + $0x900] sm:$0xff]  ;;  %v6298_v43 = vcombine.high %v419_v32, %v423_v33  ;;  %v6297_v46 = vcombine.low %v419_v32, %v423_v33  ;;  %v220_v32 = vld [vmem:[#allocation6 + $0x288] sm:$0xff] }
  0xde   :  { %3061 = vmatpush1.bf16.msra.mxu1 %v6027_v55  ;;  %v431_v41 = vld [vmem:[#allocation6 + $0x920] sm:$0xff]  ;;  %v6092_v55 = vcombine.high %v212_v25, %v216_v27  ;;  %v264_v14 = vld [vmem:[#allocation6 + $0x3e8] sm:$0xff] }
  0xdf   :  { %3062 = vmatprep.subr.bf16.mxu1 %v6036_v31  ;;  %v435_v48 = vld [vmem:[#allocation6 + $0x940] sm:$0xff]  ;;  %v6306_v51 = vcombine.high %v427_v40, %v431_v41  ;;  %v6305_v56 = vcombine.low %v427_v40, %v431_v41  ;;  %v228_v40 = vld [vmem:[#allocation6 + $0x2c8] sm:$0xff] }
  0xe0   :  { %2979 = vmatpush1.bf16.msra.mxu0 %v6281_v30  ;;  %v439_v49 = vld [vmem:[#allocation6 + $0x960] sm:$0xff] }
  0xe1   :  { %2980 = vmatprep.subr.bf16.mxu0 %v6290_v35  ;;  %v443_v58 = vld [vmem:[#allocation6 + $0x980] sm:$0xff]  ;;  %v6314_v63 = vcombine.high %v435_v48, %v439_v49  ;;  %v6313_v2 = vcombine.low %v435_v48, %v439_v49  ;;  %v6091_v35 = vcombine.low %v212_v25, %v216_v27  ;;  %v236_v48 = vld [vmem:[#allocation6 + $0x308] sm:$0xff] }
  0xe2   :  { %3063 = vmatpush1.bf16.msra.mxu1 %v6035_v37  ;;  %v447_v60 = vld [vmem:[#allocation6 + $0x9a0] sm:$0xff]  ;;  %v6100_v37 = vcombine.high %v220_v32, %v224_v34  ;;  %v272_v25 = vld [vmem:[#allocation6 + $0x428] sm:$0xff] }
  0xe3   :  { %3064 = vmatprep.subr.bf16.mxu1 %v6044_v39  ;;  %v451_v4 = vld [vmem:[#allocation6 + $0x9c0] sm:$0xff]  ;;  %v6322_v7 = vcombine.high %v443_v58, %v447_v60  ;;  %v6321_v10 = vcombine.low %v443_v58, %v447_v60  ;;  %v244_v58 = vld [vmem:[#allocation6 + $0x348] sm:$0xff] }
  0xe4   :  { %2981 = vmatpush1.bf16.msra.mxu0 %v6289_v38  ;;  %v455_v5 = vld [vmem:[#allocation6 + $0x9e0] sm:$0xff] }
  0xe5   :  { %2982 = vmatprep.subr.bf16.mxu0 %v6298_v43  ;;  %v459_v12 = vld [vmem:[#allocation6 + $0xa00] sm:$0xff]  ;;  %v6330_v15 = vcombine.high %v451_v4, %v455_v5  ;;  %v6329_v19 = vcombine.low %v451_v4, %v455_v5  ;;  %v6099_v43 = vcombine.low %v220_v32, %v224_v34  ;;  %v252_v4 = vld [vmem:[#allocation6 + $0x388] sm:$0xff]  ;;  %v7795_v34 = vcombine.low %v7779_v20, %v7779_v20 }
  0xe6   :  { %3065 = vmatpush1.bf16.msra.mxu1 %v6043_v45  ;;  %v463_v13 = vld [vmem:[#allocation6 + $0xa20] sm:$0xff]  ;;  %v6108_v45 = vcombine.high %v228_v40, %v232_v42  ;;  %v280_v32 = vld [vmem:[#allocation6 + $0x468] sm:$0xff] }
  0xe7   :  { %3066 = vmatprep.subr.bf16.mxu1 %v6052_v47  ;;  %v467_v23 = vld [vmem:[#allocation6 + $0xa40] sm:$0xff]  ;;  %v6338_v26 = vcombine.high %v459_v12, %v463_v13  ;;  %v6337_v28 = vcombine.low %v459_v12, %v463_v13  ;;  %v260_v12 = vld [vmem:[#allocation6 + $0x3c8] sm:$0xff] }
  0xe8   :  { %2983 = vmatpush1.bf16.msra.mxu0 %v6297_v46  ;;  %v471_v24 = vld [vmem:[#allocation6 + $0xa60] sm:$0xff] }
  0xe9   :  { %2984 = vmatprep.subr.bf16.mxu0 %v6306_v51  ;;  %v475_v30 = vld [vmem:[#allocation6 + $0xa80] sm:$0xff]  ;;  %v6346_v33 = vcombine.high %v467_v23, %v471_v24  ;;  %v6345_v36 = vcombine.low %v467_v23, %v471_v24  ;;  %v6107_v51 = vcombine.low %v228_v40, %v232_v42  ;;  %v268_v23 = vld [vmem:[#allocation6 + $0x408] sm:$0xff] }
  0xea   :  { %3067 = vmatpush1.bf16.msra.mxu1 %v6051_v53  ;;  %v479_v31 = vld [vmem:[#allocation6 + $0xaa0] sm:$0xff]  ;;  %v6116_v53 = vcombine.high %v236_v48, %v240_v50 }
  0xeb   :  { %3068 = vmatprep.subr.bf16.mxu1 %v6060_v57  ;;  %v483_v38 = vld [vmem:[#allocation6 + $0xac0] sm:$0xff]  ;;  %v6354_v41 = vcombine.high %v475_v30, %v479_v31  ;;  %v6353_v44 = vcombine.low %v475_v30, %v479_v31  ;;  %v276_v30 = vld [vmem:[#allocation6 + $0x448] sm:$0xff] }
  0xec   :  { %2985 = vmatpush1.bf16.msra.mxu0 %v6305_v56  ;;  %v487_v39 = vld [vmem:[#allocation6 + $0xae0] sm:$0xff]  ;;  %v6155_v42 = vcombine.low %v276_v30, %v280_v32 }
  0xed   :  { %2986 = vmatprep.subr.bf16.mxu0 %v6314_v63  ;;  %v491_v46 = vld [vmem:[#allocation6 + $0xb00] sm:$0xff]  ;;  %v6362_v49 = vcombine.high %v483_v38, %v487_v39  ;;  %v6361_v52 = vcombine.low %v483_v38, %v487_v39  ;;  %v6115_v63 = vcombine.low %v236_v48, %v240_v50  ;;  %v284_v39 = vld [vmem:[#allocation6 + $0x488] sm:$0xff] }
  0xee   :  { %3069 = vmatpush1.bf16.msra.mxu1 %v6059_v1  ;;  %v495_v47 = vld [vmem:[#allocation6 + $0xb20] sm:$0xff]  ;;  %v6124_v1 = vcombine.high %v244_v58, %v248_v61  ;;  %v296_v48 = vld [vmem:[#allocation6 + $0x4e8] sm:$0xff] }
  0xef   :  { %3070 = vmatprep.subr.bf16.mxu1 %v6068_v3  ;;  %v499_v56 = vld [vmem:[#allocation6 + $0xb40] sm:$0xff]  ;;  %v6370_v60 = vcombine.high %v491_v46, %v495_v47  ;;  %v6369_v0 = vcombine.low %v491_v46, %v495_v47  ;;  %v292_v46 = vld [vmem:[#allocation6 + $0x4c8] sm:$0xff] }
  0xf0   :  { %2987 = vmatpush1.bf16.msra.mxu0 %v6313_v2  ;;  %v503_v57 = vld [vmem:[#allocation6 + $0xb60] sm:$0xff] }
  0xf1   :  { %2988 = vmatprep.subr.bf16.mxu0 %v6322_v7  ;;  %v507_v2 = vld [vmem:[#allocation6 + $0xb80] sm:$0xff]  ;;  %v6378_v5 = vcombine.high %v499_v56, %v503_v57  ;;  %v6123_v7 = vcombine.low %v244_v58, %v248_v61  ;;  %v6377_v8 = vcombine.low %v499_v56, %v503_v57  ;;  %v300_v57 = vld [vmem:[#allocation6 + $0x508] sm:$0xff]  ;;  %v6171_v61 = vcombine.low %v292_v46, %v296_v48 }
  0xf2   :  { %3071 = vmatpush1.bf16.msra.mxu1 %v6067_v9  ;;  %v511_v3 = vld [vmem:[#allocation6 + $0xba0] sm:$0xff]  ;;  %v6132_v9 = vcombine.high %v252_v4, %v256_v6 }
  0xf3   :  { %3072 = vmatprep.subr.bf16.mxu1 %v6076_v11  ;;  %v519_v11 = vld [vmem:[#allocation6 + $0xbe0] sm:$0xff]  ;;  %v6386_v13 = vcombine.high %v507_v2, %v511_v3  ;;  %v6385_v16 = vcombine.low %v507_v2, %v511_v3  ;;  %v308_v3 = vld [vmem:[#allocation6 + $0x548] sm:$0xff] }
  0xf4   :  { %2989 = vmatpush1.bf16.msra.mxu0 %v6321_v10  ;;  %v515_v10 = vld [vmem:[#allocation6 + $0xbc0] sm:$0xff] }
  0xf5   :  { %2990 = vmatprep.subr.bf16.mxu0 %v6330_v15  ;;  %v6131_v15 = vcombine.low %v252_v4, %v256_v6  ;;  %v6394_v24 = vcombine.high %v515_v10, %v519_v11  ;;  %v6393_v27 = vcombine.low %v515_v10, %v519_v11  ;;  %v543_v38 = vld [vmem:[#allocation6 + $0xca0] sm:$0xff]  ;;  %v316_v11 = vld [vmem:[#allocation6 + $0x588] sm:$0xff] }
  0xf6   :  { %3073 = vmatpush1.bf16.msra.mxu1 %v6075_v18  ;;  %v6140_v18 = vcombine.high %v260_v12, %v264_v14  ;;  %v559_v56 = vld [vmem:[#allocation6 + $0xd20] sm:$0xff] }
  0xf7   :  { %3074 = vmatprep.subr.bf16.mxu1 %v6084_v21  ;;  %v527_v21 = vld [vmem:[#allocation6 + $0xc20] sm:$0xff] }
  0xf8   :  { %2991 = vmatpush1.bf16.msra.mxu0 %v6329_v19  ;;  %v523_v19 = vld [vmem:[#allocation6 + $0xc00] sm:$0xff] }
  0xf9   :  { %2992 = vmatprep.subr.bf16.mxu0 %v6338_v26  ;;  %v6139_v26 = vcombine.low %v260_v12, %v264_v14  ;;  %v6402_v31 = vcombine.high %v523_v19, %v527_v21  ;;  %v567_v2 = vld [vmem:[#allocation6 + $0xd60] sm:$0xff] }
  0xfa   :  { %3075 = vmatpush1.bf16.msra.mxu1 %v6083_v54  ;;  %v6148_v54 = vcombine.high %v268_v23, %v272_v25  ;;  %v575_v10 = vld [vmem:[#allocation6 + $0xda0] sm:$0xff] }
  0xfb   :  { %3076 = vmatprep.subr.bf16.mxu1 %v6092_v55  ;;  %v535_v55 = vld [vmem:[#allocation6 + $0xc60] sm:$0xff] }
  0xfc   :  { %2993 = vmatpush1.bf16.msra.mxu0 %v6337_v28  ;;  %v531_v28 = vld [vmem:[#allocation6 + $0xc40] sm:$0xff] }
  0xfd   :  { %2994 = vmatprep.subr.bf16.mxu0 %v6346_v33  ;;  %v6147_v33 = vcombine.low %v268_v23, %v272_v25  ;;  %v6410_v40 = vcombine.high %v531_v28, %v535_v55  ;;  %v324_v23 = vld [vmem:[#allocation6 + $0x5c8] sm:$0xff] }
  0xfe   :  { %3077 = vmatpush1.bf16.msra.mxu1 %v6091_v35  ;;  %v6401_v35 = vcombine.low %v523_v19, %v527_v21  ;;  %v583_v19 = vld [vmem:[#allocation6 + $0xde0] sm:$0xff] }
  0xff   :  { %3078 = vmatprep.subr.bf16.mxu1 %v6100_v37  ;;  %v539_v37 = vld [vmem:[#allocation6 + $0xc80] sm:$0xff] }
 0x100   :  { %2995 = vmatpush1.bf16.msra.mxu0 %v6345_v36  ;;  %v6156_v36 = vcombine.high %v276_v30, %v280_v32  ;;  %v6418_v47 = vcombine.high %v539_v37, %v543_v38 }
 0x101   :  { %2996 = vmatprep.subr.bf16.mxu0 %v6354_v41  ;;  %v288_v41 = vld [vmem:[#allocation6 + $0x4a8] sm:$0xff] }
 0x102   :  { %3079 = vmatpush1.bf16.msra.mxu1 %v6099_v43  ;;  %v6409_v43 = vcombine.low %v531_v28, %v535_v55  ;;  %v6164_v20 = vcombine.high %v284_v39, %v288_v41  ;;  %v6163_v50 = vcombine.low %v284_v39, %v288_v41  ;;  %v336_v28 = vld [vmem:[#allocation6 + $0x628] sm:$0xff]  ;;  %v141_v55 = vld [vmem:[#allocation6 + $0x10] sm:$0xff]  ;;  %v6898_v39 = vld [vmem:[#allocation3 + $0x18] ss:$0 sps:$4 sm:$0xff]  }
 0x103   :  { %3080 = vmatprep.subr.bf16.mxu1 %v6108_v45  ;;  %v551_v45 = vld [vmem:[#allocation6 + $0xce0] sm:$0xff]  ;;  %v153_v41 = vld [vmem:[#allocation6 + $0x70] sm:$0xff] }
 0x104   :  { %2997 = vmatpush1.bf16.msra.mxu0 %v6353_v44  ;;  %v547_v44 = vld [vmem:[#allocation6 + $0xcc0] sm:$0xff] }
 0x105   :  { %2998 = vmatprep.subr.bf16.mxu0 %v6362_v49  ;;  %v7610_v49 = vmov 0   ;;  %v6426_v58 = vcombine.high %v547_v44, %v551_v45 }
 0x106   :  { %3081 = vmatpush1.bf16.msra.mxu1 %v6107_v51  ;;  %v6417_v51 = vcombine.low %v539_v37, %v543_v38  ;;  %v344_v37 = vld [vmem:[#allocation6 + $0x668] sm:$0xff]  ;;  %v149_v38 = vld [vmem:[#allocation6 + $0x50] sm:$0xff] }
 0x107   :  { %3082 = vmatprep.subr.bf16.mxu1 %v6116_v53  ;;  %v555_v53 = vld [vmem:[#allocation6 + $0xd00] sm:$0xff] }
 0x108   :  { %2999 = vmatpush1.bf16.msra.mxu0 %v6361_v52  ;;  %v6172_v52 = vcombine.high %v292_v46, %v296_v48  ;;  %v6434_v4 = vcombine.high %v555_v53, %v559_v56  ;;  %v157_v46 = vld [vmem:[#allocation6 + $0x90] sm:$0xff] }
 0x109   :  { %3000 = vmatprep.subr.bf16.mxu0 %v6370_v60  ;;  %v304_v60 = vld [vmem:[#allocation6 + $0x528] sm:$0xff]  ;;  %v161_v48 = vld [vmem:[#allocation6 + $0xb0] sm:$0xff] }
 0x10a   :  { %3083 = vmatpush1.bf16.msra.mxu1 %v6115_v63  ;;  %v6425_v63 = vcombine.low %v547_v44, %v551_v45  ;;  %v6179_v6 = vcombine.low %v300_v57, %v304_v60  ;;  %v348_v44 = vld [vmem:[#allocation6 + $0x688] sm:$0xff] }
 0x10b   :  { %3084 = vmatprep.subr.bf16.mxu1 %v6124_v1  ;;  %v563_v1 = vld [vmem:[#allocation6 + $0xd40] sm:$0xff]  ;;  %v352_v45 = vld [vmem:[#allocation6 + $0x6a8] sm:$0xff] }
 0x10c   :  { %3001 = vmatpush1.bf16.msra.mxu0 %v6369_v0  ;;  %v6180_v0 = vcombine.high %v300_v57, %v304_v60  ;;  %v6442_v12 = vcombine.high %v563_v1, %v567_v2  ;;  %v165_v57 = vld [vmem:[#allocation6 + $0xd0] sm:$0xff] }
 0x10d   :  { %3002 = vmatprep.subr.bf16.mxu0 %v6378_v5  ;;  %v312_v5 = vld [vmem:[#allocation6 + $0x568] sm:$0xff]  ;;  %v169_v60 = vld [vmem:[#allocation6 + $0xf0] sm:$0xff] }
 0x10e   :  { %3085 = vmatpush1.bf16.msra.mxu1 %v6123_v7  ;;  %v6433_v7 = vcombine.low %v555_v53, %v559_v56  ;;  %v6187_v14 = vcombine.low %v308_v3, %v312_v5  ;;  %v356_v53 = vld [vmem:[#allocation6 + $0x6c8] sm:$0xff] }
 0x10f   :  { %3086 = vmatprep.subr.bf16.mxu1 %v6132_v9  ;;  %v571_v9 = vld [vmem:[#allocation6 + $0xd80] sm:$0xff]  ;;  %v360_v56 = vld [vmem:[#allocation6 + $0x6e8] sm:$0xff] }
 0x110   :  { %3003 = vmatpush1.bf16.msra.mxu0 %v6377_v8  ;;  %v6188_v8 = vcombine.high %v308_v3, %v312_v5  ;;  %v6450_v21 = vcombine.high %v571_v9, %v575_v10  ;;  %v173_v3 = vld [vmem:[#allocation6 + $0x110] sm:$0xff] }
 0x111   :  { %3004 = vmatprep.subr.bf16.mxu0 %v6386_v13  ;;  %v320_v13 = vld [vmem:[#allocation6 + $0x5a8] sm:$0xff]  ;;  %v177_v5 = vld [vmem:[#allocation6 + $0x130] sm:$0xff] }
 0x112   :  { %3087 = vmatpush1.bf16.msra.mxu1 %v6131_v15  ;;  %v6441_v15 = vcombine.low %v563_v1, %v567_v2  ;;  %v6195_v25 = vcombine.low %v316_v11, %v320_v13  ;;  %v364_v1 = vld [vmem:[#allocation6 + $0x708] sm:$0xff] }
 0x113   :  { %3088 = vmatprep.subr.bf16.mxu1 %v6140_v18  ;;  %v579_v18 = vld [vmem:[#allocation6 + $0xdc0] sm:$0xff]  ;;  %v368_v2 = vld [vmem:[#allocation6 + $0x728] sm:$0xff] }
 0x114   :  { %3005 = vmatpush1.bf16.msra.mxu0 %v6385_v16  ;;  %v6196_v16 = vcombine.high %v316_v11, %v320_v13  ;;  %v6458_v30 = vcombine.high %v579_v18, %v583_v19  ;;  %v181_v11 = vld [vmem:[#allocation6 + $0x150] sm:$0xff] }
 0x115   :  { %3006 = vmatprep.subr.bf16.mxu0 %v6394_v24  ;;  %v328_v24 = vld [vmem:[#allocation6 + $0x5e8] sm:$0xff]  ;;  %v185_v13 = vld [vmem:[#allocation6 + $0x170] sm:$0xff] }
 0x116   :  { %3089 = vmatpush1.bf16.msra.mxu1 %v6139_v26  ;;  %v6449_v26 = vcombine.low %v571_v9, %v575_v10  ;;  %v6203_v32 = vcombine.low %v324_v23, %v328_v24  ;;  %v372_v9 = vld [vmem:[#allocation6 + $0x748] sm:$0xff] }
 0x117   :  { %3099 = vmatprep.subr.bf16.mxu1 %v6148_v54  ;;  %v332_v54 = vld [vmem:[#allocation6 + $0x608] sm:$0xff] }
 0x118   :  { %3007 = vmatpush1.bf16.msra.mxu0 %v6393_v27  ;;  %v6204_v27 = vcombine.high %v324_v23, %v328_v24  ;;  %v376_v10 = vld [vmem:[#allocation6 + $0x768] sm:$0xff]  ;;  %v6062_v23 = vcombine.high %v181_v11, %v185_v13  ;;  %v193_v24 = vld [vmem:[#allocation6 + $0x1b0] sm:$0xff] }
 0x119   :  { %3017 = vmatprep.subr.bf16.mxu0 %v6402_v31  ;;  %3091 = vmatmul.mubr.bf16.vlgmr.msra.gmra.mrb[4].mxu1 %v7777_v17  ;;  %v145_v31 = vld [vmem:[#allocation6 + $0x30] sm:$0xff] }
 0x11a   :  { %3100 = vmatpush1.bf16.msra.mxu1 %v6147_v33  ;;  %3131 = vmatprep.mubr.bf16.mxu1 %v7771_v62  ;;  %v6457_v33 = vcombine.low %v579_v18, %v583_v19  ;;  %v380_v18 = vld [vmem:[#allocation6 + $0x788] sm:$0xff] }
 0x11b   :  { %3009 = vmatmul.mubr.bf16.vlgmr.msra.gmra.mrb[0].mxu0 %v7795_v34  ;;  %3101 = vmatprep.subr.bf16.mxu1 %v6156_v36  ;;  %v340_v36 = vld [vmem:[#allocation6 + $0x648] sm:$0xff] }
 0x11c   :  { %3018 = vmatpush1.bf16.msra.mxu0 %v6401_v35  ;;  %3049 = vmatprep.mubr.bf16.mxu0 %v7610_v49  ;;  %v6212_v35 = vcombine.high %v332_v54, %v336_v28  ;;  %v384_v19 = vld [vmem:[#allocation6 + $0x7a8] sm:$0xff] }
 0x11d   :  { %3019 = vmatprep.subr.bf16.mxu0 %v6410_v40  ;;  %v6022_v40 = vcombine.high %v141_v55, %v145_v31 }
 0x11e   :  { %3102 = vmatpush1.bf16.msra.mxu1 %v6155_v42  ;;  %v6211_v42 = vcombine.low %v332_v54, %v336_v28  ;;  %v388_v54 = vld [vmem:[#allocation6 + $0x7c8] sm:$0xff] }
 0x11f   :  { %3103 = vmatprep.subr.bf16.mxu1 %v6164_v20  ;;  %v6220_v20 = vcombine.high %v340_v36, %v344_v37  ;;  %v392_v28 = vld [vmem:[#allocation6 + $0x7e8] sm:$0xff] }
 0x120   :  { %3020 = vmatpush1.bf16.msra.mxu0 %v6409_v43  ;;  %v6021_v43 = vcombine.low %v141_v55, %v145_v31  ;;  %v197_v55 = vld [vmem:[#allocation6 + $0x1d0] sm:$0xff] }
 0x121   :  { %3021 = vmatprep.subr.bf16.mxu0 %v6418_v47  ;;  %v6030_v47 = vcombine.high %v149_v38, %v153_v41  ;;  %v201_v31 = vld [vmem:[#allocation6 + $0x1f0] sm:$0xff] }
 0x122   :  { %3104 = vmatpush1.bf16.msra.mxu1 %v6163_v50  ;;  %v6219_v50 = vcombine.low %v340_v36, %v344_v37  ;;  %v396_v36 = vld [vmem:[#allocation6 + $0x808] sm:$0xff] }
 0x123   :  { %3105 = vmatprep.subr.bf16.mxu1 %v6172_v52  ;;  %v6228_v52 = vcombine.high %v348_v44, %v352_v45  ;;  %v400_v37 = vld [vmem:[#allocation6 + $0x828] sm:$0xff] }
 0x124   :  { %3022 = vmatpush1.bf16.msra.mxu0 %v6417_v51  ;;  %v6029_v51 = vcombine.low %v149_v38, %v153_v41  ;;  %v205_v38 = vld [vmem:[#allocation6 + $0x210] sm:$0xff]  ;;  %v6267_v41 = vcombine.low %v388_v54, %v392_v28 }
 0x125   :  { %3023 = vmatprep.subr.bf16.mxu0 %v6426_v58  ;;  %v6038_v58 = vcombine.high %v157_v46, %v161_v48 }
 0x126   :  { %3106 = vmatpush1.bf16.msra.mxu1 %v6171_v61  ;;  %v6227_v61 = vcombine.low %v348_v44, %v352_v45  ;;  %v408_v44 = vld [vmem:[#allocation6 + $0x868] sm:$0xff]  ;;  %v213_v45 = vld [vmem:[#allocation6 + $0x250] sm:$0xff] }
 0x127   :  { %3107 = vmatprep.subr.bf16.mxu1 %v6180_v0  ;;  %v6236_v0 = vcombine.high %v356_v53, %v360_v56 }
 0x128   :  { %3024 = vmatpush1.bf16.msra.mxu0 %v6425_v63  ;;  %v6037_v63 = vcombine.low %v157_v46, %v161_v48  ;;  %v6275_v48 = vcombine.low %v396_v36, %v400_v37 }
 0x129   :  { %3025 = vmatprep.subr.bf16.mxu0 %v6434_v4  ;;  %v6046_v4 = vcombine.high %v165_v57, %v169_v60 }
 0x12a   :  { %3108 = vmatpush1.bf16.msra.mxu1 %v6179_v6  ;;  %v6235_v6 = vcombine.low %v356_v53, %v360_v56  ;;  %v416_v53 = vld [vmem:[#allocation6 + $0x8a8] sm:$0xff]  ;;  %v221_v56 = vld [vmem:[#allocation6 + $0x290] sm:$0xff] }
 0x12b   :  { %3109 = vmatprep.subr.bf16.mxu1 %v6188_v8  ;;  %v6244_v8 = vcombine.high %v364_v1, %v368_v2 }
 0x12c   :  { %3026 = vmatpush1.bf16.msra.mxu0 %v6433_v7  ;;  %v6045_v7 = vcombine.low %v165_v57, %v169_v60 }
 0x12d   :  { %3027 = vmatprep.subr.bf16.mxu0 %v6442_v12  ;;  %v6054_v12 = vcombine.high %v173_v3, %v177_v5 }
 0x12e   :  { %3110 = vmatpush1.bf16.msra.mxu1 %v6187_v14  ;;  %v6243_v14 = vcombine.low %v364_v1, %v368_v2  ;;  %v424_v1 = vld [vmem:[#allocation6 + $0x8e8] sm:$0xff]  ;;  %v229_v2 = vld [vmem:[#allocation6 + $0x2d0] sm:$0xff] }
 0x12f   :  { %3111 = vmatprep.subr.bf16.mxu1 %v6196_v16  ;;  %v6252_v16 = vcombine.high %v372_v9, %v376_v10 }
 0x130   :  { %3028 = vmatpush1.bf16.msra.mxu0 %v6441_v15  ;;  %v6053_v15 = vcombine.low %v173_v3, %v177_v5 }
 0x131   :  { %3029 = vmatprep.subr.bf16.mxu0 %v6450_v21  ;;  %v189_v21 = vld [vmem:[#allocation6 + $0x190] sm:$0xff] }
 0x132   :  { %3112 = vmatpush1.bf16.msra.mxu1 %v6195_v25  ;;  %v6251_v25 = vcombine.low %v372_v9, %v376_v10  ;;  %v432_v9 = vld [vmem:[#allocation6 + $0x928] sm:$0xff]  ;;  %v237_v10 = vld [vmem:[#allocation6 + $0x310] sm:$0xff] }
 0x133   :  { %3113 = vmatprep.subr.bf16.mxu1 %v6204_v27  ;;  %v6260_v27 = vcombine.high %v380_v18, %v384_v19 }
 0x134   :  { %3030 = vmatpush1.bf16.msra.mxu0 %v6449_v26  ;;  %v6061_v26 = vcombine.low %v181_v11, %v185_v13 }
 0x135   :  { %3031 = vmatprep.subr.bf16.mxu0 %v6458_v30  ;;  %v6070_v30 = vcombine.high %v189_v21, %v193_v24 }
 0x136   :  { %3114 = vmatpush1.bf16.msra.mxu1 %v6203_v32  ;;  %v6259_v32 = vcombine.low %v380_v18, %v384_v19  ;;  %v440_v18 = vld [vmem:[#allocation6 + $0x968] sm:$0xff]  ;;  %v245_v19 = vld [vmem:[#allocation6 + $0x350] sm:$0xff] }
 0x137   :  { %3115 = vmatprep.subr.bf16.mxu1 %v6212_v35  ;;  %v6268_v35 = vcombine.high %v388_v54, %v392_v28  ;;  %v448_v54 = vld [vmem:[#allocation6 + $0x9a8] sm:$0xff]  ;;  %v253_v28 = vld [vmem:[#allocation6 + $0x390] sm:$0xff] }
 0x138   :  { %3032 = vmatpush1.bf16.msra.mxu0 %v6457_v33  ;;  %v6069_v33 = vcombine.low %v189_v21, %v193_v24 }
 0x139   :  { %3222 = vmatprep.subr.bf16.mxu0 %v6022_v40  ;;  %v209_v40 = vld [vmem:[#allocation6 + $0x230] sm:$0xff] }
 0x13a   :  { %3116 = vmatpush1.bf16.msra.mxu1 %v6211_v42  ;;  %v6077_v42 = vcombine.low %v197_v55, %v201_v31  ;;  %v6086_v46 = vcombine.high %v205_v38, %v209_v40 }
 0x13b   :  { %3050 = vmatmul.mubr.bf16.vlgmr.msra.gmra.mrb[0].mxu0 %v6898_v39  ;;  %3117 = vmatprep.subr.bf16.mxu1 %v6220_v20  ;;  %v6078_v39 = vcombine.high %v197_v55, %v201_v31  ;;  %v404_v20 = vld [vmem:[#allocation6 + $0x848] sm:$0xff] }
 0x13c   :  { %3223 = vmatpush1.bf16.msra.mxu0 %v6021_v43  ;;  %3254 = vmatprep.mubr.bf16.mxu0 %v7767_v59  ;;  %v6276_v43 = vcombine.high %v396_v36, %v400_v37  ;;  %v6283_v60 = vcombine.low %v404_v20, %v408_v44  ;;  %v456_v36 = vld [vmem:[#allocation6 + $0x9e8] sm:$0xff]  ;;  %v261_v37 = vld [vmem:[#allocation6 + $0x3d0] sm:$0xff] }
 0x13d   :  { %3224 = vmatprep.subr.bf16.mxu0 %v6030_v47  ;;  %v217_v47 = vld [vmem:[#allocation6 + $0x270] sm:$0xff] }
 0x13e   :  { %3118 = vmatpush1.bf16.msra.mxu1 %v6219_v50  ;;  %v6085_v50 = vcombine.low %v205_v38, %v209_v40  ;;  %v6094_v57 = vcombine.high %v213_v45, %v217_v47 }
 0x13f   :  { %3119 = vmatprep.subr.bf16.mxu1 %v6228_v52  ;;  %v412_v52 = vld [vmem:[#allocation6 + $0x888] sm:$0xff] }
 0x140   :  { %3225 = vmatpush1.bf16.msra.mxu0 %v6029_v51  ;;  %v6284_v51 = vcombine.high %v404_v20, %v408_v44  ;;  %v6291_v5 = vcombine.low %v412_v52, %v416_v53  ;;  %v464_v20 = vld [vmem:[#allocation6 + $0xa28] sm:$0xff]  ;;  %v269_v44 = vld [vmem:[#allocation6 + $0x410] sm:$0xff] }
 0x141   :  { %3226 = vmatprep.subr.bf16.mxu0 %v6038_v58  ;;  %v225_v58 = vld [vmem:[#allocation6 + $0x2b0] sm:$0xff] }
 0x142   :  { %3120 = vmatpush1.bf16.msra.mxu1 %v6227_v61  ;;  %v6093_v61 = vcombine.low %v213_v45, %v217_v47  ;;  %v6102_v3 = vcombine.high %v221_v56, %v225_v58 }
 0x143   :  { %3121 = vmatprep.subr.bf16.mxu1 %v6236_v0  ;;  %v420_v0 = vld [vmem:[#allocation6 + $0x8c8] sm:$0xff] }
 0x144   :  { %3227 = vmatpush1.bf16.msra.mxu0 %v6037_v63  ;;  %v6292_v63 = vcombine.high %v412_v52, %v416_v53  ;;  %v6299_v13 = vcombine.low %v420_v0, %v424_v1  ;;  %v472_v52 = vld [vmem:[#allocation6 + $0xa68] sm:$0xff]  ;;  %v277_v53 = vld [vmem:[#allocation6 + $0x450] sm:$0xff] }
 0x145   :  { %3228 = vmatprep.subr.bf16.mxu0 %v6046_v4  ;;  %v233_v4 = vld [vmem:[#allocation6 + $0x2f0] sm:$0xff] }
 0x146   :  { %3122 = vmatpush1.bf16.msra.mxu1 %v6235_v6  ;;  %v6101_v6 = vcombine.low %v221_v56, %v225_v58  ;;  %v6110_v11 = vcombine.high %v229_v2, %v233_v4 }
 0x147   :  { %3123 = vmatprep.subr.bf16.mxu1 %v6244_v8  ;;  %v428_v8 = vld [vmem:[#allocation6 + $0x908] sm:$0xff] }
 0x148   :  { %3229 = vmatpush1.bf16.msra.mxu0 %v6045_v7  ;;  %v6300_v7 = vcombine.high %v420_v0, %v424_v1  ;;  %v6307_v24 = vcombine.low %v428_v8, %v432_v9  ;;  %v480_v1 = vld [vmem:[#allocation6 + $0xaa8] sm:$0xff] }
 0x149   :  { %3230 = vmatprep.subr.bf16.mxu0 %v6054_v12  ;;  %v241_v12 = vld [vmem:[#allocation6 + $0x330] sm:$0xff] }
 0x14a   :  { %3124 = vmatpush1.bf16.msra.mxu1 %v6243_v14  ;;  %v6109_v14 = vcombine.low %v229_v2, %v233_v4  ;;  %v6118_v21 = vcombine.high %v237_v10, %v241_v12  ;;  %v285_v2 = vld [vmem:[#allocation6 + $0x490] sm:$0xff] }
 0x14b   :  { %3125 = vmatprep.subr.bf16.mxu1 %v6252_v16  ;;  %v436_v16 = vld [vmem:[#allocation6 + $0x948] sm:$0xff] }
 0x14c   :  { %3231 = vmatpush1.bf16.msra.mxu0 %v6053_v15  ;;  %v6308_v15 = vcombine.high %v428_v8, %v432_v9  ;;  %v6315_v31 = vcombine.low %v436_v16, %v440_v18  ;;  %v484_v8 = vld [vmem:[#allocation6 + $0xac8] sm:$0xff] }
 0x14d   :  { %3232 = vmatprep.subr.bf16.mxu0 %v6062_v23  ;;  %v249_v23 = vld [vmem:[#allocation6 + $0x370] sm:$0xff]  ;;  %v488_v9 = vld [vmem:[#allocation6 + $0xae8] sm:$0xff] }
 0x14e   :  { %3126 = vmatpush1.bf16.msra.mxu1 %v6251_v25  ;;  %v6117_v25 = vcombine.low %v237_v10, %v241_v12  ;;  %v6126_v55 = vcombine.high %v245_v19, %v249_v23  ;;  %v293_v10 = vld [vmem:[#allocation6 + $0x4d0] sm:$0xff] }
 0x14f   :  { %3127 = vmatprep.subr.bf16.mxu1 %v6260_v27  ;;  %v444_v27 = vld [vmem:[#allocation6 + $0x988] sm:$0xff] }
 0x150   :  { %3233 = vmatpush1.bf16.msra.mxu0 %v6061_v26  ;;  %v6316_v26 = vcombine.high %v436_v16, %v440_v18  ;;  %v6323_v40 = vcombine.low %v444_v27, %v448_v54  ;;  %v492_v16 = vld [vmem:[#allocation6 + $0xb08] sm:$0xff] }
 0x151   :  { %3234 = vmatprep.subr.bf16.mxu0 %v6070_v30  ;;  %v257_v30 = vld [vmem:[#allocation6 + $0x3b0] sm:$0xff]  ;;  %v496_v18 = vld [vmem:[#allocation6 + $0xb28] sm:$0xff] }
 0x152   :  { %3128 = vmatpush1.bf16.msra.mxu1 %v6259_v32  ;;  %v6125_v32 = vcombine.low %v245_v19, %v249_v23  ;;  %v6134_v38 = vcombine.high %v253_v28, %v257_v30  ;;  %v301_v19 = vld [vmem:[#allocation6 + $0x510] sm:$0xff]  ;;  %v6363_v23 = vcombine.low %v484_v8, %v488_v9 }
 0x153   :  { %3129 = vmatprep.subr.bf16.mxu1 %v6268_v35  ;;  %v452_v35 = vld [vmem:[#allocation6 + $0x9c8] sm:$0xff] }
 0x154   :  { %3235 = vmatpush1.bf16.msra.mxu0 %v6069_v33  ;;  %v6324_v33 = vcombine.high %v444_v27, %v448_v54  ;;  %v6331_v47 = vcombine.low %v452_v35, %v456_v36  ;;  %v500_v27 = vld [vmem:[#allocation6 + $0xb48] sm:$0xff] }
 0x155   :  { %3236 = vmatprep.subr.bf16.mxu0 %v6078_v39  ;;  %v265_v39 = vld [vmem:[#allocation6 + $0x3f0] sm:$0xff]  ;;  %v504_v54 = vld [vmem:[#allocation6 + $0xb68] sm:$0xff] }
 0x156   :  { %3130 = vmatpush1.bf16.msra.mxu1 %v6267_v41  ;;  %v6133_v41 = vcombine.low %v253_v28, %v257_v30  ;;  %v6142_v45 = vcombine.high %v261_v37, %v265_v39  ;;  %v309_v28 = vld [vmem:[#allocation6 + $0x550] sm:$0xff]  ;;  %v6371_v30 = vcombine.low %v492_v16, %v496_v18 }
 0x157   :  { %3140 = vmatprep.subr.bf16.mxu1 %v6276_v43  ;;  %v460_v43 = vld [vmem:[#allocation6 + $0xa08] sm:$0xff] }
 0x158   :  { %3237 = vmatpush1.bf16.msra.mxu0 %v6077_v42  ;;  %v6332_v42 = vcombine.high %v452_v35, %v456_v36  ;;  %v6339_v58 = vcombine.low %v460_v43, %v464_v20  ;;  %v508_v35 = vld [vmem:[#allocation6 + $0xb88] sm:$0xff] }
 0x159   :  { %3238 = vmatprep.subr.bf16.mxu0 %v6086_v46  ;;  %3132 = vmatmul.mubr.bf16.vlgmr.msra.gmra.mrb[4].mxu1 %v7783_v22  ;;  %v273_v46 = vld [vmem:[#allocation6 + $0x430] sm:$0xff]  ;;  %v512_v36 = vld [vmem:[#allocation6 + $0xba8] sm:$0xff] }
 0x15a   :  { %3141 = vmatpush1.bf16.msra.mxu1 %v6275_v48  ;;  %3172 = vmatprep.mubr.bf16.mxu1 %v7787_v29  ;;  %v6141_v48 = vcombine.low %v261_v37, %v265_v39  ;;  %v6150_v56 = vcombine.high %v269_v44, %v273_v46  ;;  %v317_v37 = vld [vmem:[#allocation6 + $0x590] sm:$0xff]  ;;  %v6379_v39 = vcombine.low %v500_v27, %v504_v54 }
 0x15b   :  { %3142 = vmatprep.subr.bf16.mxu1 %v6284_v51  ;;  %v468_v51 = vld [vmem:[#allocation6 + $0xa48] sm:$0xff] }
 0x15c   :  { %3239 = vmatpush1.bf16.msra.mxu0 %v6085_v50  ;;  %v6340_v50 = vcombine.high %v460_v43, %v464_v20  ;;  %v6347_v4 = vcombine.low %v468_v51, %v472_v52  ;;  %v516_v43 = vld [vmem:[#allocation6 + $0xbc8] sm:$0xff] }
 0x15d   :  { %3240 = vmatprep.subr.bf16.mxu0 %v6094_v57  ;;  %v281_v57 = vld [vmem:[#allocation6 + $0x470] sm:$0xff]  ;;  %v520_v20 = vld [vmem:[#allocation6 + $0xbe8] sm:$0xff] }
 0x15e   :  { %3143 = vmatpush1.bf16.msra.mxu1 %v6283_v60  ;;  %v6149_v60 = vcombine.low %v269_v44, %v273_v46  ;;  %v6158_v0 = vcombine.high %v277_v53, %v281_v57  ;;  %v325_v44 = vld [vmem:[#allocation6 + $0x5d0] sm:$0xff]  ;;  %v6387_v46 = vcombine.low %v508_v35, %v512_v36 }
 0x15f   :  { %3144 = vmatprep.subr.bf16.mxu1 %v6292_v63  ;;  %v476_v63 = vld [vmem:[#allocation6 + $0xa88] sm:$0xff] }
 0x160   :  { %3241 = vmatpush1.bf16.msra.mxu0 %v6093_v61  ;;  %v6348_v61 = vcombine.high %v468_v51, %v472_v52  ;;  %v6355_v12 = vcombine.low %v476_v63, %v480_v1  ;;  %v524_v51 = vld [vmem:[#allocation6 + $0xc08] sm:$0xff] }
 0x161   :  { %3242 = vmatprep.subr.bf16.mxu0 %v6102_v3  ;;  %v289_v3 = vld [vmem:[#allocation6 + $0x4b0] sm:$0xff]  ;;  %v528_v52 = vld [vmem:[#allocation6 + $0xc28] sm:$0xff] }
 0x162   :  { %3145 = vmatpush1.bf16.msra.mxu1 %v6291_v5  ;;  %v6157_v5 = vcombine.low %v277_v53, %v281_v57  ;;  %v333_v53 = vld [vmem:[#allocation6 + $0x610] sm:$0xff]  ;;  %v6395_v57 = vcombine.low %v516_v43, %v520_v20 }
 0x163   :  { %3146 = vmatprep.subr.bf16.mxu1 %v6300_v7  ;;  %v6166_v7 = vcombine.high %v285_v2, %v289_v3 }
 0x164   :  { %3243 = vmatpush1.bf16.msra.mxu0 %v6101_v6  ;;  %v6356_v6 = vcombine.high %v476_v63, %v480_v1  ;;  %v532_v63 = vld [vmem:[#allocation6 + $0xc48] sm:$0xff]  ;;  %v341_v1 = vld [vmem:[#allocation6 + $0x650] sm:$0xff] }
 0x165   :  { %3244 = vmatprep.subr.bf16.mxu0 %v6110_v11  ;;  %v297_v11 = vld [vmem:[#allocation6 + $0x4f0] sm:$0xff] }
 0x166   :  { %3147 = vmatpush1.bf16.msra.mxu1 %v6299_v13  ;;  %v6165_v13 = vcombine.low %v285_v2, %v289_v3  ;;  %v345_v2 = vld [vmem:[#allocation6 + $0x670] sm:$0xff]  ;;  %v6403_v3 = vcombine.low %v524_v51, %v528_v52 }
 0x167   :  { %3148 = vmatprep.subr.bf16.mxu1 %v6308_v15  ;;  %v6174_v15 = vcombine.high %v293_v10, %v297_v11 }
 0x168   :  { %3245 = vmatpush1.bf16.msra.mxu0 %v6109_v14  ;;  %v6364_v14 = vcombine.high %v484_v8, %v488_v9  ;;  %v544_v8 = vld [vmem:[#allocation6 + $0xca8] sm:$0xff]  ;;  %v349_v9 = vld [vmem:[#allocation6 + $0x690] sm:$0xff] }
 0x169   :  { %3246 = vmatprep.subr.bf16.mxu0 %v6118_v21  ;;  %v305_v21 = vld [vmem:[#allocation6 + $0x530] sm:$0xff] }
 0x16a   :  { %3149 = vmatpush1.bf16.msra.mxu1 %v6307_v24  ;;  %v6173_v24 = vcombine.low %v293_v10, %v297_v11  ;;  %v353_v10 = vld [vmem:[#allocation6 + $0x6b0] sm:$0xff] }
 0x16b   :  { %3150 = vmatprep.subr.bf16.mxu1 %v6316_v26  ;;  %v6182_v26 = vcombine.high %v301_v19, %v305_v21 }
 0x16c   :  { %3247 = vmatpush1.bf16.msra.mxu0 %v6117_v25  ;;  %v6372_v25 = vcombine.high %v492_v16, %v496_v18  ;;  %v552_v16 = vld [vmem:[#allocation6 + $0xce8] sm:$0xff]  ;;  %v357_v18 = vld [vmem:[#allocation6 + $0x6d0] sm:$0xff] }
 0x16d   :  { %3248 = vmatprep.subr.bf16.mxu0 %v6126_v55  ;;  %v313_v55 = vld [vmem:[#allocation6 + $0x570] sm:$0xff] }
 0x16e   :  { %3151 = vmatpush1.bf16.msra.mxu1 %v6315_v31  ;;  %v6181_v31 = vcombine.low %v301_v19, %v305_v21  ;;  %v361_v19 = vld [vmem:[#allocation6 + $0x6f0] sm:$0xff] }
 0x16f   :  { %3152 = vmatprep.subr.bf16.mxu1 %v6324_v33  ;;  %v6190_v33 = vcombine.high %v309_v28, %v313_v55 }
 0x170   :  { %3249 = vmatpush1.bf16.msra.mxu0 %v6125_v32  ;;  %v6380_v32 = vcombine.high %v500_v27, %v504_v54  ;;  %v560_v27 = vld [vmem:[#allocation6 + $0xd28] sm:$0xff]  ;;  %v365_v54 = vld [vmem:[#allocation6 + $0x710] sm:$0xff] }
 0x171   :  { %3250 = vmatprep.subr.bf16.mxu0 %v6134_v38  ;;  %v321_v38 = vld [vmem:[#allocation6 + $0x5b0] sm:$0xff] }
 0x172   :  { %3153 = vmatpush1.bf16.msra.mxu1 %v6323_v40  ;;  %v6189_v40 = vcombine.low %v309_v28, %v313_v55  ;;  %v369_v28 = vld [vmem:[#allocation6 + $0x730] sm:$0xff] }
 0x173   :  { %3154 = vmatprep.subr.bf16.mxu1 %v6332_v42  ;;  %v6198_v42 = vcombine.high %v317_v37, %v321_v38 }
 0x174   :  { %3251 = vmatpush1.bf16.msra.mxu0 %v6133_v41  ;;  %v6388_v41 = vcombine.high %v508_v35, %v512_v36  ;;  %v568_v35 = vld [vmem:[#allocation6 + $0xd68] sm:$0xff]  ;;  %v373_v36 = vld [vmem:[#allocation6 + $0x750] sm:$0xff] }
 0x175   :  { %3252 = vmatprep.subr.bf16.mxu0 %v6142_v45  ;;  %v329_v45 = vld [vmem:[#allocation6 + $0x5f0] sm:$0xff] }
 0x176   :  { %3155 = vmatpush1.bf16.msra.mxu1 %v6331_v47  ;;  %v6197_v47 = vcombine.low %v317_v37, %v321_v38  ;;  %v377_v37 = vld [vmem:[#allocation6 + $0x770] sm:$0xff] }
 0x177   :  { %3156 = vmatprep.subr.bf16.mxu1 %v6340_v50  ;;  %v6206_v50 = vcombine.high %v325_v44, %v329_v45 }
 0x178   :  { %3253 = vmatpush1.bf16.msra.mxu0 %v6141_v48  ;;  %v6396_v48 = vcombine.high %v516_v43, %v520_v20  ;;  %v576_v43 = vld [vmem:[#allocation6 + $0xda8] sm:$0xff]  ;;  %v381_v20 = vld [vmem:[#allocation6 + $0x790] sm:$0xff] }
 0x179   :  { %3263 = vmatprep.subr.bf16.mxu0 %v6150_v56  ;;  %v337_v56 = vld [vmem:[#allocation6 + $0x630] sm:$0xff] }
 0x17a   :  { %3157 = vmatpush1.bf16.msra.mxu1 %v6339_v58  ;;  %v6205_v58 = vcombine.low %v325_v44, %v329_v45  ;;  %v385_v44 = vld [vmem:[#allocation6 + $0x7b0] sm:$0xff] }
 0x17b   :  { %3255 = vmatmul.mubr.bf16.vlgmr.msra.gmra.mrb[4].mxu0 %v7777_v17  ;;  %3158 = vmatprep.subr.bf16.mxu1 %v6348_v61  ;;  %v6214_v61 = vcombine.high %v333_v53, %v337_v56 }
 0x17c   :  { %3264 = vmatpush1.bf16.msra.mxu0 %v6149_v60  ;;  %3295 = vmatprep.mubr.bf16.mxu0 %v7771_v62  ;;  %v6404_v60 = vcombine.high %v524_v51, %v528_v52  ;;  %v580_v51 = vld [vmem:[#allocation6 + $0xdc8] sm:$0xff] }
 0x17d   :  { %3265 = vmatprep.subr.bf16.mxu0 %v6158_v0  ;;  %v536_v0 = vld [vmem:[#allocation6 + $0xc68] sm:$0xff] }
 0x17e   :  { %3159 = vmatpush1.bf16.msra.mxu1 %v6347_v4  ;;  %v6213_v4 = vcombine.low %v333_v53, %v337_v56  ;;  %v6411_v11 = vcombine.low %v532_v63, %v536_v0  ;;  %v584_v52 = vld [vmem:[#allocation6 + $0xde8] sm:$0xff]  ;;  %v389_v56 = vld [vmem:[#allocation6 + $0x7d0] sm:$0xff] }
 0x17f   :  { %3160 = vmatprep.subr.bf16.mxu1 %v6356_v6  ;;  %v6222_v6 = vcombine.high %v341_v1, %v345_v2 }
 0x180   :  { %3266 = vmatpush1.bf16.msra.mxu0 %v6157_v5  ;;  %v6412_v5 = vcombine.high %v532_v63, %v536_v0  ;;  %v6261_v63 = vcombine.low %v381_v20, %v385_v44  ;;  %v6460_v0 = vcombine.high %v580_v51, %v584_v52 }
 0x181   :  { %3267 = vmatprep.subr.bf16.mxu0 %v6166_v7  ;;  %v540_v7 = vld [vmem:[#allocation6 + $0xc88] sm:$0xff] }
 0x182   :  { %3161 = vmatpush1.bf16.msra.mxu1 %v6355_v12  ;;  %v6221_v12 = vcombine.low %v341_v1, %v345_v2  ;;  %v6419_v21 = vcombine.low %v540_v7, %v544_v8  ;;  %v142_v2 = vld [vmem:[#allocation6 + $0x18] sm:$0xff] }
 0x183   :  { %3162 = vmatprep.subr.bf16.mxu1 %v6364_v14  ;;  %v6230_v14 = vcombine.high %v349_v9, %v353_v10 }
 0x184   :  { %3268 = vmatpush1.bf16.msra.mxu0 %v6165_v13  ;;  %v6420_v13 = vcombine.high %v540_v7, %v544_v8 }
 0x185   :  { %3269 = vmatprep.subr.bf16.mxu0 %v6174_v15  ;;  %v548_v15 = vld [vmem:[#allocation6 + $0xcc8] sm:$0xff] }
 0x186   :  { %3163 = vmatpush1.bf16.msra.mxu1 %v6363_v23  ;;  %v6229_v23 = vcombine.low %v349_v9, %v353_v10  ;;  %v6427_v55 = vcombine.low %v548_v15, %v552_v16  ;;  %v150_v10 = vld [vmem:[#allocation6 + $0x58] sm:$0xff] }
 0x187   :  { %3164 = vmatprep.subr.bf16.mxu1 %v6372_v25  ;;  %v6238_v25 = vcombine.high %v357_v18, %v361_v19 }
 0x188   :  { %3270 = vmatpush1.bf16.msra.mxu0 %v6173_v24  ;;  %v6428_v24 = vcombine.high %v548_v15, %v552_v16 }
 0x189   :  { %3271 = vmatprep.subr.bf16.mxu0 %v6182_v26  ;;  %v556_v26 = vld [vmem:[#allocation6 + $0xd08] sm:$0xff] }
 0x18a   :  { %3165 = vmatpush1.bf16.msra.mxu1 %v6371_v30  ;;  %v6237_v30 = vcombine.low %v357_v18, %v361_v19  ;;  %v6435_v38 = vcombine.low %v556_v26, %v560_v27  ;;  %v158_v19 = vld [vmem:[#allocation6 + $0x98] sm:$0xff] }
 0x18b   :  { %3166 = vmatprep.subr.bf16.mxu1 %v6380_v32  ;;  %v6246_v32 = vcombine.high %v365_v54, %v369_v28 }
 0x18c   :  { %3272 = vmatpush1.bf16.msra.mxu0 %v6181_v31  ;;  %v6436_v31 = vcombine.high %v556_v26, %v560_v27 }
 0x18d   :  { %3273 = vmatprep.subr.bf16.mxu0 %v6190_v33  ;;  %v564_v33 = vld [vmem:[#allocation6 + $0xd48] sm:$0xff] }
 0x18e   :  { %3167 = vmatpush1.bf16.msra.mxu1 %v6379_v39  ;;  %v6245_v39 = vcombine.low %v365_v54, %v369_v28  ;;  %v6443_v45 = vcombine.low %v564_v33, %v568_v35 }
 0x18f   :  { %3168 = vmatprep.subr.bf16.mxu1 %v6388_v41  ;;  %v6254_v41 = vcombine.high %v373_v36, %v377_v37 }
 0x190   :  { %3274 = vmatpush1.bf16.msra.mxu0 %v6189_v40  ;;  %v6444_v40 = vcombine.high %v564_v33, %v568_v35 }
 0x191   :  { %3275 = vmatprep.subr.bf16.mxu0 %v6198_v42  ;;  %v572_v42 = vld [vmem:[#allocation6 + $0xd88] sm:$0xff] }
 0x192   :  { %3169 = vmatpush1.bf16.msra.mxu1 %v6387_v46  ;;  %v6253_v46 = vcombine.low %v373_v36, %v377_v37 }
 0x193   :  { %3170 = vmatprep.subr.bf16.mxu1 %v6396_v48 }
 0x194   :  { %3276 = vmatpush1.bf16.msra.mxu0 %v6197_v47  ;;  %v6452_v47 = vcombine.high %v572_v42, %v576_v43 }
 0x195   :  { %3277 = vmatprep.subr.bf16.mxu0 %v6206_v50  ;;  %v6262_v50 = vcombine.high %v381_v20, %v385_v44  ;;  %v182_v44 = vld [vmem:[#allocation6 + $0x158] sm:$0xff] }
 0x196   :  { %3171 = vmatpush1.bf16.msra.mxu1 %v6395_v57  ;;  %v393_v57 = vld [vmem:[#allocation6 + $0x7f0] sm:$0xff] }
 0x197   :  { %3181 = vmatprep.subr.bf16.mxu1 %v6404_v60  ;;  %v6451_v60 = vcombine.low %v572_v42, %v576_v43  ;;  %v6270_v1 = vcombine.high %v389_v56, %v393_v57  ;;  %v6269_v7 = vcombine.low %v389_v56, %v393_v57  ;;  %v190_v57 = vld [vmem:[#allocation6 + $0x198] sm:$0xff] }
 0x198   :  { %3278 = vmatpush1.bf16.msra.mxu0 %v6205_v58 }
 0x199   :  { %3279 = vmatprep.subr.bf16.mxu0 %v6214_v61  ;;  %3173 = vmatmul.mubr.bf16.vlgmr.msra.gmra.mrb[4].mxu1 %v7795_v34 }
 0x19a   :  { %3182 = vmatpush1.bf16.msra.mxu1 %v6403_v3  ;;  %3213 = vmatprep.mubr.bf16.mxu1 %v7610_v49  ;;  %v146_v3 = vld [vmem:[#allocation6 + $0x38] sm:$0xff] }
 0x19b   :  { %3183 = vmatprep.subr.bf16.mxu1 %v6412_v5  ;;  %v401_v5 = vld [vmem:[#allocation6 + $0x830] sm:$0xff]  ;;  %v6024_v8 = vcombine.high %v142_v2, %v146_v3 }
 0x19c   :  { %3280 = vmatpush1.bf16.msra.mxu0 %v6213_v4  ;;  %v397_v4 = vld [vmem:[#allocation6 + $0x810] sm:$0xff] }
 0x19d   :  { %3281 = vmatprep.subr.bf16.mxu0 %v6222_v6  ;;  %v6459_v6 = vcombine.low %v580_v51, %v584_v52  ;;  %v6278_v9 = vcombine.high %v397_v4, %v401_v5  ;;  %v6277_v15 = vcombine.low %v397_v4, %v401_v5  ;;  %v202_v4 = vld [vmem:[#allocation6 + $0x1f8] sm:$0xff]  ;;  %v453_v5 = vld [vmem:[#allocation6 + $0x9d0] sm:$0xff] }
 0x19e   :  { %3184 = vmatpush1.bf16.msra.mxu1 %v6411_v11  ;;  %v154_v11 = vld [vmem:[#allocation6 + $0x78] sm:$0xff] }
 0x19f   :  { %3185 = vmatprep.subr.bf16.mxu1 %v6420_v13  ;;  %v409_v13 = vld [vmem:[#allocation6 + $0x870] sm:$0xff]  ;;  %v6032_v16 = vcombine.high %v150_v10, %v154_v11  ;;  %v6031_v26 = vcombine.low %v150_v10, %v154_v11  ;;  %v206_v11 = vld [vmem:[#allocation6 + $0x218] sm:$0xff] }
 0x1a0   :  { %3282 = vmatpush1.bf16.msra.mxu0 %v6221_v12  ;;  %v405_v12 = vld [vmem:[#allocation6 + $0x850] sm:$0xff] }
 0x1a1   :  { %3283 = vmatprep.subr.bf16.mxu0 %v6230_v14  ;;  %v6023_v14 = vcombine.low %v142_v2, %v146_v3  ;;  %v6286_v18 = vcombine.high %v405_v12, %v409_v13  ;;  %v6285_v27 = vcombine.low %v405_v12, %v409_v13  ;;  %v198_v3 = vld [vmem:[#allocation6 + $0x1d8] sm:$0xff]  ;;  %v461_v13 = vld [vmem:[#allocation6 + $0xa10] sm:$0xff] }
 0x1a2   :  { %3186 = vmatpush1.bf16.msra.mxu1 %v6419_v21  ;;  %v162_v21 = vld [vmem:[#allocation6 + $0xb8] sm:$0xff] }
 0x1a3   :  { %3187 = vmatprep.subr.bf16.mxu1 %v6428_v24  ;;  %v413_v24 = vld [vmem:[#allocation6 + $0x890] sm:$0xff]  ;;  %v6040_v54 = vcombine.high %v158_v19, %v162_v21  ;;  %v6039_v33 = vcombine.low %v158_v19, %v162_v21  ;;  %v210_v12 = vld [vmem:[#allocation6 + $0x238] sm:$0xff] }
 0x1a4   :  { %3284 = vmatpush1.bf16.msra.mxu0 %v6229_v23  ;;  %v7812_v23 = vld [vmem:[#allocation3 + $0x18] ss:$0 sps:$4 sm:$0xff]  }
 0x1a5   :  { %3285 = vmatprep.subr.bf16.mxu0 %v6238_v25  ;;  %v417_v25 = vld [vmem:[#allocation6 + $0x8b0] sm:$0xff]  ;;  %v214_v21 = vld [vmem:[#allocation6 + $0x258] sm:$0xff] }
 0x1a6   :  { %3188 = vmatpush1.bf16.msra.mxu1 %v6427_v55  ;;  %v6294_v28 = vcombine.high %v413_v24, %v417_v25  ;;  %v166_v55 = vld [vmem:[#allocation6 + $0xd8] sm:$0xff]  ;;  %v6293_v35 = vcombine.low %v413_v24, %v417_v25  ;;  %v469_v25 = vld [vmem:[#allocation6 + $0xa50] sm:$0xff] }
 0x1a7   :  { %3189 = vmatprep.subr.bf16.mxu1 %v6436_v31  ;;  %v421_v31 = vld [vmem:[#allocation6 + $0x8d0] sm:$0xff]  ;;  %v218_v24 = vld [vmem:[#allocation6 + $0x278] sm:$0xff] }
 0x1a8   :  { %3286 = vmatpush1.bf16.msra.mxu0 %v6237_v30  ;;  %v170_v30 = vld [vmem:[#allocation6 + $0xf8] sm:$0xff] }
 0x1a9   :  { %3287 = vmatprep.subr.bf16.mxu0 %v6246_v32  ;;  %v425_v32 = vld [vmem:[#allocation6 + $0x8f0] sm:$0xff]  ;;  %v6048_v36 = vcombine.high %v166_v55, %v170_v30  ;;  %v6047_v42 = vcombine.low %v166_v55, %v170_v30  ;;  %v222_v30 = vld [vmem:[#allocation6 + $0x298] sm:$0xff] }
 0x1aa   :  { %3190 = vmatpush1.bf16.msra.mxu1 %v6435_v38  ;;  %v6302_v37 = vcombine.high %v421_v31, %v425_v32  ;;  %v174_v38 = vld [vmem:[#allocation6 + $0x118] sm:$0xff]  ;;  %v6301_v43 = vcombine.low %v421_v31, %v425_v32  ;;  %v477_v32 = vld [vmem:[#allocation6 + $0xa90] sm:$0xff] }
 0x1ab   :  { %3191 = vmatprep.subr.bf16.mxu1 %v6444_v40  ;;  %v429_v40 = vld [vmem:[#allocation6 + $0x910] sm:$0xff]  ;;  %v226_v31 = vld [vmem:[#allocation6 + $0x2b8] sm:$0xff] }
 0x1ac   :  { %3288 = vmatpush1.bf16.msra.mxu0 %v6245_v39  ;;  %v7808_v48 = vpop.f32.mrb[0].mxu1  ;;  %v178_v39 = vld [vmem:[#allocation6 + $0x138] sm:$0xff] }
 0x1ad   :  { %3289 = vmatprep.subr.bf16.mxu0 %v6254_v41  ;;  %v7810_v53 = vpop.f32.mrb[1].mxu1  ;;  %v433_v41 = vld [vmem:[#allocation6 + $0x930] sm:$0xff]  ;;  %v6056_v20 = vcombine.high %v174_v38, %v178_v39 }
 0x1ae   :  { %v2932_v58 = vpop.f32.mrb[2].mxu1  ;;  %3192 = vmatpush1.bf16.msra.mxu1 %v6443_v45  ;;  %v186_v45 = vld [vmem:[#allocation6 + $0x178] sm:$0xff]  ;;  %v6309_v51 = vcombine.low %v429_v40, %v433_v41 }
 0x1af   :  { %v2933_v61 = vpop.f32.mrb[3].mxu1  ;;  %3193 = vmatprep.subr.bf16.mxu1 %v6452_v47  ;;  %v441_v47 = vld [vmem:[#allocation6 + $0x970] sm:$0xff]  ;;  %v6064_v52 = vcombine.high %v182_v44, %v186_v45  ;;  %v194_v58 = vld [vmem:[#allocation6 + $0x1b8] sm:$0xff] }
 0x1b0   :  { %3290 = vmatpush1.bf16.msra.mxu0 %v6253_v46  ;;  %v437_v46 = vld [vmem:[#allocation6 + $0x950] sm:$0xff] }
 0x1b1   :  { %3291 = vmatprep.subr.bf16.mxu0 %v6262_v50  ;;  %v6055_v50 = vcombine.low %v174_v38, %v178_v39  ;;  %v6318_v56 = vcombine.high %v437_v46, %v441_v47  ;;  %v449_v61 = vld [vmem:[#allocation6 + $0x9b0] sm:$0xff]  ;;  %v230_v39 = vld [vmem:[#allocation6 + $0x2d8] sm:$0xff] }
 0x1b2   :  { %3194 = vmatpush1.bf16.msra.mxu1 %v6451_v60  ;;  %v445_v60 = vld [vmem:[#allocation6 + $0x990] sm:$0xff] }
 0x1b3   :  { %3195 = vmatprep.subr.bf16.mxu1 %v6460_v0  ;;  %v6317_v0 = vcombine.low %v437_v46, %v441_v47  ;;  %v6326_v2 = vcombine.high %v445_v60, %v449_v61  ;;  %v242_v46 = vld [vmem:[#allocation6 + $0x338] sm:$0xff]  ;;  %v493_v47 = vld [vmem:[#allocation6 + $0xb10] sm:$0xff] }
 0x1b4   :  { %3292 = vmatpush1.bf16.msra.mxu0 %v6261_v63  ;;  %v6063_v63 = vcombine.low %v182_v44, %v186_v45  ;;  %v238_v45 = vld [vmem:[#allocation6 + $0x318] sm:$0xff] }
 0x1b5   :  { %3293 = vmatprep.subr.bf16.mxu0 %v6270_v1  ;;  %v6072_v1 = vcombine.high %v190_v57, %v194_v58 }
 0x1b6   :  { %3196 = vmatpush1.bf16.msra.mxu1 %v6459_v6  ;;  %v457_v6 = vld [vmem:[#allocation6 + $0x9f0] sm:$0xff] }
 0x1b7   :  { %3386 = vmatprep.subr.bf16.mxu1 %v6024_v8  ;;  %v6325_v8 = vcombine.low %v445_v60, %v449_v61  ;;  %v6334_v10 = vcombine.high %v453_v5, %v457_v6  ;;  %v250_v60 = vld [vmem:[#allocation6 + $0x378] sm:$0xff]  ;;  %v501_v61 = vld [vmem:[#allocation6 + $0xb50] sm:$0xff] }
 0x1b8   :  { %3294 = vmatpush1.bf16.msra.mxu0 %v6269_v7  ;;  %v6071_v7 = vcombine.low %v190_v57, %v194_v58  ;;  %v246_v58 = vld [vmem:[#allocation6 + $0x358] sm:$0xff] }
 0x1b9   :  { %3304 = vmatprep.subr.bf16.mxu0 %v6278_v9  ;;  %3214 = vmatmul.mubr.bf16.vlgmr.msra.gmra.mrb[4].mxu1 %v7812_v23  ;;  %v6080_v9 = vcombine.high %v198_v3, %v202_v4 }
 0x1ba   :  { %3387 = vmatpush1.bf16.msra.mxu1 %v6023_v14  ;;  %3418 = vmatprep.mubr.bf16.mxu1 %v7767_v59  ;;  %v6310_v59 = vcombine.high %v429_v40, %v433_v41  ;;  %v465_v14 = vld [vmem:[#allocation6 + $0xa30] sm:$0xff]  ;;  %v234_v40 = vld [vmem:[#allocation6 + $0x2f8] sm:$0xff] }
 0x1bb   :  { %3296 = vmatmul.mubr.bf16.vlgmr.msra.gmra.mrb[4].mxu0 %v7783_v22  ;;  %3388 = vmatprep.subr.bf16.mxu1 %v6032_v16  ;;  %v6333_v16 = vcombine.low %v453_v5, %v457_v6  ;;  %v6342_v19 = vcombine.high %v461_v13, %v465_v14  ;;  %v485_v41 = vld [vmem:[#allocation6 + $0xad0] sm:$0xff]  ;;  %v258_v5 = vld [vmem:[#allocation6 + $0x3b8] sm:$0xff] }
 0x1bc   :  { %3305 = vmatpush1.bf16.msra.mxu0 %v6277_v15  ;;  %3336 = vmatprep.mubr.bf16.mxu0 %v7787_v29  ;;  %v6079_v15 = vcombine.low %v198_v3, %v202_v4  ;;  %v254_v4 = vld [vmem:[#allocation6 + $0x398] sm:$0xff]  ;;  %v509_v6 = vld [vmem:[#allocation6 + $0xb90] sm:$0xff] }
 0x1bd   :  { %3306 = vmatprep.subr.bf16.mxu0 %v6286_v18  ;;  %v6088_v18 = vcombine.high %v206_v11, %v210_v12 }
 0x1be   :  { %3389 = vmatpush1.bf16.msra.mxu1 %v6031_v26  ;;  %v473_v26 = vld [vmem:[#allocation6 + $0xa70] sm:$0xff] }
 0x1bf   :  { %3390 = vmatprep.subr.bf16.mxu1 %v6040_v54  ;;  %v6341_v54 = vcombine.low %v461_v13, %v465_v14  ;;  %v6350_v55 = vcombine.high %v469_v25, %v473_v26  ;;  %v266_v13 = vld [vmem:[#allocation6 + $0x3f8] sm:$0xff]  ;;  %v517_v14 = vld [vmem:[#allocation6 + $0xbd0] sm:$0xff] }
 0x1c0   :  { %3307 = vmatpush1.bf16.msra.mxu0 %v6285_v27  ;;  %v6087_v27 = vcombine.low %v206_v11, %v210_v12  ;;  %v262_v12 = vld [vmem:[#allocation6 + $0x3d8] sm:$0xff] }
 0x1c1   :  { %3308 = vmatprep.subr.bf16.mxu0 %v6294_v28  ;;  %v6096_v28 = vcombine.high %v214_v21, %v218_v24 }
 0x1c2   :  { %3391 = vmatpush1.bf16.msra.mxu1 %v6039_v33  ;;  %v481_v33 = vld [vmem:[#allocation6 + $0xab0] sm:$0xff] }
 0x1c3   :  { %3392 = vmatprep.subr.bf16.mxu1 %v6048_v36  ;;  %v6349_v36 = vcombine.low %v469_v25, %v473_v26  ;;  %v6358_v38 = vcombine.high %v477_v32, %v481_v33  ;;  %v274_v25 = vld [vmem:[#allocation6 + $0x438] sm:$0xff]  ;;  %v525_v26 = vld [vmem:[#allocation6 + $0xc10] sm:$0xff] }
 0x1c4   :  { %3309 = vmatpush1.bf16.msra.mxu0 %v6293_v35  ;;  %v6095_v35 = vcombine.low %v214_v21, %v218_v24  ;;  %v270_v24 = vld [vmem:[#allocation6 + $0x418] sm:$0xff] }
 0x1c5   :  { %3310 = vmatprep.subr.bf16.mxu0 %v6302_v37  ;;  %v6104_v37 = vcombine.high %v222_v30, %v226_v31 }
 0x1c6   :  { %3393 = vmatpush1.bf16.msra.mxu1 %v6047_v42  ;;  %v489_v42 = vld [vmem:[#allocation6 + $0xaf0] sm:$0xff] }
 0x1c7   :  { %3394 = vmatprep.subr.bf16.mxu1 %v6056_v20  ;;  %v6357_v20 = vcombine.low %v477_v32, %v481_v33  ;;  %v6366_v44 = vcombine.high %v485_v41, %v489_v42  ;;  %v282_v32 = vld [vmem:[#allocation6 + $0x478] sm:$0xff]  ;;  %v533_v33 = vld [vmem:[#allocation6 + $0xc50] sm:$0xff] }
 0x1c8   :  { %3311 = vmatpush1.bf16.msra.mxu0 %v6301_v43  ;;  %v6103_v43 = vcombine.low %v222_v30, %v226_v31  ;;  %v278_v31 = vld [vmem:[#allocation6 + $0x458] sm:$0xff] }
 0x1c9   :  { %3312 = vmatprep.subr.bf16.mxu0 %v6310_v59  ;;  %v6112_v59 = vcombine.high %v230_v39, %v234_v40 }
 0x1ca   :  { %3395 = vmatpush1.bf16.msra.mxu1 %v6055_v50  ;;  %v497_v50 = vld [vmem:[#allocation6 + $0xb30] sm:$0xff] }
 0x1cb   :  { %3396 = vmatprep.subr.bf16.mxu1 %v6064_v52  ;;  %v6365_v52 = vcombine.low %v485_v41, %v489_v42  ;;  %v6374_v57 = vcombine.high %v493_v47, %v497_v50  ;;  %v290_v41 = vld [vmem:[#allocation6 + $0x4b8] sm:$0xff]  ;;  %v541_v42 = vld [vmem:[#allocation6 + $0xc90] sm:$0xff] }
 0x1cc   :  { %3313 = vmatpush1.bf16.msra.mxu0 %v6309_v51  ;;  %v6111_v51 = vcombine.low %v230_v39, %v234_v40  ;;  %v286_v40 = vld [vmem:[#allocation6 + $0x498] sm:$0xff] }
 0x1cd   :  { %3314 = vmatprep.subr.bf16.mxu0 %v6318_v56  ;;  %v6120_v56 = vcombine.high %v238_v45, %v242_v46 }
 0x1ce   :  { %3397 = vmatpush1.bf16.msra.mxu1 %v6063_v63  ;;  %v505_v63 = vld [vmem:[#allocation6 + $0xb70] sm:$0xff] }
 0x1cf   :  { %3398 = vmatprep.subr.bf16.mxu1 %v6072_v1  ;;  %v6373_v1 = vcombine.low %v493_v47, %v497_v50  ;;  %v6382_v3 = vcombine.high %v501_v61, %v505_v63  ;;  %v294_v47 = vld [vmem:[#allocation6 + $0x4d8] sm:$0xff] }
 0x1d0   :  { %3315 = vmatpush1.bf16.msra.mxu0 %v6317_v0  ;;  %v6119_v0 = vcombine.low %v238_v45, %v242_v46  ;;  %v589_v45 = vlaneseq  ;;  %v298_v50 = vld [vmem:[#allocation6 + $0x4f8] sm:$0xff] }
 0x1d1   :  { %3316 = vmatprep.subr.bf16.mxu0 %v6326_v2  ;;  %v6128_v2 = vcombine.high %v246_v58, %v250_v60 }
 0x1d2   :  { %3399 = vmatpush1.bf16.msra.mxu1 %v6071_v7  ;;  %v513_v7 = vld [vmem:[#allocation6 + $0xbb0] sm:$0xff] }
 0x1d3   :  { %3400 = vmatprep.subr.bf16.mxu1 %v6080_v9  ;;  %v6381_v9 = vcombine.low %v501_v61, %v505_v63  ;;  %v6390_v11 = vcombine.high %v509_v6, %v513_v7  ;;  %v302_v61 = vld [vmem:[#allocation6 + $0x518] sm:$0xff] }
 0x1d4   :  { %3317 = vmatpush1.bf16.msra.mxu0 %v6325_v8  ;;  %v6127_v8 = vcombine.low %v246_v58, %v250_v60  ;;  %v7823_v58 = vshrl.u32 %v589_v45, 7  ;;  %v306_v63 = vld [vmem:[#allocation6 + $0x538] sm:$0xff] }
 0x1d5   :  { %3318 = vmatprep.subr.bf16.mxu0 %v6334_v10  ;;  %v6136_v10 = vcombine.high %v254_v4, %v258_v5 }
 0x1d6   :  { %3401 = vmatpush1.bf16.msra.mxu1 %v6079_v15  ;;  %v521_v15 = vld [vmem:[#allocation6 + $0xbf0] sm:$0xff] }
 0x1d7   :  { %3402 = vmatprep.subr.bf16.mxu1 %v6088_v18  ;;  %v6389_v18 = vcombine.low %v509_v6, %v513_v7  ;;  %v6398_v21 = vcombine.high %v517_v14, %v521_v15  ;;  %v310_v6 = vld [vmem:[#allocation6 + $0x558] sm:$0xff] }
 0x1d8   :  { %3319 = vmatpush1.bf16.msra.mxu0 %v6333_v16  ;;  %v6135_v16 = vcombine.low %v254_v4, %v258_v5  ;;  %v7826_v4 = vsub.s32 0, %v7823_v58  ;;  %v314_v7 = vld [vmem:[#allocation6 + $0x578] sm:$0xff] }
 0x1d9   :  { %3320 = vmatprep.subr.bf16.mxu0 %v6342_v19  ;;  %v6144_v19 = vcombine.high %v262_v12, %v266_v13 }
 0x1da   :  { %3403 = vmatpush1.bf16.msra.mxu1 %v6087_v27  ;;  %v529_v27 = vld [vmem:[#allocation6 + $0xc30] sm:$0xff] }
 0x1db   :  { %3404 = vmatprep.subr.bf16.mxu1 %v6096_v28  ;;  %v6397_v28 = vcombine.low %v517_v14, %v521_v15  ;;  %v6406_v30 = vcombine.high %v525_v26, %v529_v27  ;;  %v6192_v14 = vcombine.high %v310_v6, %v314_v7 }
 0x1dc   :  { %3321 = vmatpush1.bf16.msra.mxu0 %v6341_v54  ;;  %v6143_v54 = vcombine.low %v262_v12, %v266_v13  ;;  %v6183_v12 = vcombine.low %v302_v61, %v306_v63 }
 0x1dd   :  { %3322 = vmatprep.subr.bf16.mxu0 %v6350_v55  ;;  %v6152_v55 = vcombine.high %v270_v24, %v274_v25 }
 0x1de   :  { %3405 = vmatpush1.bf16.msra.mxu1 %v6095_v35  ;;  %v537_v35 = vld [vmem:[#allocation6 + $0xc70] sm:$0xff] }
 0x1df   :  { %3406 = vmatprep.subr.bf16.mxu1 %v6104_v37  ;;  %v6405_v37 = vcombine.low %v525_v26, %v529_v27  ;;  %v6414_v39 = vcombine.high %v533_v33, %v537_v35  ;;  %v6191_v26 = vcombine.low %v310_v6, %v314_v7  ;;  %v6907_v6 = vld [vmem:[#allocation9 + $0x44] ss:$16 sps:$4 sm:$0xff]  }
 0x1e0   :  { %3323 = vmatpush1.bf16.msra.mxu0 %v6349_v36  ;;  %v6151_v36 = vcombine.low %v270_v24, %v274_v25  ;;  %v573_v24 = vld [vmem:[#allocation6 + $0xd90] sm:$0xff]  ;;  %v358_v7 = vld [vmem:[#allocation6 + $0x6d8] sm:$0xff] }
 0x1e1   :  { %3324 = vmatprep.subr.bf16.mxu0 %v6358_v38  ;;  %v6160_v38 = vcombine.high %v278_v31, %v282_v32  ;;  %v577_v25 = vld [vmem:[#allocation6 + $0xdb0] sm:$0xff] }
 0x1e2   :  { %3407 = vmatpush1.bf16.msra.mxu1 %v6103_v43  ;;  %v545_v43 = vld [vmem:[#allocation6 + $0xcb0] sm:$0xff] }
 0x1e3   :  { %3408 = vmatprep.subr.bf16.mxu1 %v6112_v59  ;;  %v6413_v59 = vcombine.low %v533_v33, %v537_v35  ;;  %v6422_v46 = vcombine.high %v541_v42, %v545_v43  ;;  %v581_v35 = vld [vmem:[#allocation6 + $0xdd0] sm:$0xff] }
 0x1e4   :  { %3325 = vmatpush1.bf16.msra.mxu0 %v6357_v20  ;;  %v6159_v20 = vcombine.low %v278_v31, %v282_v32  ;;  %v330_v31 = vld [vmem:[#allocation6 + $0x5f8] sm:$0xff] }
 0x1e5   :  { %3326 = vmatprep.subr.bf16.mxu0 %v6366_v44  ;;  %v6168_v44 = vcombine.high %v286_v40, %v290_v41 }
 0x1e6   :  { %3409 = vmatpush1.bf16.msra.mxu1 %v6111_v51  ;;  %v549_v51 = vld [vmem:[#allocation6 + $0xcd0] sm:$0xff] }
 0x1e7   :  { %3410 = vmatprep.subr.bf16.mxu1 %v6120_v56  ;;  %v6421_v56 = vcombine.low %v541_v42, %v545_v43  ;;  %v6453_v42 = vcombine.low %v573_v24, %v577_v25 }
 0x1e8   :  { %3327 = vmatpush1.bf16.msra.mxu0 %v6365_v52  ;;  %v553_v52 = vld [vmem:[#allocation6 + $0xcf0] sm:$0xff] }
 0x1e9   :  { %3328 = vmatprep.subr.bf16.mxu0 %v6374_v57  ;;  %v6176_v57 = vcombine.high %v294_v47, %v298_v50  ;;  %v6430_v60 = vcombine.high %v549_v51, %v553_v52 }
 0x1ea   :  { %3411 = vmatpush1.bf16.msra.mxu1 %v6119_v0  ;;  %v557_v0 = vld [vmem:[#allocation6 + $0xd10] sm:$0xff] }
 0x1eb   :  { %3412 = vmatprep.subr.bf16.mxu1 %v6128_v2  ;;  %v6175_v2 = vcombine.low %v294_v47, %v298_v50 }
 0x1ec   :  { %3329 = vmatpush1.bf16.msra.mxu0 %v6373_v1  ;;  %v561_v1 = vld [vmem:[#allocation6 + $0xd30] sm:$0xff] }
 0x1ed   :  { %3330 = vmatprep.subr.bf16.mxu0 %v6382_v3  ;;  %v6429_v3 = vcombine.low %v549_v51, %v553_v52  ;;  %v6438_v5 = vcombine.high %v557_v0, %v561_v1  ;;  %v6437_v13 = vcombine.low %v557_v0, %v561_v1  ;;  %v6901_v51 = vld [vmem:[#allocation9 + $0x4] ss:$16 sps:$4 sm:$0xff]  }
 0x1ee   :  { %3413 = vmatpush1.bf16.msra.mxu1 %v6127_v8  ;;  %v7828_v8 = vld [vmem:[#allocation8] sm:$0xff]  ;;  %v350_v0 = vld [vmem:[#allocation6 + $0x698] sm:$0xff] }
 0x1ef   :  { %3414 = vmatprep.subr.bf16.mxu1 %v6136_v10  ;;  %v565_v10 = vld [vmem:[#allocation6 + $0xd50] sm:$0xff]  ;;  %v592_v15 = vrot.slane %v7828_v8, %v7826_v4  ;;  %v354_v1 = vld [vmem:[#allocation6 + $0x6b8] sm:$0xff] }
 0x1f0   :  { %3331 = vmatpush1.bf16.msra.mxu0 %v6381_v9  ;;  %v7831_v9 = vsub.s32 1, %v7823_v58 }
 0x1f1   :  { %3332 = vmatprep.subr.bf16.mxu0 %v6390_v11  ;;  %v569_v11 = vld [vmem:[#allocation6 + $0xd70] sm:$0xff] }
 0x1f2   :  { %3415 = vmatpush1.bf16.msra.mxu1 %v6135_v16  ;;  %v6446_v16 = vcombine.high %v565_v10, %v569_v11  ;;  %v6445_v27 = vcombine.low %v565_v10, %v569_v11  ;;  %v362_v10 = vld [vmem:[#allocation6 + $0x6f8] sm:$0xff]  ;;  %v6231_v11 = vcombine.low %v350_v0, %v354_v1 }
 0x1f3   :  { %3416 = vmatprep.subr.bf16.mxu1 %v6144_v19  ;;  %v322_v19 = vld [vmem:[#allocation6 + $0x5b8] sm:$0xff] }
 0x1f4   :  { %3333 = vmatpush1.bf16.msra.mxu0 %v6389_v18  ;;  %v318_v18 = vld [vmem:[#allocation6 + $0x598] sm:$0xff] }
 0x1f5   :  { %3334 = vmatprep.subr.bf16.mxu0 %v6398_v21  ;;  %v596_v21 = vrot.slane %v7828_v8, %v7831_v9 }
 0x1f6   :  { %3417 = vmatpush1.bf16.msra.mxu1 %v6143_v54  ;;  %v6200_v54 = vcombine.high %v318_v18, %v322_v19 }
 0x1f7   :  { %3427 = vmatprep.subr.bf16.mxu1 %v6152_v55  ;;  %v6454_v55 = vcombine.high %v573_v24, %v577_v25  ;;  %v2931_v32 = vadd.f32 %v7810_v53, %v596_v21  ;;  %v6913_v21 = vld [vmem:[#allocation9 + $0x84] ss:$16 sps:$4 sm:$0xff]  }
 0x1f8   :  { %3335 = vmatpush1.bf16.msra.mxu0 %v6397_v28  ;;  %v2929_v28 = vadd.f32 %v7808_v48, %v592_v15  ;;  %v370_v15 = vld [vmem:[#allocation6 + $0x738] sm:$0xff] }
 0x1f9   :  { %3345 = vmatprep.subr.bf16.mxu0 %v6406_v30  ;;  %3419 = vmatmul.mubr.bf16.vlgmr.msra.gmra.mrb[8].mxu1 %v7777_v17  ;;  %v6167_v17 = vcombine.low %v286_v40, %v290_v41  ;;  %v326_v30 = vld [vmem:[#allocation6 + $0x5d8] sm:$0xff] }
 0x1fa   :  { %3428 = vmatpush1.bf16.msra.mxu1 %v6151_v36  ;;  %3459 = vmatprep.mubr.bf16.mxu1 %v7771_v62  ;;  %v6184_v62 = vcombine.high %v302_v61, %v306_v63  ;;  %v585_v36 = vld [vmem:[#allocation6 + $0xdf0] sm:$0xff]  ;;  %v6208_v48 = vcombine.high %v326_v30, %v330_v31  ;;  %v6904_v63 = vld [vmem:[#allocation9 + $0x24] ss:$16 sps:$4 sm:$0xff]  }
 0x1fb   :  { %3337 = vmatmul.mubr.bf16.vlgmr.msra.gmra.mrb[4].mxu0 %v7795_v34  ;;  %3429 = vmatprep.subr.bf16.mxu1 %v6160_v38  ;;  %v6461_v47 = vcombine.low %v581_v35, %v585_v36  ;;  %v374_v24 = vld [vmem:[#allocation6 + $0x758] sm:$0xff] }
 0x1fc   :  { %3346 = vmatpush1.bf16.msra.mxu0 %v6405_v37  ;;  %3377 = vmatprep.mubr.bf16.mxu0 %v7610_v49  ;;  %v378_v25 = vld [vmem:[#allocation6 + $0x778] sm:$0xff] }
 0x1fd   :  { %3347 = vmatprep.subr.bf16.mxu0 %v6414_v39  ;;  %v6199_v39 = vcombine.low %v318_v18, %v322_v19  ;;  %v6908_v18 = vld [vmem:[#allocation9 + $0x60] ss:$16 sps:$4 sm:$0xff]  }
 0x1fe   :  { %3430 = vmatpush1.bf16.msra.mxu1 %v6159_v20  ;;  %v6462_v20 = vcombine.high %v581_v35, %v585_v36  ;;  %v6919_v35 = vld [vmem:[#allocation9 + $0xc4] ss:$16 sps:$4 sm:$0xff]  }
 0x1ff   :  { %3431 = vmatprep.subr.bf16.mxu1 %v6168_v44  ;;  %v338_v44 = vld [vmem:[#allocation6 + $0x638] sm:$0xff] }
 0x200   :  { %3348 = vmatpush1.bf16.msra.mxu0 %v6413_v59  ;;  %v334_v59 = vld [vmem:[#allocation6 + $0x618] sm:$0xff] }
 0x201   :  { %3349 = vmatprep.subr.bf16.mxu0 %v6422_v46  ;;  %v6207_v46 = vcombine.low %v326_v30, %v330_v31  ;;  %v6216_v50 = vcombine.high %v334_v59, %v338_v44  ;;  %v386_v30 = vld [vmem:[#allocation6 + $0x7b8] sm:$0xff]  ;;  %v6255_v31 = vcombine.low %v374_v24, %v378_v25 }
 0x202   :  { %3432 = vmatpush1.bf16.msra.mxu1 %v6167_v17  ;;  %v342_v17 = vld [vmem:[#allocation6 + $0x658] sm:$0xff] }
 0x203   :  { %3433 = vmatprep.subr.bf16.mxu1 %v6176_v57  ;;  %v6215_v57 = vcombine.low %v334_v59, %v338_v44  ;;  %v390_v36 = vld [vmem:[#allocation6 + $0x7d8] sm:$0xff] }
 0x204   :  { %3350 = vmatpush1.bf16.msra.mxu0 %v6421_v56  ;;  %v346_v56 = vld [vmem:[#allocation6 + $0x678] sm:$0xff] }
 0x205   :  { %3351 = vmatprep.subr.bf16.mxu0 %v6430_v60  ;;  %v6899_v60 = vld [vmem:[#allocation9] ss:$16 sps:$4 sm:$0xff]   ;;  %v6224_v61 = vcombine.high %v342_v17, %v346_v56 }
 0x206   :  { %3434 = vmatpush1.bf16.msra.mxu1 %v6175_v2  ;;  %v6920_v59 = vld [vmem:[#allocation9 + $0xe0] ss:$16 sps:$4 sm:$0xff]  }
 0x207   :  { %3435 = vmatprep.subr.bf16.mxu1 %v6184_v62  ;;  %v6902_v62 = vld [vmem:[#allocation9 + $0x20] ss:$16 sps:$4 sm:$0xff]  }
 0x208   :  { %3352 = vmatpush1.bf16.msra.mxu0 %v6429_v3  ;;  %v6223_v3 = vcombine.low %v342_v17, %v346_v56  ;;  %v6928_v17 = vld [vmem:[#allocation9 + $0x124] ss:$16 sps:$4 sm:$0xff]  }
 0x209   :  { %3353 = vmatprep.subr.bf16.mxu0 %v6438_v5  ;;  %v6232_v5 = vcombine.high %v350_v0, %v354_v1  ;;  %v414_v56 = vld [vmem:[#allocation6 + $0x898] sm:$0xff] }
 0x20a   :  { %3436 = vmatpush1.bf16.msra.mxu1 %v6183_v12  ;;  %v6905_v12 = vld [vmem:[#allocation9 + $0x40] ss:$16 sps:$4 sm:$0xff]   ;;  %v6931_v0 = vld [vmem:[#allocation9 + $0x144] ss:$16 sps:$4 sm:$0xff]  }
 0x20b   :  { %3437 = vmatprep.subr.bf16.mxu1 %v6192_v14  ;;  %v366_v14 = vld [vmem:[#allocation6 + $0x718] sm:$0xff] }
 0x20c   :  { %3354 = vmatpush1.bf16.msra.mxu0 %v6437_v13  ;;  %v6240_v13 = vcombine.high %v358_v7, %v362_v10  ;;  %v6248_v19 = vcombine.high %v366_v14, %v370_v15  ;;  %v422_v1 = vld [vmem:[#allocation6 + $0x8d8] sm:$0xff] }
 0x20d   :  { %3355 = vmatprep.subr.bf16.mxu0 %v6446_v16  ;;  %v6239_v16 = vcombine.low %v358_v7, %v362_v10  ;;  %v430_v7 = vld [vmem:[#allocation6 + $0x918] sm:$0xff] }
 0x20e   :  { %v3051_v33 = vpop.f32.mrb[0].mxu0  ;;  %3438 = vmatpush1.bf16.msra.mxu1 %v6191_v26  ;;  %v6247_v26 = vcombine.low %v366_v14, %v370_v15  ;;  %v434_v10 = vld [vmem:[#allocation6 + $0x938] sm:$0xff] }
 0x20f   :  { %v7839_v37 = vadd.f32 %v3051_v33, %v2929_v28  ;;  %v3053_v38 = vpop.f32.mrb[1].mxu0  ;;  %3439 = vmatprep.subr.bf16.mxu1 %v6200_v54  ;;  %v6256_v54 = vcombine.high %v374_v24, %v378_v25  ;;  %v6916_v28 = vld [vmem:[#allocation9 + $0xa4] ss:$16 sps:$4 sm:$0xff]   ;;  %v6311_v15 = vcombine.low %v430_v7, %v434_v10 }
 0x210   :  { %v6789_v40 = vadd.f32 %v3053_v38, %v2931_v32  ;;  %v3055_v41 = vpop.f32.mrb[2].mxu0  ;;  %3356 = vmatpush1.bf16.msra.mxu0 %v6445_v27  ;;  %v6911_v27 = vld [vmem:[#allocation9 + $0x80] ss:$16 sps:$4 sm:$0xff]  }
 0x211   :  { %v3056_v43 = vpop.f32.mrb[3].mxu0  ;;  %3357 = vmatprep.subr.bf16.mxu0 %v6454_v55  ;;  %v382_v55 = vld [vmem:[#allocation6 + $0x798] sm:$0xff] }
 0x212   :  { %v3551_v53 = vmul.f32 0.2, %v6789_v40  ;;  %3440 = vmatpush1.bf16.msra.mxu1 %v6199_v39  ;;  %v6914_v32 = vld [vmem:[#allocation9 + $0xa0] ss:$16 sps:$4 sm:$0xff]   ;;  %v6264_v33 = vcombine.high %v382_v55, %v386_v30  ;;  %v6263_v39 = vcombine.low %v382_v55, %v386_v30 }
 0x213   :  { %3441 = vmatprep.subr.bf16.mxu1 %v6208_v48  ;;  %v394_v38 = vld [vmem:[#allocation6 + $0x7f8] sm:$0xff] }
 0x214   :  { %3358 = vmatpush1.bf16.msra.mxu0 %v6453_v42  ;;  %v3559_v52 = vmax.f32 %v6789_v40, %v3551_v53  ;;  %v6917_v40 = vld [vmem:[#allocation9 + $0xc0] ss:$16 sps:$4 sm:$0xff]   ;;  %v6272_v41 = vcombine.high %v390_v36, %v394_v38  ;;  %v6922_v42 = vld [vmem:[#allocation9 + $0xe4] ss:$16 sps:$4 sm:$0xff]  }
 0x215   :  { %3359 = vmatprep.subr.bf16.mxu0 %v6462_v20  ;;  %v398_v48 = vld [vmem:[#allocation6 + $0x818] sm:$0xff]  ;;  %v6271_v20 = vcombine.low %v390_v36, %v394_v38 }
 0x216   :  { %3442 = vmatpush1.bf16.msra.mxu1 %v6207_v46  ;;  %v7841_v2 = vpack.c.bf16 %v3559_v52, %v3559_v52  ;;  %v402_v43 = vld [vmem:[#allocation6 + $0x838] sm:$0xff] }
 0x217   :  { %3443 = vmatprep.subr.bf16.mxu1 %v6216_v50  ;;  %v6280_v44 = vcombine.high %v398_v48, %v402_v43  ;;  %v6925_v53 = vld [vmem:[#allocation9 + $0x104] ss:$16 sps:$4 sm:$0xff]   ;;  %v6279_v50 = vcombine.low %v398_v48, %v402_v43 }
 0x218   :  { %3360 = vmatpush1.bf16.msra.mxu0 %v6461_v47  ;;  %v406_v46 = vld [vmem:[#allocation6 + $0x858] sm:$0xff] }
 0x219   :  { %5132 = vmatprep.subr.bf16.mxu0 %v6901_v51  ;;  %v410_v47 = vld [vmem:[#allocation6 + $0x878] sm:$0xff] }
 0x21a   :  { %3444 = vmatpush1.bf16.msra.mxu1 %v6215_v57  ;;  %v6923_v51 = vld [vmem:[#allocation9 + $0x100] ss:$16 sps:$4 sm:$0xff]   ;;  %v6288_v52 = vcombine.high %v406_v46, %v410_v47  ;;  %v6949_v48 = vld [vmem:[#allocation9 + $0x204] ss:$16 sps:$4 sm:$0xff]  }
 0x21b   :  { %3378 = vmatmul.mubr.bf16.vlgmr.msra.gmra.mrb[4].mxu0 %v7812_v23  ;;  %3445 = vmatprep.subr.bf16.mxu1 %v6224_v61  ;;  %v6910_v23 = vld [vmem:[#allocation9 + $0x64] ss:$16 sps:$4 sm:$0xff]   ;;  %v6926_v61 = vld [vmem:[#allocation9 + $0x120] ss:$16 sps:$4 sm:$0xff]  }
 0x21c   :  { %5133 = vmatpush1.bf16.msra.mxu0 %v6899_v60  ;;  %5164 = vmatprep.mubr.bf16.mxu0 %v7841_v2  ;;  %v418_v57 = vld [vmem:[#allocation6 + $0x8b8] sm:$0xff]  ;;  %v6287_v60 = vcombine.low %v406_v46, %v410_v47 }
 0x21d   :  { %5134 = vmatprep.subr.bf16.mxu0 %v6904_v63  ;;  %v6296_v63 = vcombine.high %v414_v56, %v418_v57  ;;  %v442_v14 = vld [vmem:[#allocation6 + $0x978] sm:$0xff] }
 0x21e   :  { %3446 = vmatpush1.bf16.msra.mxu1 %v6223_v3  ;;  %v426_v3 = vld [vmem:[#allocation6 + $0x8f8] sm:$0xff] }
 0x21f   :  { %3447 = vmatprep.subr.bf16.mxu1 %v6232_v5  ;;  %v6929_v5 = vld [vmem:[#allocation9 + $0x140] ss:$16 sps:$4 sm:$0xff]   ;;  %v6952_v47 = vld [vmem:[#allocation9 + $0x224] ss:$16 sps:$4 sm:$0xff]  }
 0x220   :  { %5135 = vmatpush1.bf16.msra.mxu0 %v6902_v62  ;;  %v6295_v62 = vcombine.low %v414_v56, %v418_v57  ;;  %v450_v24 = vld [vmem:[#allocation6 + $0x9b8] sm:$0xff] }
 0x221   :  { %5136 = vmatprep.subr.bf16.mxu0 %v6907_v6  ;;  %v6304_v6 = vcombine.high %v422_v1, %v426_v3  ;;  %v458_v55 = vld [vmem:[#allocation6 + $0x9f8] sm:$0xff] }
 0x222   :  { %3448 = vmatpush1.bf16.msra.mxu1 %v6231_v11  ;;  %v6932_v11 = vld [vmem:[#allocation9 + $0x160] ss:$16 sps:$4 sm:$0xff]   ;;  %v6955_v56 = vld [vmem:[#allocation9 + $0x244] ss:$16 sps:$4 sm:$0xff]  }
 0x223   :  { %3449 = vmatprep.subr.bf16.mxu1 %v6240_v13  ;;  %v6937_v13 = vld [vmem:[#allocation9 + $0x184] ss:$16 sps:$4 sm:$0xff]  }
 0x224   :  { %5137 = vmatpush1.bf16.msra.mxu0 %v6905_v12  ;;  %v6312_v12 = vcombine.high %v430_v7, %v434_v10  ;;  %v462_v36 = vld [vmem:[#allocation6 + $0xa18] sm:$0xff] }
 0x225   :  { %5138 = vmatprep.subr.bf16.mxu0 %v6910_v23  ;;  %v438_v23 = vld [vmem:[#allocation6 + $0x958] sm:$0xff] }
 0x226   :  { %3450 = vmatpush1.bf16.msra.mxu1 %v6239_v16  ;;  %v6935_v16 = vld [vmem:[#allocation9 + $0x180] ss:$16 sps:$4 sm:$0xff]   ;;  %v6319_v25 = vcombine.low %v438_v23, %v442_v14  ;;  %v6961_v7 = vld [vmem:[#allocation9 + $0x284] ss:$16 sps:$4 sm:$0xff]  }
 0x227   :  { %3451 = vmatprep.subr.bf16.mxu1 %v6248_v19  ;;  %v6940_v19 = vld [vmem:[#allocation9 + $0x1a4] ss:$16 sps:$4 sm:$0xff]  }
 0x228   :  { %5139 = vmatpush1.bf16.msra.mxu0 %v6908_v18  ;;  %v6320_v18 = vcombine.high %v438_v23, %v442_v14  ;;  %v466_v38 = vld [vmem:[#allocation6 + $0xa38] sm:$0xff] }
 0x229   :  { %5140 = vmatprep.subr.bf16.mxu0 %v6913_v21  ;;  %v446_v21 = vld [vmem:[#allocation6 + $0x998] sm:$0xff] }
 0x22a   :  { %3452 = vmatpush1.bf16.msra.mxu1 %v6247_v26  ;;  %v6938_v26 = vld [vmem:[#allocation9 + $0x1a0] ss:$16 sps:$4 sm:$0xff]   ;;  %v6327_v30 = vcombine.low %v446_v21, %v450_v24  ;;  %v6964_v23 = vld [vmem:[#allocation9 + $0x2a4] ss:$16 sps:$4 sm:$0xff]  }
 0x22b   :  { %3453 = vmatprep.subr.bf16.mxu1 %v6256_v54  ;;  %v6943_v54 = vld [vmem:[#allocation9 + $0x1c4] ss:$16 sps:$4 sm:$0xff]  }
 0x22c   :  { %5141 = vmatpush1.bf16.msra.mxu0 %v6911_v27  ;;  %v6328_v27 = vcombine.high %v446_v21, %v450_v24  ;;  %v470_v43 = vld [vmem:[#allocation6 + $0xa58] sm:$0xff] }
 0x22d   :  { %5142 = vmatprep.subr.bf16.mxu0 %v6916_v28  ;;  %v454_v28 = vld [vmem:[#allocation6 + $0x9d8] sm:$0xff] }
 0x22e   :  { %3454 = vmatpush1.bf16.msra.mxu1 %v6255_v31  ;;  %v6941_v31 = vld [vmem:[#allocation9 + $0x1c0] ss:$16 sps:$4 sm:$0xff]   ;;  %v6967_v21 = vld [vmem:[#allocation9 + $0x2c4] ss:$16 sps:$4 sm:$0xff]  }
 0x22f   :  { %3455 = vmatprep.subr.bf16.mxu1 %v6264_v33  ;;  %v3550_v33 = vmul.f32 0.2, %v7839_v37  ;;  %v486_v57 = vld [vmem:[#allocation6 + $0xad8] sm:$0xff] }
 0x230   :  { %5143 = vmatpush1.bf16.msra.mxu0 %v6914_v32  ;;  %v6336_v32 = vcombine.high %v454_v28, %v458_v55  ;;  %v502_v10 = vld [vmem:[#allocation6 + $0xb58] sm:$0xff] }
 0x231   :  { %5144 = vmatprep.subr.bf16.mxu0 %v6919_v35  ;;  %v6946_v35 = vld [vmem:[#allocation9 + $0x1e4] ss:$16 sps:$4 sm:$0xff]  }
 0x232   :  { %3456 = vmatpush1.bf16.msra.mxu1 %v6263_v39  ;;  %v6335_v39 = vcombine.low %v454_v28, %v458_v55  ;;  %v510_v14 = vld [vmem:[#allocation6 + $0xb98] sm:$0xff] }
 0x233   :  { %3457 = vmatprep.subr.bf16.mxu1 %v6272_v41  ;;  %v6344_v41 = vcombine.high %v462_v36, %v466_v38  ;;  %v518_v24 = vld [vmem:[#allocation6 + $0xbd8] sm:$0xff] }
 0x234   :  { %5145 = vmatpush1.bf16.msra.mxu0 %v6917_v40  ;;  %v6944_v40 = vld [vmem:[#allocation9 + $0x1e0] ss:$16 sps:$4 sm:$0xff]   ;;  %v6970_v28 = vld [vmem:[#allocation9 + $0x2e4] ss:$16 sps:$4 sm:$0xff]  }
 0x235   :  { %5146 = vmatprep.subr.bf16.mxu0 %v6922_v42  ;;  %v3558_v42 = vmax.f32 %v7839_v37, %v3550_v33  ;;  %v526_v55 = vld [vmem:[#allocation6 + $0xc18] sm:$0xff] }
 0x236   :  { %3458 = vmatpush1.bf16.msra.mxu1 %v6271_v20  ;;  %v474_v20 = vld [vmem:[#allocation6 + $0xa78] sm:$0xff] }
 0x237   :  { %3468 = vmatprep.subr.bf16.mxu1 %v6280_v44  ;;  %v6947_v44 = vld [vmem:[#allocation9 + $0x200] ss:$16 sps:$4 sm:$0xff]   ;;  %v7849_v46 = vpack.c.bf16 %v3558_v42, %v3558_v42  ;;  %v6351_v37 = vcombine.low %v470_v43, %v474_v20  ;;  %v6976_v42 = vld [vmem:[#allocation9 + $0x324] ss:$16 sps:$4 sm:$0xff]  }
 0x238   :  { %5147 = vmatpush1.bf16.msra.mxu0 %v6920_v59  ;;  %v6343_v59 = vcombine.low %v462_v36, %v466_v38  ;;  %v534_v36 = vld [vmem:[#allocation6 + $0xc58] sm:$0xff] }
 0x239   :  { %5148 = vmatprep.subr.bf16.mxu0 %v6925_v53  ;;  %3460 = vmatmul.mubr.bf16.vlgmr.msra.gmra.mrb[8].mxu1 %v7783_v22  ;;  %v6934_v22 = vld [vmem:[#allocation9 + $0x164] ss:$16 sps:$4 sm:$0xff]   ;;  %v6352_v53 = vcombine.high %v470_v43, %v474_v20 }
 0x23a   :  { %3469 = vmatpush1.bf16.msra.mxu1 %v6279_v50  ;;  %3500 = vmatprep.mubr.bf16.mxu1 %v7787_v29  ;;  %v6303_v29 = vcombine.low %v422_v1, %v426_v3  ;;  %v478_v50 = vld [vmem:[#allocation6 + $0xa98] sm:$0xff] }
 0x23b   :  { %3470 = vmatprep.subr.bf16.mxu1 %v6288_v52  ;;  %v6950_v52 = vld [vmem:[#allocation9 + $0x220] ss:$16 sps:$4 sm:$0xff]   ;;  %v6958_v1 = vld [vmem:[#allocation9 + $0x264] ss:$16 sps:$4 sm:$0xff]  }
 0x23c   :  { %5149 = vmatpush1.bf16.msra.mxu0 %v6923_v51  ;;  %v482_v51 = vld [vmem:[#allocation6 + $0xab8] sm:$0xff] }
 0x23d   :  { %5150 = vmatprep.subr.bf16.mxu0 %v6928_v17  ;;  %v6360_v17 = vcombine.high %v478_v50, %v482_v51  ;;  %v494_v3 = vld [vmem:[#allocation6 + $0xb18] sm:$0xff] }
 0x23e   :  { %3471 = vmatpush1.bf16.msra.mxu1 %v6287_v60  ;;  %v490_v60 = vld [vmem:[#allocation6 + $0xaf8] sm:$0xff] }
 0x23f   :  { %3472 = vmatprep.subr.bf16.mxu1 %v6296_v63  ;;  %v6953_v63 = vld [vmem:[#allocation9 + $0x240] ss:$16 sps:$4 sm:$0xff]  }
 0x240   :  { %5151 = vmatpush1.bf16.msra.mxu0 %v6926_v61  ;;  %v6359_v61 = vcombine.low %v478_v50, %v482_v51  ;;  %v538_v38 = vld [vmem:[#allocation6 + $0xc78] sm:$0xff] }
 0x241   :  { %5152 = vmatprep.subr.bf16.mxu0 %v6931_v0  ;;  %v6368_v0 = vcombine.high %v486_v57, %v490_v60  ;;  %v546_v43 = vld [vmem:[#allocation6 + $0xcb8] sm:$0xff]  ;;  %v6415_v20 = vcombine.low %v534_v36, %v538_v38 }
 0x242   :  { %3473 = vmatpush1.bf16.msra.mxu1 %v6295_v62  ;;  %v498_v62 = vld [vmem:[#allocation6 + $0xb38] sm:$0xff] }
 0x243   :  { %3474 = vmatprep.subr.bf16.mxu1 %v6304_v6  ;;  %v6956_v6 = vld [vmem:[#allocation9 + $0x260] ss:$16 sps:$4 sm:$0xff]  }
 0x244   :  { %5153 = vmatpush1.bf16.msra.mxu0 %v6929_v5  ;;  %v6367_v5 = vcombine.low %v486_v57, %v490_v60  ;;  %v554_v50 = vld [vmem:[#allocation6 + $0xcf8] sm:$0xff] }
 0x245   :  { %5154 = vmatprep.subr.bf16.mxu0 %v6934_v22  ;;  %v6376_v22 = vcombine.high %v494_v3, %v498_v62  ;;  %v6980_v57 = vld [vmem:[#allocation9 + $0x360] ss:$16 sps:$4 sm:$0xff]  }
 0x246   :  { %3475 = vmatpush1.bf16.msra.mxu1 %v6303_v29  ;;  %v506_v29 = vld [vmem:[#allocation6 + $0xb78] sm:$0xff] }
 0x247   :  { %3476 = vmatprep.subr.bf16.mxu1 %v6312_v12  ;;  %v6959_v12 = vld [vmem:[#allocation9 + $0x280] ss:$16 sps:$4 sm:$0xff]  }
 0x248   :  { %5155 = vmatpush1.bf16.msra.mxu0 %v6932_v11  ;;  %v6375_v11 = vcombine.low %v494_v3, %v498_v62  ;;  %v603_v62 = vsub.s32 3, %v7823_v58 }
 0x249   :  { %5156 = vmatprep.subr.bf16.mxu0 %v6937_v13  ;;  %v6384_v13 = vcombine.high %v502_v10, %v506_v29 }
 0x24a   :  { %3477 = vmatpush1.bf16.msra.mxu1 %v6311_v15  ;;  %v514_v15 = vld [vmem:[#allocation6 + $0xbb8] sm:$0xff] }
 0x24b   :  { %3478 = vmatprep.subr.bf16.mxu1 %v6320_v18  ;;  %v6962_v18 = vld [vmem:[#allocation9 + $0x2a0] ss:$16 sps:$4 sm:$0xff]  }
 0x24c   :  { %5157 = vmatpush1.bf16.msra.mxu0 %v6935_v16  ;;  %v6383_v16 = vcombine.low %v502_v10, %v506_v29  ;;  %v578_v10 = vld [vmem:[#allocation6 + $0xdb8] sm:$0xff] }
 0x24d   :  { %5158 = vmatprep.subr.bf16.mxu0 %v6940_v19  ;;  %v6392_v19 = vcombine.high %v510_v14, %v514_v15 }
 0x24e   :  { %3479 = vmatpush1.bf16.msra.mxu1 %v6319_v25  ;;  %v522_v25 = vld [vmem:[#allocation6 + $0xbf8] sm:$0xff] }
 0x24f   :  { %3480 = vmatprep.subr.bf16.mxu1 %v6328_v27  ;;  %v6965_v27 = vld [vmem:[#allocation9 + $0x2c0] ss:$16 sps:$4 sm:$0xff]  }
 0x250   :  { %5159 = vmatpush1.bf16.msra.mxu0 %v6938_v26  ;;  %v6391_v26 = vcombine.low %v510_v14, %v514_v15  ;;  %v6991_v15 = vld [vmem:[#allocation9 + $0x3c4] ss:$16 sps:$4 sm:$0xff]  }
 0x251   :  { %5160 = vmatprep.subr.bf16.mxu0 %v6943_v54  ;;  %v6400_v54 = vcombine.high %v518_v24, %v522_v25 }
 0x252   :  { %3481 = vmatpush1.bf16.msra.mxu1 %v6327_v30  ;;  %v530_v30 = vld [vmem:[#allocation6 + $0xc38] sm:$0xff] }
 0x253   :  { %3482 = vmatprep.subr.bf16.mxu1 %v6336_v32  ;;  %v6968_v32 = vld [vmem:[#allocation9 + $0x2e0] ss:$16 sps:$4 sm:$0xff]   ;;  %v6408_v33 = vcombine.high %v526_v55, %v530_v30 }
 0x254   :  { %5161 = vmatpush1.bf16.msra.mxu0 %v6941_v31  ;;  %v6399_v31 = vcombine.low %v518_v24, %v522_v25 }
 0x255   :  { %5162 = vmatprep.subr.bf16.mxu0 %v6946_v35  ;;  %v6973_v35 = vld [vmem:[#allocation9 + $0x304] ss:$16 sps:$4 sm:$0xff]  }
 0x256   :  { %3483 = vmatpush1.bf16.msra.mxu1 %v6335_v39  ;;  %v6407_v39 = vcombine.low %v526_v55, %v530_v30  ;;  %v6994_v30 = vld [vmem:[#allocation9 + $0x3e4] ss:$16 sps:$4 sm:$0xff]  }
 0x257   :  { %3484 = vmatprep.subr.bf16.mxu1 %v6344_v41  ;;  %v6416_v41 = vcombine.high %v534_v36, %v538_v38 }
 0x258   :  { %5163 = vmatpush1.bf16.msra.mxu0 %v6944_v40  ;;  %v6971_v40 = vld [vmem:[#allocation9 + $0x300] ss:$16 sps:$4 sm:$0xff]  }
 0x259   :  { %5173 = vmatprep.subr.bf16.mxu0 %v6949_v48  ;;  %v542_v48 = vld [vmem:[#allocation6 + $0xc98] sm:$0xff] }
 0x25a   :  { %3485 = vmatpush1.bf16.msra.mxu1 %v6343_v59  ;;  %v6974_v59 = vld [vmem:[#allocation9 + $0x320] ss:$16 sps:$4 sm:$0xff]   ;;  %v6423_v51 = vcombine.low %v542_v48, %v546_v43 }
 0x25b   :  { %5165 = vmatmul.mubr.bf16.vlgmr.msra.gmra.mrb[8].mxu0 %v7849_v46  ;;  %3486 = vmatprep.subr.bf16.mxu1 %v6352_v53  ;;  %v6979_v53 = vld [vmem:[#allocation9 + $0x344] ss:$16 sps:$4 sm:$0xff]  }
 0x25c   :  { %5174 = vmatpush1.bf16.msra.mxu0 %v6947_v44  ;;  %v6424_v44 = vcombine.high %v542_v48, %v546_v43  ;;  %v7019_v48 = vld [vmem:[#allocation9 + $0x400] ss:$16 sps:$4 sm:$0xff]   ;;  %v7384_v43 = vld [vmem:[#allocation3 + $0x18] ss:$0 sps:$4 sm:$0xff]  }
 0x25d   :  { %5175 = vmatprep.subr.bf16.mxu0 %v6952_v47  ;;  %v550_v47 = vld [vmem:[#allocation6 + $0xcd8] sm:$0xff] }
 0x25e   :  { %3487 = vmatpush1.bf16.msra.mxu1 %v6351_v37  ;;  %v6977_v37 = vld [vmem:[#allocation9 + $0x340] ss:$16 sps:$4 sm:$0xff]  }
 0x25f   :  { %3488 = vmatprep.subr.bf16.mxu1 %v6360_v17  ;;  %v558_v17 = vld [vmem:[#allocation6 + $0xd18] sm:$0xff] }
 0x260   :  { %5176 = vmatpush1.bf16.msra.mxu0 %v6950_v52  ;;  %v6432_v52 = vcombine.high %v550_v47, %v554_v50 }
 0x261   :  { %5177 = vmatprep.subr.bf16.mxu0 %v6955_v56  ;;  %v562_v56 = vld [vmem:[#allocation6 + $0xd38] sm:$0xff] }
 0x262   :  { %3489 = vmatpush1.bf16.msra.mxu1 %v6359_v61  ;;  %v6440_v60 = vcombine.high %v558_v17, %v562_v56  ;;  %v6985_v61 = vld [vmem:[#allocation9 + $0x384] ss:$16 sps:$4 sm:$0xff]   ;;  %v6439_v3 = vcombine.low %v558_v17, %v562_v56  ;;  %v7009_v17 = vld [vmem:[#allocation9 + $0x8c] ss:$16 sps:$4 sm:$0xff]  }
 0x263   :  { %3490 = vmatprep.subr.bf16.mxu1 %v6368_v0  ;;  %v570_v0 = vld [vmem:[#allocation6 + $0xd78] sm:$0xff] }
 0x264   :  { %5178 = vmatpush1.bf16.msra.mxu0 %v6953_v63  ;;  %v566_v63 = vld [vmem:[#allocation6 + $0xd58] sm:$0xff] }
 0x265   :  { %5179 = vmatprep.subr.bf16.mxu0 %v6958_v1  ;;  %v599_v1 = vsub.s32 2, %v7823_v58  ;;  %v7045_v56 = vld [vmem:[#allocation9 + $0x484] ss:$16 sps:$4 sm:$0xff]  }
 0x266   :  { %3491 = vmatpush1.bf16.msra.mxu1 %v6367_v5  ;;  %v6983_v5 = vld [vmem:[#allocation9 + $0x380] ss:$16 sps:$4 sm:$0xff]  }
 0x267   :  { %3492 = vmatprep.subr.bf16.mxu1 %v6376_v22  ;;  %v6988_v22 = vld [vmem:[#allocation9 + $0x3a4] ss:$16 sps:$4 sm:$0xff]   ;;  %v600_v29 = vrot.slane %v7828_v8, %v599_v1 }
 0x268   :  { %5180 = vmatpush1.bf16.msra.mxu0 %v6956_v6  ;;  %v6448_v6 = vcombine.high %v566_v63, %v570_v0 }
 0x269   :  { %5181 = vmatprep.subr.bf16.mxu0 %v6961_v7  ;;  %v574_v7 = vld [vmem:[#allocation6 + $0xd98] sm:$0xff] }
 0x26a   :  { %3493 = vmatpush1.bf16.msra.mxu1 %v6375_v11  ;;  %v604_v11 = vrot.slane %v7828_v8, %v603_v62  ;;  %v6989_v8 = vld [vmem:[#allocation9 + $0x3c0] ss:$16 sps:$4 sm:$0xff]  }
 0x26b   :  { %3494 = vmatprep.subr.bf16.mxu1 %v6384_v13  ;;  %v6986_v13 = vld [vmem:[#allocation9 + $0x3a0] ss:$16 sps:$4 sm:$0xff]  }
 0x26c   :  { %5182 = vmatpush1.bf16.msra.mxu0 %v6959_v12  ;;  %v6447_v12 = vcombine.low %v566_v63, %v570_v0  ;;  %v7010_v63 = vld [vmem:[#allocation9 + $0xa8] ss:$16 sps:$4 sm:$0xff]   ;;  %v7015_v0 = vld [vmem:[#allocation9 + $0xcc] ss:$16 sps:$4 sm:$0xff]  }
 0x26d   :  { %5183 = vmatprep.subr.bf16.mxu0 %v6964_v23  ;;  %v6456_v23 = vcombine.high %v574_v7, %v578_v10 }
 0x26e   :  { %3495 = vmatpush1.bf16.msra.mxu1 %v6383_v16  ;;  %v582_v16 = vld [vmem:[#allocation6 + $0xdd8] sm:$0xff] }
 0x26f   :  { %3496 = vmatprep.subr.bf16.mxu1 %v6392_v19 }
 0x270   :  { %5184 = vmatpush1.bf16.msra.mxu0 %v6962_v18  ;;  %v586_v18 = vld [vmem:[#allocation6 + $0xdf8] sm:$0xff] }
 0x271   :  { %5185 = vmatprep.subr.bf16.mxu0 %v6967_v21 }
 0x272   :  { %3497 = vmatpush1.bf16.msra.mxu1 %v6391_v26  ;;  %v6455_v26 = vcombine.low %v574_v7, %v578_v10  ;;  %v7055_v7 = vld [vmem:[#allocation9 + $0x4c0] ss:$16 sps:$4 sm:$0xff]   ;;  %v7063_v10 = vld [vmem:[#allocation9 + $0x4e4] ss:$16 sps:$4 sm:$0xff]  }
 0x273   :  { %3498 = vmatprep.subr.bf16.mxu1 %v6400_v54  ;;  %v6464_v54 = vcombine.high %v582_v16, %v586_v18 }
 0x274   :  { %5186 = vmatpush1.bf16.msra.mxu0 %v6965_v27 }
 0x275   :  { %5187 = vmatprep.subr.bf16.mxu0 %v6970_v28 }
 0x276   :  { %3499 = vmatpush1.bf16.msra.mxu1 %v6399_v31 }
 0x277   :  { %3509 = vmatprep.subr.bf16.mxu1 %v6408_v33  ;;  %v6992_v33 = vld [vmem:[#allocation9 + $0x3e0] ss:$16 sps:$4 sm:$0xff]  }
 0x278   :  { %5188 = vmatpush1.bf16.msra.mxu0 %v6968_v32  ;;  %v6463_v32 = vcombine.low %v582_v16, %v586_v18  ;;  %v7075_v16 = vld [vmem:[#allocation9 + $0x524] ss:$16 sps:$4 sm:$0xff]   ;;  %v7028_v18 = vld [vmem:[#allocation9 + $0x128] ss:$16 sps:$4 sm:$0xff]  }
 0x279   :  { %5189 = vmatprep.subr.bf16.mxu0 %v6973_v35  ;;  %3501 = vmatmul.mubr.bf16.vlgmr.msra.gmra.mrb[8].mxu1 %v7795_v34  ;;  %v6982_v34 = vld [vmem:[#allocation9 + $0x364] ss:$16 sps:$4 sm:$0xff]   ;;  %v6997_v35 = vld [vmem:[#allocation9 + $0xc] ss:$16 sps:$4 sm:$0xff]  }
 0x27a   :  { %3510 = vmatpush1.bf16.msra.mxu1 %v6407_v39  ;;  %3541 = vmatprep.mubr.bf16.mxu1 %v7610_v49  ;;  %v6431_v49 = vcombine.low %v550_v47, %v554_v50  ;;  %v7021_v39 = vld [vmem:[#allocation9 + $0x404] ss:$16 sps:$4 sm:$0xff]   ;;  %v7001_v50 = vld [vmem:[#allocation9 + $0x48] ss:$16 sps:$4 sm:$0xff]  }
 0x27b   :  { %3511 = vmatprep.subr.bf16.mxu1 %v6416_v41  ;;  %v7000_v41 = vld [vmem:[#allocation9 + $0x2c] ss:$16 sps:$4 sm:$0xff]   ;;  %v7033_v47 = vld [vmem:[#allocation9 + $0x444] ss:$16 sps:$4 sm:$0xff]  }
 0x27c   :  { %5190 = vmatpush1.bf16.msra.mxu0 %v6971_v40  ;;  %v6995_v40 = vld [vmem:[#allocation9 + $0x8] ss:$16 sps:$4 sm:$0xff]  }
 0x27d   :  { %5191 = vmatprep.subr.bf16.mxu0 %v6976_v42 }
 0x27e   :  { %3512 = vmatpush1.bf16.msra.mxu1 %v6415_v20  ;;  %v7027_v20 = vld [vmem:[#allocation9 + $0x424] ss:$16 sps:$4 sm:$0xff]  }
 0x27f   :  { %3513 = vmatprep.subr.bf16.mxu1 %v6424_v44  ;;  %v7003_v44 = vld [vmem:[#allocation9 + $0x4c] ss:$16 sps:$4 sm:$0xff]  }
 0x280   :  { %5192 = vmatpush1.bf16.msra.mxu0 %v6974_v59  ;;  %v6998_v59 = vld [vmem:[#allocation9 + $0x28] ss:$16 sps:$4 sm:$0xff]  }
 0x281   :  { %5193 = vmatprep.subr.bf16.mxu0 %v6979_v53  ;;  %v7025_v53 = vld [vmem:[#allocation9 + $0x420] ss:$16 sps:$4 sm:$0xff]  }
 0x282   :  { %3514 = vmatpush1.bf16.msra.mxu1 %v6423_v51  ;;  %v7006_v51 = vld [vmem:[#allocation9 + $0x6c] ss:$16 sps:$4 sm:$0xff]  }
 0x283   :  { %3515 = vmatprep.subr.bf16.mxu1 %v6432_v52  ;;  %v7039_v52 = vld [vmem:[#allocation9 + $0x464] ss:$16 sps:$4 sm:$0xff]  }
 0x284   :  { %5194 = vmatpush1.bf16.msra.mxu0 %v6977_v37  ;;  %v7031_v37 = vld [vmem:[#allocation9 + $0x440] ss:$16 sps:$4 sm:$0xff]  }
 0x285   :  { %5195 = vmatprep.subr.bf16.mxu0 %v6982_v34  ;;  %v7004_v34 = vld [vmem:[#allocation9 + $0x68] ss:$16 sps:$4 sm:$0xff]  }
 0x286   :  { %3516 = vmatpush1.bf16.msra.mxu1 %v6431_v49  ;;  %v7007_v49 = vld [vmem:[#allocation9 + $0x88] ss:$16 sps:$4 sm:$0xff]  }
 0x287   :  { %3517 = vmatprep.subr.bf16.mxu1 %v6440_v60  ;;  %v7043_v60 = vld [vmem:[#allocation9 + $0x480] ss:$16 sps:$4 sm:$0xff]  }
 0x288   :  { %5196 = vmatpush1.bf16.msra.mxu0 %v6980_v57  ;;  %v7012_v57 = vld [vmem:[#allocation9 + $0xac] ss:$16 sps:$4 sm:$0xff]  }
 0x289   :  { %5197 = vmatprep.subr.bf16.mxu0 %v6985_v61  ;;  %v7051_v61 = vld [vmem:[#allocation9 + $0x4a4] ss:$16 sps:$4 sm:$0xff]  }
 0x28a   :  { %3518 = vmatpush1.bf16.msra.mxu1 %v6439_v3  ;;  %v7049_v3 = vld [vmem:[#allocation9 + $0x4a0] ss:$16 sps:$4 sm:$0xff]  }
 0x28b   :  { %3519 = vmatprep.subr.bf16.mxu1 %v6448_v6  ;;  %v7013_v6 = vld [vmem:[#allocation9 + $0xc8] ss:$16 sps:$4 sm:$0xff]  }
 0x28c   :  { %5198 = vmatpush1.bf16.msra.mxu0 %v6983_v5  ;;  %v3215_v14 = vpop.f32.mrb[4].mxu1  ;;  %v7057_v5 = vld [vmem:[#allocation9 + $0x4c4] ss:$16 sps:$4 sm:$0xff]  }
 0x28d   :  { %5199 = vmatprep.subr.bf16.mxu0 %v6988_v22  ;;  %v6790_v19 = vadd.f32 %v3215_v14, %v600_v29  ;;  %v3217_v21 = vpop.f32.mrb[5].mxu1  ;;  %v7018_v22 = vld [vmem:[#allocation9 + $0xec] ss:$16 sps:$4 sm:$0xff]   ;;  %v7016_v29 = vld [vmem:[#allocation9 + $0xe8] ss:$16 sps:$4 sm:$0xff]  }
 0x28e   :  { %v6791_v24 = vadd.f32 %v3217_v21, %v604_v11  ;;  %v3219_v25 = vpop.f32.mrb[6].mxu1  ;;  %3520 = vmatpush1.bf16.msra.mxu1 %v6447_v12  ;;  %v7024_v11 = vld [vmem:[#allocation9 + $0x10c] ss:$16 sps:$4 sm:$0xff]   ;;  %v7061_v12 = vld [vmem:[#allocation9 + $0x4e0] ss:$16 sps:$4 sm:$0xff]  }
 0x28f   :  { %v3220_v27 = vpop.f32.mrb[7].mxu1  ;;  %3521 = vmatprep.subr.bf16.mxu1 %v6456_v23  ;;  %v3552_v28 = vmul.f32 0.2, %v6790_v19  ;;  %v7022_v23 = vld [vmem:[#allocation9 + $0x108] ss:$16 sps:$4 sm:$0xff]  }
 0x290   :  { %5200 = vmatpush1.bf16.msra.mxu0 %v6986_v13  ;;  %v3553_v55 = vmul.f32 0.2, %v6791_v24  ;;  %v7069_v13 = vld [vmem:[#allocation9 + $0x504] ss:$16 sps:$4 sm:$0xff]   ;;  %v7030_v14 = vld [vmem:[#allocation9 + $0x12c] ss:$16 sps:$4 sm:$0xff]  }
 0x291   :  { %5201 = vmatprep.subr.bf16.mxu0 %v6991_v15  ;;  %v3560_v36 = vmax.f32 %v6790_v19, %v3552_v28  ;;  %v7067_v15 = vld [vmem:[#allocation9 + $0x500] ss:$16 sps:$4 sm:$0xff]   ;;  %v7036_v19 = vld [vmem:[#allocation9 + $0x14c] ss:$16 sps:$4 sm:$0xff]   ;;  %v7034_v25 = vld [vmem:[#allocation9 + $0x148] ss:$16 sps:$4 sm:$0xff]  }
 0x292   :  { %v3561_v31 = vmax.f32 %v6791_v24, %v3553_v55  ;;  %3522 = vmatpush1.bf16.msra.mxu1 %v6455_v26  ;;  %v7073_v21 = vld [vmem:[#allocation9 + $0x520] ss:$16 sps:$4 sm:$0xff]   ;;  %v7081_v24 = vld [vmem:[#allocation9 + $0x544] ss:$16 sps:$4 sm:$0xff]   ;;  %v7042_v26 = vld [vmem:[#allocation9 + $0x16c] ss:$16 sps:$4 sm:$0xff]  }
 0x293   :  { %3523 = vmatprep.subr.bf16.mxu1 %v6464_v54  ;;  %v7865_v42 = vpack.c.bf16 %v3560_v36, %v3560_v36  ;;  %v7079_v27 = vld [vmem:[#allocation9 + $0x540] ss:$16 sps:$4 sm:$0xff]   ;;  %v7040_v54 = vld [vmem:[#allocation9 + $0x168] ss:$16 sps:$4 sm:$0xff]   ;;  %v7048_v28 = vld [vmem:[#allocation9 + $0x18c] ss:$16 sps:$4 sm:$0xff]  }
 0x294   :  { %5202 = vmatpush1.bf16.msra.mxu0 %v6989_v8  ;;  %v7862_v38 = vpack.c.bf16 %v3561_v31, %v3561_v31  ;;  %v7087_v8 = vld [vmem:[#allocation9 + $0x564] ss:$16 sps:$4 sm:$0xff]   ;;  %v7085_v55 = vld [vmem:[#allocation9 + $0x560] ss:$16 sps:$4 sm:$0xff]   ;;  %v7046_v31 = vld [vmem:[#allocation9 + $0x188] ss:$16 sps:$4 sm:$0xff]  }
 0x295   :  { %5203 = vmatprep.subr.bf16.mxu0 %v6994_v30  ;;  %v7093_v30 = vld [vmem:[#allocation9 + $0x584] ss:$16 sps:$4 sm:$0xff]   ;;  %v7052_v36 = vld [vmem:[#allocation9 + $0x1a8] ss:$16 sps:$4 sm:$0xff]  }
 0x296   :  { %3524 = vmatpush1.bf16.msra.mxu1 %v6463_v32  ;;  %5205 = vmatprep.mubr.bf16.mxu0 %v7862_v38  ;;  %v7054_v32 = vld [vmem:[#allocation9 + $0x1ac] ss:$16 sps:$4 sm:$0xff]  }
 0x297   :  { %5296 = vmatprep.subr.bf16.mxu1 %v6997_v35  ;;  %v7099_v35 = vld [vmem:[#allocation9 + $0x5a4] ss:$16 sps:$4 sm:$0xff]  }
 0x298   :  { %5204 = vmatpush1.bf16.msra.mxu0 %v6992_v33  ;;  %v7091_v33 = vld [vmem:[#allocation9 + $0x580] ss:$16 sps:$4 sm:$0xff]  }
 0x299   :  { %5214 = vmatprep.subr.bf16.mxu0 %v7021_v39  ;;  %3542 = vmatmul.mubr.bf16.vlgmr.msra.gmra.mrb[8].mxu1 %v7384_v43  ;;  %v7060_v39 = vld [vmem:[#allocation9 + $0x1cc] ss:$16 sps:$4 sm:$0xff]  }
 0x29a   :  { %5297 = vmatpush1.bf16.msra.mxu1 %v6995_v40  ;;  %5328 = vmatprep.mubr.bf16.mxu1 %v7841_v2  ;;  %v7037_v2 = vld [vmem:[#allocation9 + $0x460] ss:$16 sps:$4 sm:$0xff]   ;;  %v7066_v43 = vld [vmem:[#allocation9 + $0x1ec] ss:$16 sps:$4 sm:$0xff]  }
 0x29b   :  { %5206 = vmatmul.mubr.bf16.vlgmr.msra.gmra.mrb[8].mxu0 %v7865_v42  ;;  %5298 = vmatprep.subr.bf16.mxu1 %v7000_v41  ;;  %v7097_v40 = vld [vmem:[#allocation9 + $0x5a0] ss:$16 sps:$4 sm:$0xff]   ;;  %v7105_v41 = vld [vmem:[#allocation9 + $0x5c4] ss:$16 sps:$4 sm:$0xff]  }
 0x29c   :  { %5215 = vmatpush1.bf16.msra.mxu0 %v7019_v48  ;;  %v7058_v48 = vld [vmem:[#allocation9 + $0x1c8] ss:$16 sps:$4 sm:$0xff]  }
 0x29d   :  { %5216 = vmatprep.subr.bf16.mxu0 %v7027_v20  ;;  %v7103_v20 = vld [vmem:[#allocation9 + $0x5c0] ss:$16 sps:$4 sm:$0xff]  }
 0x29e   :  { %5299 = vmatpush1.bf16.msra.mxu1 %v6998_v59  ;;  %v7111_v59 = vld [vmem:[#allocation9 + $0x5e4] ss:$16 sps:$4 sm:$0xff]  }
 0x29f   :  { %5300 = vmatprep.subr.bf16.mxu1 %v7003_v44  ;;  %v7064_v44 = vld [vmem:[#allocation9 + $0x1e8] ss:$16 sps:$4 sm:$0xff]  }
 0x2a0   :  { %5217 = vmatpush1.bf16.msra.mxu0 %v7025_v53  ;;  %v7072_v53 = vld [vmem:[#allocation9 + $0x20c] ss:$16 sps:$4 sm:$0xff]  }
 0x2a1   :  { %5218 = vmatprep.subr.bf16.mxu0 %v7033_v47  ;;  %v7109_v47 = vld [vmem:[#allocation9 + $0x5e0] ss:$16 sps:$4 sm:$0xff]  }
 0x2a2   :  { %5301 = vmatpush1.bf16.msra.mxu1 %v7001_v50  ;;  %v7165_v50 = vld [vmem:[#allocation9 + $0x604] ss:$16 sps:$4 sm:$0xff]  }
 0x2a3   :  { %5302 = vmatprep.subr.bf16.mxu1 %v7006_v51  ;;  %v7070_v51 = vld [vmem:[#allocation9 + $0x208] ss:$16 sps:$4 sm:$0xff]  }
 0x2a4   :  { %5219 = vmatpush1.bf16.msra.mxu0 %v7031_v37  ;;  %v7078_v37 = vld [vmem:[#allocation9 + $0x22c] ss:$16 sps:$4 sm:$0xff]  }
 0x2a5   :  { %5220 = vmatprep.subr.bf16.mxu0 %v7039_v52  ;;  %v7076_v52 = vld [vmem:[#allocation9 + $0x228] ss:$16 sps:$4 sm:$0xff]  }
 0x2a6   :  { %5303 = vmatpush1.bf16.msra.mxu1 %v7004_v34  ;;  %v7084_v34 = vld [vmem:[#allocation9 + $0x24c] ss:$16 sps:$4 sm:$0xff]  }
 0x2a7   :  { %5304 = vmatprep.subr.bf16.mxu1 %v7009_v17  ;;  %v7082_v17 = vld [vmem:[#allocation9 + $0x248] ss:$16 sps:$4 sm:$0xff]  }
 0x2a8   :  { %5221 = vmatpush1.bf16.msra.mxu0 %v7037_v2  ;;  %v7090_v2 = vld [vmem:[#allocation9 + $0x26c] ss:$16 sps:$4 sm:$0xff]  }
 0x2a9   :  { %5222 = vmatprep.subr.bf16.mxu0 %v7045_v56  ;;  %v7088_v56 = vld [vmem:[#allocation9 + $0x268] ss:$16 sps:$4 sm:$0xff]  }
 0x2aa   :  { %5305 = vmatpush1.bf16.msra.mxu1 %v7007_v49  ;;  %v7096_v49 = vld [vmem:[#allocation9 + $0x28c] ss:$16 sps:$4 sm:$0xff]  }
 0x2ab   :  { %5306 = vmatprep.subr.bf16.mxu1 %v7012_v57  ;;  %v7094_v57 = vld [vmem:[#allocation9 + $0x288] ss:$16 sps:$4 sm:$0xff]  }
 0x2ac   :  { %5223 = vmatpush1.bf16.msra.mxu0 %v7043_v60  ;;  %v607_v60 = vsub.s32 4, %v7823_v58 }
 0x2ad   :  { %5224 = vmatprep.subr.bf16.mxu0 %v7051_v61  ;;  %v7102_v61 = vld [vmem:[#allocation9 + $0x2ac] ss:$16 sps:$4 sm:$0xff]  }
 0x2ae   :  { %5307 = vmatpush1.bf16.msra.mxu1 %v7010_v63 }
 0x2af   :  { %5308 = vmatprep.subr.bf16.mxu1 %v7015_v0  ;;  %v7100_v0 = vld [vmem:[#allocation9 + $0x2a8] ss:$16 sps:$4 sm:$0xff]  }
 0x2b0   :  { %5225 = vmatpush1.bf16.msra.mxu0 %v7049_v3 }
 0x2b1   :  { %5226 = vmatprep.subr.bf16.mxu0 %v7057_v5  ;;  %v7108_v5 = vld [vmem:[#allocation9 + $0x2cc] ss:$16 sps:$4 sm:$0xff]  }
 0x2b2   :  { %5309 = vmatpush1.bf16.msra.mxu1 %v7013_v6 }
 0x2b3   :  { %5310 = vmatprep.subr.bf16.mxu1 %v7018_v22 }
 0x2b4   :  { %5227 = vmatpush1.bf16.msra.mxu0 %v7055_v7 }
 0x2b5   :  { %5228 = vmatprep.subr.bf16.mxu0 %v7063_v10  ;;  %v7106_v10 = vld [vmem:[#allocation9 + $0x2c8] ss:$16 sps:$4 sm:$0xff]  }
 0x2b6   :  { %5311 = vmatpush1.bf16.msra.mxu1 %v7016_v29 }
 0x2b7   :  { %5312 = vmatprep.subr.bf16.mxu1 %v7024_v11 }
 0x2b8   :  { %5229 = vmatpush1.bf16.msra.mxu0 %v7061_v12  ;;  %v7114_v12 = vld [vmem:[#allocation9 + $0x2ec] ss:$16 sps:$4 sm:$0xff]  }
 0x2b9   :  { %5230 = vmatprep.subr.bf16.mxu0 %v7069_v13 }
 0x2ba   :  { %5313 = vmatpush1.bf16.msra.mxu1 %v7022_v23 }
 0x2bb   :  { %5314 = vmatprep.subr.bf16.mxu1 %v7030_v14 }
 0x2bc   :  { %5231 = vmatpush1.bf16.msra.mxu0 %v7067_v15 }
 0x2bd   :  { %5232 = vmatprep.subr.bf16.mxu0 %v7075_v16  ;;  %v7112_v16 = vld [vmem:[#allocation9 + $0x2e8] ss:$16 sps:$4 sm:$0xff]  }
 0x2be   :  { %5315 = vmatpush1.bf16.msra.mxu1 %v7028_v18 }
 0x2bf   :  { %5316 = vmatprep.subr.bf16.mxu1 %v7036_v19  ;;  %v7117_v19 = vld [vmem:[#allocation9 + $0x30c] ss:$16 sps:$4 sm:$0xff]  }
 0x2c0   :  { %5233 = vmatpush1.bf16.msra.mxu0 %v7073_v21 }
 0x2c1   :  { %5234 = vmatprep.subr.bf16.mxu0 %v7081_v24  ;;  %v7163_v24 = vld [vmem:[#allocation9 + $0x600] ss:$16 sps:$4 sm:$0xff]  }
 0x2c2   :  { %5317 = vmatpush1.bf16.msra.mxu1 %v7034_v25 }
 0x2c3   :  { %5318 = vmatprep.subr.bf16.mxu1 %v7042_v26  ;;  %v7115_v26 = vld [vmem:[#allocation9 + $0x308] ss:$16 sps:$4 sm:$0xff]  }
 0x2c4   :  { %5235 = vmatpush1.bf16.msra.mxu0 %v7079_v27  ;;  %v7171_v27 = vld [vmem:[#allocation9 + $0x624] ss:$16 sps:$4 sm:$0xff]  }
 0x2c5   :  { %5236 = vmatprep.subr.bf16.mxu0 %v7087_v8  ;;  %v7120_v8 = vld [vmem:[#allocation9 + $0x32c] ss:$16 sps:$4 sm:$0xff]  }
 0x2c6   :  { %5319 = vmatpush1.bf16.msra.mxu1 %v7040_v54  ;;  %v7169_v54 = vld [vmem:[#allocation9 + $0x620] ss:$16 sps:$4 sm:$0xff]  }
 0x2c7   :  { %5320 = vmatprep.subr.bf16.mxu1 %v7048_v28  ;;  %v7118_v28 = vld [vmem:[#allocation9 + $0x328] ss:$16 sps:$4 sm:$0xff]  }
 0x2c8   :  { %5237 = vmatpush1.bf16.msra.mxu0 %v7085_v55  ;;  %v7177_v55 = vld [vmem:[#allocation9 + $0x644] ss:$16 sps:$4 sm:$0xff]  }
 0x2c9   :  { %5238 = vmatprep.subr.bf16.mxu0 %v7093_v30  ;;  %v7123_v30 = vld [vmem:[#allocation9 + $0x34c] ss:$16 sps:$4 sm:$0xff]  }
 0x2ca   :  { %5321 = vmatpush1.bf16.msra.mxu1 %v7046_v31  ;;  %v7175_v31 = vld [vmem:[#allocation9 + $0x640] ss:$16 sps:$4 sm:$0xff]  }
 0x2cb   :  { %5322 = vmatprep.subr.bf16.mxu1 %v7054_v32  ;;  %v7121_v32 = vld [vmem:[#allocation9 + $0x348] ss:$16 sps:$4 sm:$0xff]  }
 0x2cc   :  { %5239 = vmatpush1.bf16.msra.mxu0 %v7091_v33  ;;  %v7183_v33 = vld [vmem:[#allocation9 + $0x664] ss:$16 sps:$4 sm:$0xff]  }
 0x2cd   :  { %5240 = vmatprep.subr.bf16.mxu0 %v7099_v35  ;;  %v7126_v35 = vld [vmem:[#allocation9 + $0x36c] ss:$16 sps:$4 sm:$0xff]  }
 0x2ce   :  { %5323 = vmatpush1.bf16.msra.mxu1 %v7052_v36  ;;  %v7181_v36 = vld [vmem:[#allocation9 + $0x660] ss:$16 sps:$4 sm:$0xff]  }
 0x2cf   :  { %5324 = vmatprep.subr.bf16.mxu1 %v7060_v39  ;;  %v7124_v39 = vld [vmem:[#allocation9 + $0x368] ss:$16 sps:$4 sm:$0xff]  }
 0x2d0   :  { %5241 = vmatpush1.bf16.msra.mxu0 %v7097_v40  ;;  %v7189_v40 = vld [vmem:[#allocation9 + $0x684] ss:$16 sps:$4 sm:$0xff]  }
 0x2d1   :  { %5242 = vmatprep.subr.bf16.mxu0 %v7105_v41  ;;  %v7129_v41 = vld [vmem:[#allocation9 + $0x38c] ss:$16 sps:$4 sm:$0xff]  }
 0x2d2   :  { %5325 = vmatpush1.bf16.msra.mxu1 %v7058_v48  ;;  %v7187_v48 = vld [vmem:[#allocation9 + $0x680] ss:$16 sps:$4 sm:$0xff]  }
 0x2d3   :  { %5326 = vmatprep.subr.bf16.mxu1 %v7066_v43  ;;  %v7127_v43 = vld [vmem:[#allocation9 + $0x388] ss:$16 sps:$4 sm:$0xff]  }
 0x2d4   :  { %5243 = vmatpush1.bf16.msra.mxu0 %v7103_v20  ;;  %v7195_v20 = vld [vmem:[#allocation9 + $0x6a4] ss:$16 sps:$4 sm:$0xff]  }
 0x2d5   :  { %5244 = vmatprep.subr.bf16.mxu0 %v7111_v59  ;;  %v7132_v59 = vld [vmem:[#allocation9 + $0x3ac] ss:$16 sps:$4 sm:$0xff]  }
 0x2d6   :  { %5327 = vmatpush1.bf16.msra.mxu1 %v7064_v44  ;;  %v7193_v44 = vld [vmem:[#allocation9 + $0x6a0] ss:$16 sps:$4 sm:$0xff]  }
 0x2d7   :  { %5337 = vmatprep.subr.bf16.mxu1 %v7072_v53  ;;  %v7130_v53 = vld [vmem:[#allocation9 + $0x3a8] ss:$16 sps:$4 sm:$0xff]  }
 0x2d8   :  { %5245 = vmatpush1.bf16.msra.mxu0 %v7109_v47  ;;  %v7201_v47 = vld [vmem:[#allocation9 + $0x6c4] ss:$16 sps:$4 sm:$0xff]  }
 0x2d9   :  { %5329 = vmatmul.mubr.bf16.vlgmr.msra.gmra.mrb[12].mxu1 %v7849_v46  ;;  %5255 = vmatprep.subr.bf16.mxu0 %v7165_v50  ;;  %v611_v46 = vsub.s32 5, %v7823_v58  ;;  %v7135_v50 = vld [vmem:[#allocation9 + $0x3cc] ss:$16 sps:$4 sm:$0xff]  }
 0x2da   :  { %5338 = vmatpush1.bf16.msra.mxu1 %v7070_v51  ;;  %5369 = vmatprep.mubr.bf16.mxu1 %v7862_v38  ;;  %v7873_v38 = vld [vmem:[#allocation8] sm:$0xff]  ;;  %v7199_v51 = vld [vmem:[#allocation9 + $0x6c0] ss:$16 sps:$4 sm:$0xff]  }
 0x2db   :  { %5339 = vmatprep.subr.bf16.mxu1 %v7078_v37  ;;  %v608_v63 = vrot.slane %v7873_v38, %v607_v60  ;;  %v612_v3 = vrot.slane %v7873_v38, %v611_v46  ;;  %v7133_v37 = vld [vmem:[#allocation9 + $0x3c8] ss:$16 sps:$4 sm:$0xff]   ;;  %v7144_v46 = vld [vmem:[#allocation9 + $0x42c] ss:$16 sps:$4 sm:$0xff]  }
 0x2dc   :  { %v7139_v60 = vld [vmem:[#allocation9 + $0x408] ss:$16 sps:$4 sm:$0xff]  }
 0x2de   :  { %5340 = vmatpush1.bf16.msra.mxu1 %v7076_v52  ;;  %v7207_v52 = vld [vmem:[#allocation9 + $0x6e4] ss:$16 sps:$4 sm:$0xff]  }
 0x2df   :  { %5341 = vmatprep.subr.bf16.mxu1 %v7084_v34  ;;  %v7138_v34 = vld [vmem:[#allocation9 + $0x3ec] ss:$16 sps:$4 sm:$0xff]  }
 0x2e2   :  { %5342 = vmatpush1.bf16.msra.mxu1 %v7082_v17  ;;  %v7205_v17 = vld [vmem:[#allocation9 + $0x6e0] ss:$16 sps:$4 sm:$0xff]  }
 0x2e3   :  { %5343 = vmatprep.subr.bf16.mxu1 %v7090_v2  ;;  %v7136_v2 = vld [vmem:[#allocation9 + $0x3e8] ss:$16 sps:$4 sm:$0xff]  }
 0x2e6   :  { %5344 = vmatpush1.bf16.msra.mxu1 %v7088_v56  ;;  %v7213_v56 = vld [vmem:[#allocation9 + $0x704] ss:$16 sps:$4 sm:$0xff]  }
 0x2e7   :  { %5345 = vmatprep.subr.bf16.mxu1 %v7096_v49  ;;  %v7141_v49 = vld [vmem:[#allocation9 + $0x40c] ss:$16 sps:$4 sm:$0xff]  }
 0x2ea   :  { %5346 = vmatpush1.bf16.msra.mxu1 %v7094_v57  ;;  %v7211_v57 = vld [vmem:[#allocation9 + $0x700] ss:$16 sps:$4 sm:$0xff]  }
 0x2eb   :  { %5347 = vmatprep.subr.bf16.mxu1 %v7102_v61  ;;  %v7219_v61 = vld [vmem:[#allocation9 + $0x724] ss:$16 sps:$4 sm:$0xff]  }
 0x2ee   :  { %v3379_v6 = vpop.f32.mrb[4].mxu0  ;;  %5348 = vmatpush1.bf16.msra.mxu1 %v7100_v0  ;;  %v7142_v0 = vld [vmem:[#allocation9 + $0x428] ss:$16 sps:$4 sm:$0xff]  }
 0x2ef   :  { %v6792_v22 = vadd.f32 %v3379_v6, %v608_v63  ;;  %v3381_v7 = vpop.f32.mrb[5].mxu0  ;;  %5349 = vmatprep.subr.bf16.mxu1 %v7108_v5  ;;  %v7217_v63 = vld [vmem:[#allocation9 + $0x720] ss:$16 sps:$4 sm:$0xff]   ;;  %v7147_v5 = vld [vmem:[#allocation9 + $0x44c] ss:$16 sps:$4 sm:$0xff]  }
 0x2f0   :  { %v6793_v29 = vadd.f32 %v3381_v7, %v612_v3  ;;  %v3383_v11 = vpop.f32.mrb[6].mxu0  ;;  %v7225_v3 = vld [vmem:[#allocation9 + $0x744] ss:$16 sps:$4 sm:$0xff]   ;;  %v7223_v6 = vld [vmem:[#allocation9 + $0x740] ss:$16 sps:$4 sm:$0xff]  }
 0x2f1   :  { %v3554_v13 = vmul.f32 0.2, %v6792_v22  ;;  %v3384_v23 = vpop.f32.mrb[7].mxu0  ;;  %v7231_v7 = vld [vmem:[#allocation9 + $0x764] ss:$16 sps:$4 sm:$0xff]  }
 0x2f2   :  { %v3555_v14 = vmul.f32 0.2, %v6793_v29  ;;  %5350 = vmatpush1.bf16.msra.mxu1 %v7106_v10  ;;  %v7150_v10 = vld [vmem:[#allocation9 + $0x46c] ss:$16 sps:$4 sm:$0xff]   ;;  %v7237_v11 = vld [vmem:[#allocation9 + $0x784] ss:$16 sps:$4 sm:$0xff]  }
 0x2f3   :  { %v3562_v15 = vmax.f32 %v6792_v22, %v3554_v13  ;;  %5351 = vmatprep.subr.bf16.mxu1 %v7114_v12  ;;  %v7145_v22 = vld [vmem:[#allocation9 + $0x448] ss:$16 sps:$4 sm:$0xff]   ;;  %v7153_v12 = vld [vmem:[#allocation9 + $0x48c] ss:$16 sps:$4 sm:$0xff]   ;;  %v7235_v13 = vld [vmem:[#allocation9 + $0x780] ss:$16 sps:$4 sm:$0xff]  }
 0x2f4   :  { %v3563_v18 = vmax.f32 %v6793_v29, %v3555_v14  ;;  %v7148_v29 = vld [vmem:[#allocation9 + $0x468] ss:$16 sps:$4 sm:$0xff]   ;;  %v7243_v14 = vld [vmem:[#allocation9 + $0x7a4] ss:$16 sps:$4 sm:$0xff]  }
 0x2f5   :  { %v7879_v25 = vpack.c.bf16 %v3562_v15, %v3562_v15  ;;  %v7151_v23 = vld [vmem:[#allocation9 + $0x488] ss:$16 sps:$4 sm:$0xff]   ;;  %v7156_v15 = vld [vmem:[#allocation9 + $0x4ac] ss:$16 sps:$4 sm:$0xff]  }
 0x2f6   :  { %v7877_v21 = vpack.c.bf16 %v3563_v18, %v3563_v18  ;;  %5352 = vmatpush1.bf16.msra.mxu1 %v7112_v16  ;;  %v7241_v16 = vld [vmem:[#allocation9 + $0x7a0] ss:$16 sps:$4 sm:$0xff]   ;;  %v7154_v18 = vld [vmem:[#allocation9 + $0x4a8] ss:$16 sps:$4 sm:$0xff]  }
 0x2f7   :  { %5353 = vmatprep.subr.bf16.mxu1 %v7117_v19  ;;  %v7249_v19 = vld [vmem:[#allocation9 + $0x7c4] ss:$16 sps:$4 sm:$0xff]  }
 0x2f8   :  { %5246 = vmatprep.mubr.bf16.mxu0 %v7877_v21 }
 0x2f9   :  { %5247 = vmatmul.mubr.bf16.vlgmr.msra.gmra.mrb[8].mxu0 %v7879_v25 }
 0x2fa   :  { %5256 = vmatpush1.bf16.msra.mxu0 %v7163_v24  ;;  %5354 = vmatpush1.bf16.msra.mxu1 %v7115_v26  ;;  %v7247_v24 = vld [vmem:[#allocation9 + $0x7c0] ss:$16 sps:$4 sm:$0xff]   ;;  %v7157_v26 = vld [vmem:[#allocation9 + $0x4c8] ss:$16 sps:$4 sm:$0xff]  }
 0x2fb   :  { %5257 = vmatprep.subr.bf16.mxu0 %v7171_v27  ;;  %5355 = vmatprep.subr.bf16.mxu1 %v7120_v8  ;;  %v7255_v27 = vld [vmem:[#allocation9 + $0x7e4] ss:$16 sps:$4 sm:$0xff]   ;;  %v7162_v8 = vld [vmem:[#allocation9 + $0x4ec] ss:$16 sps:$4 sm:$0xff]  }
 0x2fe   :  { %5258 = vmatpush1.bf16.msra.mxu0 %v7169_v54  ;;  %5356 = vmatpush1.bf16.msra.mxu1 %v7118_v28  ;;  %v7253_v54 = vld [vmem:[#allocation9 + $0x7e0] ss:$16 sps:$4 sm:$0xff]   ;;  %v7160_v28 = vld [vmem:[#allocation9 + $0x4e8] ss:$16 sps:$4 sm:$0xff]  }
 0x2ff   :  { %5259 = vmatprep.subr.bf16.mxu0 %v7177_v55  ;;  %5357 = vmatprep.subr.bf16.mxu1 %v7123_v30  ;;  %v7285_v55 = vld [vmem:[#allocation12 + $0x4] ss:$8 sps:$4 sm:$0xff]   ;;  %v7168_v30 = vld [vmem:[#allocation9 + $0x50c] ss:$16 sps:$4 sm:$0xff]  }
 0x302   :  { %5260 = vmatpush1.bf16.msra.mxu0 %v7175_v31  ;;  %5358 = vmatpush1.bf16.msra.mxu1 %v7121_v32  ;;  %v7166_v31 = vld [vmem:[#allocation9 + $0x508] ss:$16 sps:$4 sm:$0xff]   ;;  %v7174_v32 = vld [vmem:[#allocation9 + $0x52c] ss:$16 sps:$4 sm:$0xff]  }
 0x303   :  { %5261 = vmatprep.subr.bf16.mxu0 %v7183_v33  ;;  %5359 = vmatprep.subr.bf16.mxu1 %v7126_v35  ;;  %v7172_v33 = vld [vmem:[#allocation9 + $0x528] ss:$16 sps:$4 sm:$0xff]   ;;  %v7180_v35 = vld [vmem:[#allocation9 + $0x54c] ss:$16 sps:$4 sm:$0xff]  }
 0x306   :  { %5262 = vmatpush1.bf16.msra.mxu0 %v7181_v36  ;;  %5360 = vmatpush1.bf16.msra.mxu1 %v7124_v39  ;;  %v7178_v36 = vld [vmem:[#allocation9 + $0x548] ss:$16 sps:$4 sm:$0xff]   ;;  %v7186_v39 = vld [vmem:[#allocation9 + $0x56c] ss:$16 sps:$4 sm:$0xff]  }
 0x307   :  { %5263 = vmatprep.subr.bf16.mxu0 %v7189_v40  ;;  %5361 = vmatprep.subr.bf16.mxu1 %v7129_v41  ;;  %v7184_v40 = vld [vmem:[#allocation9 + $0x568] ss:$16 sps:$4 sm:$0xff]   ;;  %v7192_v41 = vld [vmem:[#allocation9 + $0x58c] ss:$16 sps:$4 sm:$0xff]  }
 0x30a   :  { %5264 = vmatpush1.bf16.msra.mxu0 %v7187_v48  ;;  %5362 = vmatpush1.bf16.msra.mxu1 %v7127_v43  ;;  %v7190_v48 = vld [vmem:[#allocation9 + $0x588] ss:$16 sps:$4 sm:$0xff]   ;;  %v7198_v43 = vld [vmem:[#allocation9 + $0x5ac] ss:$16 sps:$4 sm:$0xff]  }
 0x30b   :  { %5265 = vmatprep.subr.bf16.mxu0 %v7195_v20  ;;  %5363 = vmatprep.subr.bf16.mxu1 %v7132_v59  ;;  %v7196_v20 = vld [vmem:[#allocation9 + $0x5a8] ss:$16 sps:$4 sm:$0xff]   ;;  %v7204_v59 = vld [vmem:[#allocation9 + $0x5cc] ss:$16 sps:$4 sm:$0xff]  }
 0x30e   :  { %5266 = vmatpush1.bf16.msra.mxu0 %v7193_v44  ;;  %5364 = vmatpush1.bf16.msra.mxu1 %v7130_v53  ;;  %v7202_v44 = vld [vmem:[#allocation9 + $0x5c8] ss:$16 sps:$4 sm:$0xff]   ;;  %v7210_v53 = vld [vmem:[#allocation9 + $0x5ec] ss:$16 sps:$4 sm:$0xff]  }
 0x30f   :  { %5267 = vmatprep.subr.bf16.mxu0 %v7201_v47  ;;  %5365 = vmatprep.subr.bf16.mxu1 %v7135_v50  ;;  %v7208_v47 = vld [vmem:[#allocation9 + $0x5e8] ss:$16 sps:$4 sm:$0xff]   ;;  %v7216_v50 = vld [vmem:[#allocation9 + $0x60c] ss:$16 sps:$4 sm:$0xff]  }
 0x312   :  { %5268 = vmatpush1.bf16.msra.mxu0 %v7199_v51  ;;  %5366 = vmatpush1.bf16.msra.mxu1 %v7133_v37  ;;  %v7214_v51 = vld [vmem:[#allocation9 + $0x608] ss:$16 sps:$4 sm:$0xff]   ;;  %v7222_v37 = vld [vmem:[#allocation9 + $0x62c] ss:$16 sps:$4 sm:$0xff]  }
 0x313   :  { %5269 = vmatprep.subr.bf16.mxu0 %v7207_v52  ;;  %5367 = vmatprep.subr.bf16.mxu1 %v7138_v34  ;;  %v7220_v52 = vld [vmem:[#allocation9 + $0x628] ss:$16 sps:$4 sm:$0xff]   ;;  %v7228_v34 = vld [vmem:[#allocation9 + $0x64c] ss:$16 sps:$4 sm:$0xff]  }
 0x316   :  { %5270 = vmatpush1.bf16.msra.mxu0 %v7205_v17  ;;  %5368 = vmatpush1.bf16.msra.mxu1 %v7136_v2  ;;  %v7226_v17 = vld [vmem:[#allocation9 + $0x648] ss:$16 sps:$4 sm:$0xff]   ;;  %v7234_v2 = vld [vmem:[#allocation9 + $0x66c] ss:$16 sps:$4 sm:$0xff]  }
 0x317   :  { %5271 = vmatprep.subr.bf16.mxu0 %v7213_v56  ;;  %5378 = vmatprep.subr.bf16.mxu1 %v7141_v49  ;;  %v7232_v56 = vld [vmem:[#allocation9 + $0x668] ss:$16 sps:$4 sm:$0xff]   ;;  %v7240_v49 = vld [vmem:[#allocation9 + $0x68c] ss:$16 sps:$4 sm:$0xff]  }
 0x319   :  { %5370 = vmatmul.mubr.bf16.vlgmr.msra.gmra.mrb[12].mxu1 %v7865_v42  ;;  %v7229_v42 = vld [vmem:[#allocation9 + $0x760] ss:$16 sps:$4 sm:$0xff]  }
 0x31a   :  { %5272 = vmatpush1.bf16.msra.mxu0 %v7211_v57  ;;  %5379 = vmatpush1.bf16.msra.mxu1 %v7139_v60  ;;  %v615_v57 = vsub.s32 6, %v7823_v58  ;;  %v7238_v60 = vld [vmem:[#allocation9 + $0x688] ss:$16 sps:$4 sm:$0xff]  }
 0x31b   :  { %5410 = vmatprep.mubr.bf16.mxu1 %v7877_v21  ;;  %5380 = vmatprep.subr.bf16.mxu1 %v7144_v46  ;;  %v7159_v21 = vld [vmem:[#allocation9 + $0x4cc] ss:$16 sps:$4 sm:$0xff]   ;;  %v619_v46 = vsub.s32 7, %v7823_v58 }
 0x31c   :  { %5273 = vmatprep.subr.bf16.mxu0 %v7219_v61  ;;  %v616_v61 = vrot.slane %v7873_v38, %v615_v57  ;;  %v7315_v57 = vld [vmem:[#allocation12 + $0xa4] ss:$8 sps:$4 sm:$0xff]  }
 0x31e   :  { %5274 = vmatpush1.bf16.msra.mxu0 %v7217_v63  ;;  %5381 = vmatpush1.bf16.msra.mxu1 %v7142_v0  ;;  %v620_v63 = vrot.slane %v7873_v38, %v619_v46  ;;  %v7244_v0 = vld [vmem:[#allocation9 + $0x6a8] ss:$16 sps:$4 sm:$0xff]  }
 0x31f   :  { %5275 = vmatprep.subr.bf16.mxu0 %v7225_v3  ;;  %5382 = vmatprep.subr.bf16.mxu1 %v7147_v5  ;;  %v7252_v3 = vld [vmem:[#allocation9 + $0x6cc] ss:$16 sps:$4 sm:$0xff]   ;;  %v7318_v46 = vld [vmem:[#allocation12 + $0xb4] ss:$8 sps:$4 sm:$0xff]  }
 0x322   :  { %5276 = vmatpush1.bf16.msra.mxu0 %v7223_v6  ;;  %5383 = vmatpush1.bf16.msra.mxu1 %v7145_v22 }
 0x323   :  { %5277 = vmatprep.subr.bf16.mxu0 %v7231_v7  ;;  %5384 = vmatprep.subr.bf16.mxu1 %v7150_v10 }
 0x326   :  { %5278 = vmatpush1.bf16.msra.mxu0 %v7229_v42  ;;  %5385 = vmatpush1.bf16.msra.mxu1 %v7148_v29  ;;  %v7250_v42 = vld [vmem:[#allocation9 + $0x6c8] ss:$16 sps:$4 sm:$0xff]  }
 0x327   :  { %5279 = vmatprep.subr.bf16.mxu0 %v7237_v11  ;;  %5386 = vmatprep.subr.bf16.mxu1 %v7153_v12  ;;  %v7258_v12 = vld [vmem:[#allocation9 + $0x6ec] ss:$16 sps:$4 sm:$0xff]  }
 0x32a   :  { %5280 = vmatpush1.bf16.msra.mxu0 %v7235_v13  ;;  %5387 = vmatpush1.bf16.msra.mxu1 %v7151_v23 }
 0x32b   :  { %5281 = vmatprep.subr.bf16.mxu0 %v7243_v14  ;;  %5388 = vmatprep.subr.bf16.mxu1 %v7156_v15  ;;  %v7256_v15 = vld [vmem:[#allocation9 + $0x6e8] ss:$16 sps:$4 sm:$0xff]  }
 0x32e   :  { %5282 = vmatpush1.bf16.msra.mxu0 %v7241_v16  ;;  %5389 = vmatpush1.bf16.msra.mxu1 %v7154_v18  ;;  %v7261_v16 = vld [vmem:[#allocation9 + $0x70c] ss:$16 sps:$4 sm:$0xff]  }
 0x32f   :  { %5283 = vmatprep.subr.bf16.mxu0 %v7249_v19  ;;  %5390 = vmatprep.subr.bf16.mxu1 %v7159_v21  ;;  %v7283_v18 = vld [vmem:[#allocation12] ss:$8 sps:$4 sm:$0xff]   ;;  %v7288_v21 = vld [vmem:[#allocation12 + $0x14] ss:$8 sps:$4 sm:$0xff]  }
 0x332   :  { %5284 = vmatpush1.bf16.msra.mxu0 %v7247_v24  ;;  %5391 = vmatpush1.bf16.msra.mxu1 %v7157_v26  ;;  %v7259_v24 = vld [vmem:[#allocation9 + $0x708] ss:$16 sps:$4 sm:$0xff]   ;;  %v7264_v26 = vld [vmem:[#allocation9 + $0x72c] ss:$16 sps:$4 sm:$0xff]  }
 0x333   :  { %5285 = vmatprep.subr.bf16.mxu0 %v7255_v27  ;;  %5392 = vmatprep.subr.bf16.mxu1 %v7162_v8  ;;  %v7286_v27 = vld [vmem:[#allocation12 + $0x10] ss:$8 sps:$4 sm:$0xff]   ;;  %v7291_v8 = vld [vmem:[#allocation12 + $0x24] ss:$8 sps:$4 sm:$0xff]  }
 0x336   :  { %5286 = vmatpush1.bf16.msra.mxu0 %v7253_v54  ;;  %5393 = vmatpush1.bf16.msra.mxu1 %v7160_v28  ;;  %v7262_v54 = vld [vmem:[#allocation9 + $0x728] ss:$16 sps:$4 sm:$0xff]   ;;  %v7267_v28 = vld [vmem:[#allocation9 + $0x74c] ss:$16 sps:$4 sm:$0xff]  }
 0x337   :  { %5868 = vmatprep.subr.bf16.mxu0 %v7285_v55  ;;  %5394 = vmatprep.subr.bf16.mxu1 %v7168_v30  ;;  %v7289_v55 = vld [vmem:[#allocation12 + $0x20] ss:$8 sps:$4 sm:$0xff]   ;;  %v7294_v30 = vld [vmem:[#allocation12 + $0x34] ss:$8 sps:$4 sm:$0xff]  }
 0x33a   :  { %5395 = vmatpush1.bf16.msra.mxu1 %v7166_v31  ;;  %v7265_v31 = vld [vmem:[#allocation9 + $0x748] ss:$16 sps:$4 sm:$0xff]  }
 0x33b   :  { %5396 = vmatprep.subr.bf16.mxu1 %v7174_v32  ;;  %v7270_v32 = vld [vmem:[#allocation9 + $0x76c] ss:$16 sps:$4 sm:$0xff]  }
 0x33e   :  { %5397 = vmatpush1.bf16.msra.mxu1 %v7172_v33  ;;  %v7292_v33 = vld [vmem:[#allocation12 + $0x30] ss:$8 sps:$4 sm:$0xff]  }
 0x33f   :  { %5398 = vmatprep.subr.bf16.mxu1 %v7180_v35  ;;  %v7297_v35 = vld [vmem:[#allocation12 + $0x44] ss:$8 sps:$4 sm:$0xff]  }
 0x342   :  { %5399 = vmatpush1.bf16.msra.mxu1 %v7178_v36  ;;  %v7268_v36 = vld [vmem:[#allocation9 + $0x768] ss:$16 sps:$4 sm:$0xff]  }
 0x343   :  { %5400 = vmatprep.subr.bf16.mxu1 %v7186_v39  ;;  %v7273_v39 = vld [vmem:[#allocation9 + $0x78c] ss:$16 sps:$4 sm:$0xff]  }
 0x346   :  { %5401 = vmatpush1.bf16.msra.mxu1 %v7184_v40  ;;  %v7295_v40 = vld [vmem:[#allocation12 + $0x40] ss:$8 sps:$4 sm:$0xff]  }
 0x347   :  { %5402 = vmatprep.subr.bf16.mxu1 %v7192_v41  ;;  %v7300_v41 = vld [vmem:[#allocation12 + $0x54] ss:$8 sps:$4 sm:$0xff]  }
 0x34a   :  { %5403 = vmatpush1.bf16.msra.mxu1 %v7190_v48  ;;  %v7271_v48 = vld [vmem:[#allocation9 + $0x788] ss:$16 sps:$4 sm:$0xff]  }
 0x34b   :  { %5404 = vmatprep.subr.bf16.mxu1 %v7198_v43  ;;  %v7276_v43 = vld [vmem:[#allocation9 + $0x7ac] ss:$16 sps:$4 sm:$0xff]  }
 0x34e   :  { %5405 = vmatpush1.bf16.msra.mxu1 %v7196_v20  ;;  %v7298_v20 = vld [vmem:[#allocation12 + $0x50] ss:$8 sps:$4 sm:$0xff]  }
 0x34f   :  { %5406 = vmatprep.subr.bf16.mxu1 %v7204_v59  ;;  %v7303_v59 = vld [vmem:[#allocation12 + $0x64] ss:$8 sps:$4 sm:$0xff]  }
 0x352   :  { %5407 = vmatpush1.bf16.msra.mxu1 %v7202_v44  ;;  %v7274_v44 = vld [vmem:[#allocation9 + $0x7a8] ss:$16 sps:$4 sm:$0xff]  }
 0x353   :  { %5408 = vmatprep.subr.bf16.mxu1 %v7210_v53  ;;  %v7279_v53 = vld [vmem:[#allocation9 + $0x7cc] ss:$16 sps:$4 sm:$0xff]  }
 0x356   :  { %5409 = vmatpush1.bf16.msra.mxu1 %v7208_v47  ;;  %v7301_v47 = vld [vmem:[#allocation12 + $0x60] ss:$8 sps:$4 sm:$0xff]  }
 0x357   :  { %5419 = vmatprep.subr.bf16.mxu1 %v7216_v50  ;;  %v7306_v50 = vld [vmem:[#allocation12 + $0x74] ss:$8 sps:$4 sm:$0xff]  }
 0x359   :  { %5411 = vmatmul.mubr.bf16.vlgmr.msra.gmra.mrb[12].mxu1 %v7879_v25  ;;  %v7246_v25 = vld [vmem:[#allocation9 + $0x6ac] ss:$16 sps:$4 sm:$0xff]  }
 0x35a   :  { %5420 = vmatpush1.bf16.msra.mxu1 %v7214_v51  ;;  %v7277_v51 = vld [vmem:[#allocation9 + $0x7c8] ss:$16 sps:$4 sm:$0xff]  }
 0x35b   :  { %5421 = vmatprep.subr.bf16.mxu1 %v7222_v37  ;;  %v7282_v37 = vld [vmem:[#allocation9 + $0x7ec] ss:$16 sps:$4 sm:$0xff]  }
 0x35e   :  { %5422 = vmatpush1.bf16.msra.mxu1 %v7220_v52  ;;  %v7304_v52 = vld [vmem:[#allocation12 + $0x70] ss:$8 sps:$4 sm:$0xff]  }
 0x35f   :  { %5423 = vmatprep.subr.bf16.mxu1 %v7228_v34  ;;  %v7309_v34 = vld [vmem:[#allocation12 + $0x84] ss:$8 sps:$4 sm:$0xff]  }
 0x362   :  { %5424 = vmatpush1.bf16.msra.mxu1 %v7226_v17  ;;  %v7280_v17 = vld [vmem:[#allocation9 + $0x7e8] ss:$16 sps:$4 sm:$0xff]  }
 0x363   :  { %5425 = vmatprep.subr.bf16.mxu1 %v7234_v2  ;;  %v7307_v2 = vld [vmem:[#allocation12 + $0x80] ss:$8 sps:$4 sm:$0xff]  }
 0x366   :  { %5426 = vmatpush1.bf16.msra.mxu1 %v7232_v56  ;;  %v7312_v56 = vld [vmem:[#allocation12 + $0x94] ss:$8 sps:$4 sm:$0xff]  }
 0x367   :  { %5427 = vmatprep.subr.bf16.mxu1 %v7240_v49  ;;  %v7310_v49 = vld [vmem:[#allocation12 + $0x90] ss:$8 sps:$4 sm:$0xff]  }
 0x36a   :  { %5428 = vmatpush1.bf16.msra.mxu1 %v7238_v60  ;;  %v7313_v60 = vld [vmem:[#allocation12 + $0xa0] ss:$8 sps:$4 sm:$0xff]  }
 0x36b   :  { %5429 = vmatprep.subr.bf16.mxu1 %v7246_v25  ;;  %v7316_v25 = vld [vmem:[#allocation12 + $0xb0] ss:$8 sps:$4 sm:$0xff]  }
 0x36c   :  { %v3543_v5 = vpop.f32.mrb[8].mxu1 }
 0x36d   :  { %v6794_v6 = vadd.f32 %v3543_v5, %v616_v61  ;;  %v3545_v22 = vpop.f32.mrb[9].mxu1  ;;  %v7321_v61 = vld [vmem:[#allocation12 + $0xc4] ss:$8 sps:$4 sm:$0xff]  }
 0x36e   :  { %v6795_v7 = vadd.f32 %v3545_v22, %v620_v63  ;;  %v3547_v10 = vpop.f32.mrb[10].mxu1  ;;  %5430 = vmatpush1.bf16.msra.mxu1 %v7244_v0  ;;  %v7319_v63 = vld [vmem:[#allocation12 + $0xc0] ss:$8 sps:$4 sm:$0xff]   ;;  %v7324_v0 = vld [vmem:[#allocation12 + $0xd4] ss:$8 sps:$4 sm:$0xff]  }
 0x36f   :  { %v3556_v29 = vmul.f32 0.2, %v6794_v6  ;;  %v3548_v11 = vpop.f32.mrb[11].mxu1  ;;  %5431 = vmatprep.subr.bf16.mxu1 %v7252_v3  ;;  %v7322_v3 = vld [vmem:[#allocation12 + $0xd0] ss:$8 sps:$4 sm:$0xff]  }
 0x370   :  { %v3557_v13 = vmul.f32 0.2, %v6795_v7  ;;  %v7327_v5 = vld [vmem:[#allocation12 + $0xe4] ss:$8 sps:$4 sm:$0xff]   ;;  %v7330_v22 = vld [vmem:[#allocation12 + $0xf4] ss:$8 sps:$4 sm:$0xff]  }
 0x371   :  { %v3564_v23 = vmax.f32 %v6794_v6, %v3556_v29  ;;  %v7325_v6 = vld [vmem:[#allocation12 + $0xe0] ss:$8 sps:$4 sm:$0xff]   ;;  %v7333_v10 = vld [vmem:[#allocation12 + $0x104] ss:$8 sps:$4 sm:$0xff]  }
 0x372   :  { %v3565_v14 = vmax.f32 %v6795_v7, %v3557_v13  ;;  %5432 = vmatpush1.bf16.msra.mxu1 %v7250_v42  ;;  %v7328_v7 = vld [vmem:[#allocation12 + $0xf0] ss:$8 sps:$4 sm:$0xff]   ;;  %v7894_v42 = vld [vmem:[#allocation11] sm:$0xf] }
 0x373   :  { %5433 = vmatprep.subr.bf16.mxu1 %v7258_v12  ;;  %v7890_v19 = vpack.c.bf16 %v3564_v23, %v3564_v23  ;;  %v3835_v29 = vrot.slane %v7894_v42, %v7826_v4  ;;  %v3839_v11 = vrot.slane %v7894_v42, %v7831_v9 }
 0x374   :  { %v3573_v38 = vpack.c.bf16 %v3565_v14, %v3565_v14 }
 0x376   :  { %5287 = vmatprep.mubr.bf16.mxu0 %v3573_v38  ;;  %5434 = vmatpush1.bf16.msra.mxu1 %v7256_v15 }
 0x377   :  { %5451 = vmatprep.mubr.bf16.mxu1 %v3573_v38  ;;  %5288 = vmatmul.mubr.bf16.vlgmr.msra.gmra.mrb[8].mxu0 %v7890_v19 }
 0x378   :  { %5435 = vmatprep.subr.bf16.mxu1 %v7261_v16  ;;  %5869 = vmatpush1.bf16.msra.mxu0 %v7283_v18 }
 0x379   :  { %5870 = vmatprep.subr.bf16.mxu0 %v7288_v21 }
 0x37a   :  { %5436 = vmatpush1.bf16.msra.mxu1 %v7259_v24 }
 0x37b   :  { %5437 = vmatprep.subr.bf16.mxu1 %v7264_v26  ;;  %v7331_v26 = vld [vmem:[#allocation12 + $0x100] ss:$8 sps:$4 sm:$0xff]  }
 0x37c   :  { %5871 = vmatpush1.bf16.msra.mxu0 %v7286_v27 }
 0x37d   :  { %5872 = vmatprep.subr.bf16.mxu0 %v7291_v8  ;;  %v7336_v8 = vld [vmem:[#allocation12 + $0x114] ss:$8 sps:$4 sm:$0xff]  }
 0x37e   :  { %5438 = vmatpush1.bf16.msra.mxu1 %v7262_v54  ;;  %v7334_v54 = vld [vmem:[#allocation12 + $0x110] ss:$8 sps:$4 sm:$0xff]  }
 0x37f   :  { %5439 = vmatprep.subr.bf16.mxu1 %v7267_v28  ;;  %v7339_v28 = vld [vmem:[#allocation12 + $0x124] ss:$8 sps:$4 sm:$0xff]  }
 0x380   :  { %5873 = vmatpush1.bf16.msra.mxu0 %v7289_v55  ;;  %v7337_v55 = vld [vmem:[#allocation12 + $0x120] ss:$8 sps:$4 sm:$0xff]  }
 0x381   :  { %5874 = vmatprep.subr.bf16.mxu0 %v7294_v30  ;;  %v7342_v30 = vld [vmem:[#allocation12 + $0x134] ss:$8 sps:$4 sm:$0xff]  }
 0x382   :  { %5440 = vmatpush1.bf16.msra.mxu1 %v7265_v31  ;;  %v7340_v31 = vld [vmem:[#allocation12 + $0x130] ss:$8 sps:$4 sm:$0xff]  }
 0x383   :  { %5441 = vmatprep.subr.bf16.mxu1 %v7270_v32  ;;  %v7345_v32 = vld [vmem:[#allocation12 + $0x144] ss:$8 sps:$4 sm:$0xff]  }
 0x384   :  { %5875 = vmatpush1.bf16.msra.mxu0 %v7292_v33  ;;  %v7343_v33 = vld [vmem:[#allocation12 + $0x140] ss:$8 sps:$4 sm:$0xff]  }
 0x385   :  { %5876 = vmatprep.subr.bf16.mxu0 %v7297_v35  ;;  %v7348_v35 = vld [vmem:[#allocation12 + $0x154] ss:$8 sps:$4 sm:$0xff]  }
 0x386   :  { %5442 = vmatpush1.bf16.msra.mxu1 %v7268_v36  ;;  %v7346_v36 = vld [vmem:[#allocation12 + $0x150] ss:$8 sps:$4 sm:$0xff]  }
 0x387   :  { %5443 = vmatprep.subr.bf16.mxu1 %v7273_v39  ;;  %v7351_v39 = vld [vmem:[#allocation12 + $0x164] ss:$8 sps:$4 sm:$0xff]  }
 0x388   :  { %5877 = vmatpush1.bf16.msra.mxu0 %v7295_v40  ;;  %v7349_v40 = vld [vmem:[#allocation12 + $0x160] ss:$8 sps:$4 sm:$0xff]  }
 0x389   :  { %5878 = vmatprep.subr.bf16.mxu0 %v7300_v41  ;;  %v3847_v41 = vrot.slane %v7894_v42, %v603_v62  ;;  %v7358_v62 = vld [vmem:[#allocation12 + $0x190] ss:$8 sps:$4 sm:$0xff]  }
 0x38a   :  { %5444 = vmatpush1.bf16.msra.mxu1 %v7271_v48  ;;  %v7354_v48 = vld [vmem:[#allocation12 + $0x174] ss:$8 sps:$4 sm:$0xff]  }
 0x38b   :  { %5445 = vmatprep.subr.bf16.mxu1 %v7276_v43 }
 0x38c   :  { %5879 = vmatpush1.bf16.msra.mxu0 %v7298_v20 }
 0x38d   :  { %5880 = vmatprep.subr.bf16.mxu0 %v7303_v59 }
 0x38e   :  { %5446 = vmatpush1.bf16.msra.mxu1 %v7274_v44 }
 0x38f   :  { %5447 = vmatprep.subr.bf16.mxu1 %v7279_v53  ;;  %v7352_v53 = vld [vmem:[#allocation12 + $0x170] ss:$8 sps:$4 sm:$0xff]  }
 0x390   :  { %5881 = vmatpush1.bf16.msra.mxu0 %v7301_v47 }
 0x391   :  { %5882 = vmatprep.subr.bf16.mxu0 %v7306_v50  ;;  %v7357_v50 = vld [vmem:[#allocation12 + $0x184] ss:$8 sps:$4 sm:$0xff]  }
 0x392   :  { %5448 = vmatpush1.bf16.msra.mxu1 %v7277_v51 }
 0x393   :  { %5449 = vmatprep.subr.bf16.mxu1 %v7282_v37 }
 0x394   :  { %5883 = vmatpush1.bf16.msra.mxu0 %v7304_v52  ;;  %v7355_v52 = vld [vmem:[#allocation12 + $0x180] ss:$8 sps:$4 sm:$0xff]  }
 0x395   :  { %5884 = vmatprep.subr.bf16.mxu0 %v7309_v34  ;;  %v7360_v34 = vld [vmem:[#allocation12 + $0x194] ss:$8 sps:$4 sm:$0xff]  }
 0x396   :  { %5450 = vmatpush1.bf16.msra.mxu1 %v7280_v17 }
 0x398   :  { %5885 = vmatpush1.bf16.msra.mxu0 %v7307_v2  ;;  %v7363_v2 = vld [vmem:[#allocation12 + $0x1a4] ss:$8 sps:$4 sm:$0xff]  }
 0x399   :  { %5452 = vmatmul.mubr.bf16.vlgmr.msra.gmra.mrb[12].mxu1 %v7890_v19  ;;  %5886 = vmatprep.subr.bf16.mxu0 %v7312_v56  ;;  %v7361_v56 = vld [vmem:[#allocation12 + $0x1a0] ss:$8 sps:$4 sm:$0xff]  }
 0x39c   :  { %5887 = vmatpush1.bf16.msra.mxu0 %v7310_v49  ;;  %v7366_v49 = vld [vmem:[#allocation12 + $0x1b4] ss:$8 sps:$4 sm:$0xff]  }
 0x39d   :  { %5888 = vmatprep.subr.bf16.mxu0 %v7315_v57  ;;  %v7364_v57 = vld [vmem:[#allocation12 + $0x1b0] ss:$8 sps:$4 sm:$0xff]  }
 0x3a0   :  { %5889 = vmatpush1.bf16.msra.mxu0 %v7313_v60  ;;  %v7369_v60 = vld [vmem:[#allocation12 + $0x1c4] ss:$8 sps:$4 sm:$0xff]  }
 0x3a1   :  { %5890 = vmatprep.subr.bf16.mxu0 %v7318_v46  ;;  %v7367_v46 = vld [vmem:[#allocation12 + $0x1c0] ss:$8 sps:$4 sm:$0xff]  }
 0x3a4   :  { %5891 = vmatpush1.bf16.msra.mxu0 %v7316_v25  ;;  %v3843_v25 = vrot.slane %v7894_v42, %v599_v1  ;;  %v5971_v1 = vld [vmem:[#allocation2] sm:$0x1]  ;;  %v5536_v42 = vld [vmem:[#allocation14] sm:$0x3] }
 0x3a5   :  { %5892 = vmatprep.subr.bf16.mxu0 %v7321_v61  ;;  %v7372_v61 = vld [vmem:[#allocation12 + $0x1d4] ss:$8 sps:$4 sm:$0xff]   ;;  %6874 = vpush %v5971_v1 }
 0x3a8   :  { %5893 = vmatpush1.bf16.msra.mxu0 %v7319_v63  ;;  %v7370_v63 = vld [vmem:[#allocation12 + $0x1d0] ss:$8 sps:$4 sm:$0xff]  }
 0x3a9   :  { %5894 = vmatprep.subr.bf16.mxu0 %v7324_v0 }
 0x3ac   :  { %5895 = vmatpush1.bf16.msra.mxu0 %v7322_v3  ;;  %v7375_v3 = vld [vmem:[#allocation12 + $0x1e4] ss:$8 sps:$4 sm:$0xff]  }
 0x3ad   :  { %5896 = vmatprep.subr.bf16.mxu0 %v7327_v5  ;;  %v7373_v5 = vld [vmem:[#allocation12 + $0x1e0] ss:$8 sps:$4 sm:$0xff]  }
 0x3b0   :  { %5897 = vmatpush1.bf16.msra.mxu0 %v7325_v6 }
 0x3b1   :  { %5898 = vmatprep.subr.bf16.mxu0 %v7330_v22  ;;  %v7378_v22 = vld [vmem:[#allocation12 + $0x1f4] ss:$8 sps:$4 sm:$0xff]  }
 0x3b4   :  { %5899 = vmatpush1.bf16.msra.mxu0 %v7328_v7  ;;  %v7376_v7 = vld [vmem:[#allocation12 + $0x1f0] ss:$8 sps:$4 sm:$0xff]  }
 0x3b5   :  { %5909 = vmatprep.subr.bf16.mxu0 %v7333_v10 }
 0x3d6   :  { %s6875_s7 = spop %6874 }
 0x44a   :  { %v5289_v12 = vpop.f32.mrb[8].mxu0 }
 0x44b   :  { %v6796_v13 = vadd.f32 %v5289_v12, %v3835_v29  ;;  %v5291_v23 = vpop.f32.mrb[9].mxu0  ;;  %v5545_v12 = vrot.slane %v5536_v42, %v7831_v9 }
 0x44c   :  { %v6797_v14 = vadd.f32 %v5291_v23, %v3839_v11  ;;  %v5293_v15 = vpop.f32.mrb[10].mxu0  ;;  %v5541_v11 = vrot.slane %v5536_v42, %v7826_v4  ;;  %v5954_v23 = vld [vmem:[#allocation15] sm:$0x3] }
 0x44d   :  { %v5460_v38 = vmul.f32 0.2, %v6796_v13  ;;  %v5294_v16 = vpop.f32.mrb[11].mxu0 }
 0x44e   :  { %v5461_v18 = vmul.f32 0.2, %v6797_v14 }
 0x44f   :  { %v5464_v19 = vmax.f32 %v6796_v13, %v5460_v38 }
 0x450   :  { %v5465_v21 = vmax.f32 %v6797_v14, %v5461_v18 }
 0x451   :  { %v5468_v27 = vpack.c.bf16 %v5464_v19, %v5464_v19 }
 0x452   :  { %v5469_v24 = vpack.c.bf16 %v5465_v21, %v5465_v21  ;;  %v5959_v21 = vrot.slane %v5954_v23, %v7826_v4  ;;  %v5983_v4 = vand.u32 127, %v589_v45 }
 0x454   :  { %5900 = vmatprep.mubr.bf16.mxu0 %v5469_v24 }
 0x455   :  { %5901 = vmatmul.mubr.bf16.vlgmr.msra.gmra.mrb[12].mxu0 %v5468_v27 }
 0x456   :  { %5910 = vmatpush1.bf16.msra.mxu0 %v7331_v26  ;;  %v5963_v26 = vrot.slane %v5954_v23, %v7831_v9 }
 0x457   :  { %5911 = vmatprep.subr.bf16.mxu0 %v7336_v8 }
 0x45a   :  { %5912 = vmatpush1.bf16.msra.mxu0 %v7334_v54 }
 0x45b   :  { %5913 = vmatprep.subr.bf16.mxu0 %v7339_v28 }
 0x45e   :  { %5914 = vmatpush1.bf16.msra.mxu0 %v7337_v55 }
 0x45f   :  { %5915 = vmatprep.subr.bf16.mxu0 %v7342_v30  ;;  %v5973_v30 = vstv %s6875_s7 }
 0x462   :  { %5916 = vmatpush1.bf16.msra.mxu0 %v7340_v31 }
 0x463   :  { %5917 = vmatprep.subr.bf16.mxu0 %v7345_v32 }
 0x466   :  { %5918 = vmatpush1.bf16.msra.mxu0 %v7343_v33 }
 0x467   :  { %5919 = vmatprep.subr.bf16.mxu0 %v7348_v35 }
 0x46a   :  { %5920 = vmatpush1.bf16.msra.mxu0 %v7346_v36 }
 0x46b   :  { %5921 = vmatprep.subr.bf16.mxu0 %v7351_v39  ;;  %v5986_v39 = vsub.s32 %v5983_v4, %v7823_v58 }
 0x46c   :  { %v5453_v43 = vpop.f32.mrb[12].mxu1 }
 0x46d   :  { %v5455_v20 = vpop.f32.mrb[13].mxu1  ;;  %v6798_v0 = vadd.f32 %v5453_v43, %v3843_v25 }
 0x46e   :  { %v6799_v59 = vadd.f32 %v5455_v20, %v3847_v41  ;;  %5922 = vmatpush1.bf16.msra.mxu0 %v7349_v40  ;;  %v5457_v44 = vpop.f32.mrb[14].mxu1 }
 0x46f   :  { %v5458_v47 = vpop.f32.mrb[15].mxu1  ;;  %5923 = vmatprep.subr.bf16.mxu0 %v7354_v48  ;;  %v5462_v6 = vmul.f32 0.2, %v6798_v0 }
 0x470   :  { %v5463_v51 = vmul.f32 0.2, %v6799_v59 }
 0x471   :  { %v5466_v10 = vmax.f32 %v6798_v0, %v5462_v6 }
 0x472   :  { %v5467_v37 = vmax.f32 %v6799_v59, %v5463_v51  ;;  %5924 = vmatpush1.bf16.msra.mxu0 %v7352_v53 }
 0x473   :  { %5925 = vmatprep.subr.bf16.mxu0 %v7357_v50  ;;  %v5470_v29 = vpack.c.bf16 %v5466_v10, %v5466_v10 }
 0x474   :  { %v5471_v17 = vpack.c.bf16 %v5467_v37, %v5467_v37 }
 0x476   :  { %5926 = vmatpush1.bf16.msra.mxu0 %v7355_v52  ;;  %5941 = vmatprep.mubr.bf16.mxu0 %v5471_v17 }
 0x477   :  { %5927 = vmatprep.subr.bf16.mxu0 %v7360_v34 }
 0x47a   :  { %5928 = vmatpush1.bf16.msra.mxu0 %v7358_v62 }
 0x47b   :  { %5929 = vmatprep.subr.bf16.mxu0 %v7363_v2 }
 0x47e   :  { %5930 = vmatpush1.bf16.msra.mxu0 %v7361_v56 }
 0x47f   :  { %5931 = vmatprep.subr.bf16.mxu0 %v7366_v49 }
 0x482   :  { %5932 = vmatpush1.bf16.msra.mxu0 %v7364_v57 }
 0x483   :  { %5933 = vmatprep.subr.bf16.mxu0 %v7369_v60 }
 0x486   :  { %5934 = vmatpush1.bf16.msra.mxu0 %v7367_v46 }
 0x487   :  { %5935 = vmatprep.subr.bf16.mxu0 %v7372_v61 }
 0x48a   :  { %5936 = vmatpush1.bf16.msra.mxu0 %v7370_v63 }
 0x48b   :  { %5937 = vmatprep.subr.bf16.mxu0 %v7375_v3 }
 0x48e   :  { %5938 = vmatpush1.bf16.msra.mxu0 %v7373_v5 }
 0x48f   :  { %5939 = vmatprep.subr.bf16.mxu0 %v7378_v22 }
 0x492   :  { %5940 = vmatpush1.bf16.msra.mxu0 %v7376_v7 }
 0x495   :  { %5942 = vmatmul.mubr.bf16.vlgmr.msra.gmra.mrb[12].mxu0 %v5470_v29 }
 0x568   :  { %v5943_v13 = vpop.f32.mrb[12].mxu0 }
 0x569   :  { %v6800_v14 = vadd.f32 %v5943_v13, %v5541_v11  ;;  %v5945_v15 = vpop.f32.mrb[13].mxu0 }
 0x56a   :  { %v6801_v38 = vadd.f32 %v5945_v15, %v5545_v12  ;;  %v5947_v16 = vpop.f32.mrb[14].mxu0 }
 0x56b   :  { %v5950_v18 = vmul.f32 0.2, %v6800_v14  ;;  %v5948_v19 = vpop.f32.mrb[15].mxu0 }
 0x56c   :  { %v5951_v24 = vmul.f32 0.2, %v6801_v38 }
 0x56d   :  { %v5952_v27 = vmax.f32 %v6800_v14, %v5950_v18 }
 0x56e   :  { %v5953_v8 = vmax.f32 %v6801_v38, %v5951_v24 }
 0x56f   :  { %v5966_v54 = vmul.f32 %v5959_v21, %v5952_v27 }
 0x570   :  { %v5967_v28 = vmul.f32 %v5963_v26, %v5953_v8 }
 0x572   :  { %v5968_v55 = vadd.f32 %v5967_v28, %v5966_v54 }
 0x574   :  { %5969 = vadd.xlane.f32.xlu0 %v5968_v55 }
 0x601   :  { %v5970_v31 = vpop.xlane.xlu0 %5969 }
 0x602   :  { %v5974_v32 = vadd.f32 %v5973_v30, %v5970_v31 }
 0x604   :  { %v6785_v33 = vmul.f32 -1.442695, %v5974_v32 }
 0x606   :  { %7379 = vpow2.f32 %v6785_v33 }
 0x610   :  { %v7380_v35 = vpop.eup %7379 }
 0x611   :  { %v5978_v36 = vadd.f32 1.0, %v7380_v35 }
 0x613   :  { %7381 = vrcp.f32 %v5978_v36 }
 0x61d   :  { %v7382_v9 = vpop.eup %7381 }
 0x61e   :  { %v5987_v40 = vrot.slane %v7382_v9, %v5986_v39 }
 0x620   :  { %5990 = vst.msk [vmem:[#allocation17] sm:$0x1] %vm5989_vm0, %v5987_v40 }
 0x621   :  { %7573 = shalt.err (!%p7570_p12)
}
 0x622   :  { %s7574_s16 = scalar_lea.hbm %s7933_s9, 16 }
 0x623   :  { %p7575_p13 = scmp.ne.s32.totalorder %s7933_s9, %s7574_s16  ;;  %p7578_p0 = scmp.lt.u32.totalorder %s7574_s16, %s7933_s9 }
 0x625   :  { %p7580_p1 = pnand %p7578_p0, %p7575_p13 }
 0x627   :  { %7583 = shalt.err (!%p7580_p1)
}
 0x628   :  { %6000 = dma.vmem_to_hbm [thread:$0]  %s5998_s12, 16, %s7933_s9, [#allocation5]  }
 0x629   :  { %7594 = dma.done.wait [#allocation5], 16  }
 0x62a   :  { %7595 = vsyncadd [#allocation5], 4294967280 }
 0x62b   :  { %6004 = vsyncpa [#allocation4], 1 }
 0x62c   :  { %6005 = vsyncpa [#allocation7], 1 }
 0x62d   :  { %6006 = vsyncpa [#allocation10], 1 }
 0x62e   :  { %6007 = vsyncpa [#allocation13], 1 }
 0x62f   :  { %6008 = vsyncpa [#allocation16], 1 }
 0x630   :  { %6009 = vsyncpa [#allocation5], 1 }

</bundles_post_ra>
